<compile_context>
chip_gen: v5e
topology: v5e:2x2
jax: 0.10.0
libtpu: 0.0.40
codegen_flags: <defaults>
</compile_context>

<pallas_src>
import jax
import jax.numpy as jnp
from jax.experimental import pallas as pl
from jax.experimental.pallas import tpu as pltpu


# ------------------------------ Fused forward kernel --------------------------
def _make_fused_kernel(num_layers, seq_len, batch, hidden):
    L, S, B, H = num_layers, seq_len, batch, hidden

    def kernel(*refs):
        it = iter(refs)
        ids_ref = next(it)        # (S*B, 1)  int32  token ids (row t*B+b <-> (t,b))
        emb_ref = next(it)        # (V, E)    bf16   embedding table
        wih0_ref = next(it)       # (E, 4H)   bf16   layer-0 W_ih^T   (i,f,o,g cols)
        whh0_ref = next(it)       # (H, 4H)   bf16   layer-0 W_hh^T
        b0_ref = next(it)         # (1, 4H)   f32    layer-0 b_ih + b_hh
        rest = [(next(it), next(it)) for _ in range(L - 1)]
        #                          per layer>=1: (2H,4H) bf16 stacked [Wih^T;Whh^T], (1,4H) f32
        wout_ref = next(it)       # (H, V)    bf16
        bout_ref = next(it)       # (1, V)    f32
        h0_ref = next(it)         # (L, B, H) f32
        c0_ref = next(it)         # (L, B, H) f32
        logits_ref = next(it)     # (S*B, V)  f32  out
        hT_ref = next(it)         # (L, B, H) f32  out
        cT_ref = next(it)         # (L, B, H) f32  out
        out_buf = next(it)        # (S*B, H)  f32  VMEM scratch: top-layer h per step

        V = emb_ref.shape[0]

        # ---- In-kernel embedding: one-hot bf16 matmul against the resident table
        # (exactly reproduces the bf16 rows since accumulation is f32).
        ids = ids_ref[...]                                            # (S*B, 1) i32
        lane = jax.lax.broadcasted_iota(jnp.int32, (S * B, V), 1)
        onehot = jnp.where(ids == lane, 1.0, 0.0).astype(jnp.bfloat16)
        emb = jnp.dot(onehot, emb_ref[...],
                      preferred_element_type=jnp.float32)             # (S*B, E)

        # ---- Layer-0 input projection hoisted over all S steps (one MXU call),
        # with the folded (b_ih + b_hh) bias added once.
        xp0 = jnp.dot(emb.astype(jnp.bfloat16), wih0_ref[...],
                      preferred_element_type=jnp.float32) + b0_ref[...]  # (S*B,4H)

        whh0 = whh0_ref[...]                                          # (H,4H) bf16
        wcat_l = [wr[...] for (wr, _) in rest]                        # hoisted loads
        b_l = [br[...] for (_, br) in rest]

        def cell_update(gates, c_prev):
            # Gate columns are pre-permuted to (i, f, o, g): ONE sigmoid over a
            # contiguous (B,3H) slab + ONE tanh over (B,H).  f32 pointwise path.
            sig = jax.nn.sigmoid(gates[:, :3 * H])
            i_g = sig[:, 0 * H:1 * H]
            f_g = sig[:, 1 * H:2 * H]
            o_g = sig[:, 2 * H:3 * H]
            g_g = jnp.tanh(gates[:, 3 * H:4 * H])
            c_new = f_g * c_prev + i_g * g_g
            h_new = o_g * jnp.tanh(c_new)
            return h_new, c_new

        h = [h0_ref[l] for l in range(L)]                             # f32 (B,H)
        c = [c0_ref[l] for l in range(L)]

        # ---- Wavefront over (time x layer): pipeline step p runs layer l at
        # t = p - l.  Layers are visited top-down so layer l reads layer l-1's
        # output from pipeline step p-1 (i.e. time t) before it is overwritten.
        # Fully unrolled: layer l step t and layer l-1 step t+1 are independent,
        # so the scheduler overlaps their MXU/EUP/VPU work.
        for p in range(S + L - 1):
            for l in range(L - 1, -1, -1):
                t = p - l
                if not (0 <= t < S):
                    continue
                if l == 0:
                    gates = xp0[t * B:(t + 1) * B] + jnp.dot(
                        h[0].astype(jnp.bfloat16), whh0,
                        preferred_element_type=jnp.float32)
                else:
                    # K = 2H = 256 stacked gate matmul: [x_t ; h_{t-1}] @ [Wih^T;Whh^T]
                    lhs = jnp.concatenate(
                        [h[l - 1].astype(jnp.bfloat16),
                         h[l].astype(jnp.bfloat16)], axis=1)          # (B, 2H)
                    gates = jnp.dot(lhs, wcat_l[l - 1],
                                    preferred_element_type=jnp.float32) + b_l[l - 1]
                h[l], c[l] = cell_update(gates, c[l])
                if l == L - 1:
                    out_buf[t * B:(t + 1) * B, :] = h[l]              # static slice

        for l in range(L):
            hT_ref[l] = h[l]
            cT_ref[l] = c[l]

        # ---- Fused output projection straight from the VMEM scratch.
        logits_ref[...] = jnp.dot(out_buf[...].astype(jnp.bfloat16), wout_ref[...],
                                  preferred_element_type=jnp.float32) + bout_ref[...]

    return kernel


# ------------------------------ Wrapper ---------------------------------------
def char_lstm_forward(params, x_ids, hidden):
    """Fused Pallas forward.  x_ids: (S, B) int token ids (time-major, as in
    PyTorch nn.LSTM).  hidden: (h0, c0) each (L, B, H) float32."""
    h0_all, c0_all = hidden
    S, B = x_ids.shape
    L, _, H = h0_all.shape
    V = params["w_out_t"].shape[-1]

    ids2d = x_ids.reshape(S * B, 1).astype(jnp.int32)

    inputs = [ids2d, params["embedding"], *params["lstm0"]]
    for (w_cat, b) in params["lstm_rest"]:
        inputs += [w_cat, b]
    inputs += [params["w_out_t"], params["b_out"], h0_all, c0_all]

    logits2d, h_n, c_n = pl.pallas_call(
        _make_fused_kernel(L, S, B, H),
        out_shape=(jax.ShapeDtypeStruct((S * B, V), jnp.float32),
                   jax.ShapeDtypeStruct((L, B, H), jnp.float32),
                   jax.ShapeDtypeStruct((L, B, H), jnp.float32)),
        scratch_shapes=[pltpu.VMEM((S * B, H), jnp.float32)],
    )(*inputs)

    return logits2d.reshape(S, B, V), (h_n, c_n)


# ------------------------------ Parameter init --------------------------------
def init_params(key, vocab_size, emb_size, hidden_size, num_layers):
    """Parameters stored MXU-ready:
      * matmul weights + embedding table in bfloat16, pre-transposed,
      * gate columns in (i, f, o, g) order (a real PyTorch checkpoint, (i,f,g,o),
        would be column-permuted once at load time),
      * the two LSTM biases pre-summed into a single f32 (1, 4H) row,
      * layers >= 1 store [W_ih^T ; W_hh^T] stacked as (2H, 4H) so the per-step
        gate matmul is a single K = 2H MXU push.
    """
    H = hidden_size
    keys = jax.random.split(key, 3 + num_layers)
    k = 1.0 / jnp.sqrt(H)

    def unif(kk, shape):
        return jax.random.uniform(kk, shape, jnp.float32, -k, k)

    params = {
        "embedding": jax.random.normal(keys[0], (vocab_size, emb_size),
                                       jnp.float32).astype(jnp.bfloat16),
        "w_out_t": unif(keys[1], (H, vocab_size)).astype(jnp.bfloat16),
        "b_out": unif(keys[2], (1, vocab_size)),
        "lstm_rest": [],
    }
    for l in range(num_layers):
        in_size = emb_size if l == 0 else H
        k0, k1, k2, k3 = jax.random.split(keys[3 + l], 4)
        w_ih_t = unif(k0, (in_size, 4 * H))
        w_hh_t = unif(k1, (H, 4 * H))
        b_row = (unif(k2, (4 * H,)) + unif(k3, (4 * H,)))[None, :]    # b_ih + b_hh
        if l == 0:
            params["lstm0"] = (w_ih_t.astype(jnp.bfloat16),
                               w_hh_t.astype(jnp.bfloat16), b_row)
        else:
            w_cat = jnp.concatenate([w_ih_t, w_hh_t], axis=0)         # (2H, 4H)
            params["lstm_rest"].append((w_cat.astype(jnp.bfloat16), b_row))
    return params


# ------------------------------ Pure-JAX reference -----------------------------
def char_lstm_reference(params, x_ids, hidden, matmul_dtype=jnp.float32):
    """Straight-line JAX reference.  matmul_dtype=f32 -> exact math on the stored
    (bf16-quantized) weights; matmul_dtype=bf16 -> mirrors the kernel's mixed
    precision policy.  Pointwise math is always f32."""
    h_all, c_all = hidden
    H = h_all.shape[-1]

    def mm(a, w):
        return jnp.dot(a.astype(matmul_dtype), w.astype(matmul_dtype),
                       preferred_element_type=jnp.float32)

    def step(x_t, h, c, w_x, w_h, b):
        gates = mm(x_t, w_x) + mm(h, w_h) + b
        i = jax.nn.sigmoid(gates[:, 0 * H:1 * H])
        f = jax.nn.sigmoid(gates[:, 1 * H:2 * H])
        o = jax.nn.sigmoid(gates[:, 2 * H:3 * H])
        g = jnp.tanh(gates[:, 3 * H:4 * H])
        c = f * c + i * g
        h = o * jnp.tanh(c)
        return h, c

    emb = jnp.take(params["embedding"], x_ids, axis=0).astype(jnp.float32)
    S = emb.shape[0]

    layer_weights = [params["lstm0"]]
    for (w_cat, b) in params["lstm_rest"]:
        layer_weights.append((w_cat[:H], w_cat[H:], b))

    inp = emb
    h_fin, c_fin = [], []
    for l, (w_x, w_h, b) in enumerate(layer_weights):
        h, c = h_all[l], c_all[l]
        outs = []
        for t in range(S):
            h, c = step(inp[t], h, c, w_x, w_h, b)
            outs.append(h)
        inp = jnp.stack(outs)
        h_fin.append(h)
        c_fin.append(c)

    logits = mm(inp, params["w_out_t"]) + params["b_out"]
    return logits, (jnp.stack(h_fin), jnp.stack(c_fin))


# ------------------------------------ Main -------------------------------------
if __name__ == "__main__":
    VOCAB, EMB, HIDDEN, LAYERS = 256, 128, 128, 2
    SEQ, BATCH = 8, 8

    key = jax.random.PRNGKey(0)
    k_par, k_ids = jax.random.split(key)
    params = init_params(k_par, VOCAB, EMB, HIDDEN, LAYERS)

    x_ids = jax.random.randint(k_ids, (SEQ, BATCH), 0, VOCAB, dtype=jnp.int32)
    hidden0 = (jnp.zeros((LAYERS, BATCH, HIDDEN), jnp.float32),
               jnp.zeros((LAYERS, BATCH, HIDDEN), jnp.float32))

    logits, (h_n, c_n) = char_lstm_forward(params, x_ids, hidden0)
    jax.block_until_ready((logits, h_n, c_n))

    assert logits.shape == (SEQ, BATCH, VOCAB)
    assert h_n.shape == (LAYERS, BATCH, HIDDEN)
    assert c_n.shape == (LAYERS, BATCH, HIDDEN)

    # (1) Strict: reference with the SAME mixed-precision matmul policy as the
    #     kernel (bf16 operands, f32 accumulation/pointwise) -> checks dataflow.
    ref_l, (ref_h, ref_c) = char_lstm_reference(params, x_ids, hidden0,
                                                matmul_dtype=jnp.bfloat16)
    assert jnp.allclose(logits, ref_l, atol=5e-3, rtol=5e-3)
    assert jnp.allclose(h_n, ref_h, atol=5e-3, rtol=5e-3)
    assert jnp.allclose(c_n, ref_c, atol=5e-3, rtol=5e-3)

    # (2) Loose: full-f32 math on the same stored weights -> bounds the declared
    #     bf16-operand quantization over the S*L recurrence.
    ref_l, (ref_h, ref_c) = char_lstm_reference(params, x_ids, hidden0,
                                                matmul_dtype=jnp.float32)
    assert jnp.allclose(logits, ref_l, atol=2.5e-2, rtol=2.5e-2)
    assert jnp.allclose(h_n, ref_h, atol=2.5e-2, rtol=2.5e-2)
    assert jnp.allclose(c_n, ref_c, atol=2.5e-2, rtol=2.5e-2)

    print("KERNEL_OK")
</pallas_src>

<mosaic_0001>
module attributes {stable_mosaic.version = 11 : i64} {
  func.func @kernel(%arg0: memref<64x1xi32, #tpu.memory_space<vmem>>, %arg1: memref<256x128xbf16, #tpu.memory_space<vmem>>, %arg2: memref<128x512xbf16, #tpu.memory_space<vmem>>, %arg3: memref<128x512xbf16, #tpu.memory_space<vmem>>, %arg4: memref<1x512xf32, #tpu.memory_space<vmem>>, %arg5: memref<256x512xbf16, #tpu.memory_space<vmem>>, %arg6: memref<1x512xf32, #tpu.memory_space<vmem>>, %arg7: memref<128x256xbf16, #tpu.memory_space<vmem>>, %arg8: memref<1x256xf32, #tpu.memory_space<vmem>>, %arg9: memref<2x8x128xf32, #tpu.memory_space<vmem>>, %arg10: memref<2x8x128xf32, #tpu.memory_space<vmem>>, %arg11: memref<64x256xf32, #tpu.memory_space<vmem>>, %arg12: memref<2x8x128xf32, #tpu.memory_space<vmem>>, %arg13: memref<2x8x128xf32, #tpu.memory_space<vmem>>, %arg14: memref<64x128xf32, #tpu.memory_space<vmem>>) attributes {dimension_semantics = [], scalar_prefetch = 0 : i64, scratch_operands = 1 : i64, tpu.core_type = #tpu.core_type<tc>} {
    %c0 = arith.constant 0 : index
    %c0_0 = arith.constant 0 : index
    %0 = vector.load %arg0[%c0, %c0_0] : memref<64x1xi32, #tpu.memory_space<vmem>>, vector<64x1xi32>
    %1 = tpu.iota {dimensions = array<i32: 1>} : vector<64x256xi32>
    %2 = vector.broadcast %0 : vector<64x1xi32> to vector<64x256xi32>
    %3 = arith.cmpi eq, %2, %1 : vector<64x256xi32>
    %cst = arith.constant 1.000000e+00 : f32
    %cst_1 = arith.constant 0.000000e+00 : f32
    %4 = vector.broadcast %cst : f32 to vector<64x256xf32>
    %5 = vector.broadcast %cst_1 : f32 to vector<64x256xf32>
    %6 = arith.select %3, %4, %5 : vector<64x256xi1>, vector<64x256xf32>
    %7 = arith.truncf %6 : vector<64x256xf32> to vector<64x256xbf16>
    %c0_2 = arith.constant 0 : index
    %c0_3 = arith.constant 0 : index
    %8 = vector.load %arg1[%c0_2, %c0_3] : memref<256x128xbf16, #tpu.memory_space<vmem>>, vector<256x128xbf16>
    %cst_4 = arith.constant dense<0.000000e+00> : vector<64x128xf32>
    %9 = tpu.matmul %7, %8, %cst_4 {dimension_numbers = #tpu.dot_dimension_numbers<[1], [0], [0], [1], [0, 0, 1, 1], [], []>} : vector<64x256xbf16>, vector<256x128xbf16>, vector<64x128xf32> -> vector<64x128xf32>
    %10 = arith.truncf %9 : vector<64x128xf32> to vector<64x128xbf16>
    %c0_5 = arith.constant 0 : index
    %c0_6 = arith.constant 0 : index
    %11 = vector.load %arg2[%c0_5, %c0_6] : memref<128x512xbf16, #tpu.memory_space<vmem>>, vector<128x512xbf16>
    %cst_7 = arith.constant dense<0.000000e+00> : vector<64x512xf32>
    %12 = tpu.matmul %10, %11, %cst_7 {dimension_numbers = #tpu.dot_dimension_numbers<[1], [0], [0], [1], [0, 0, 1, 1], [], []>} : vector<64x128xbf16>, vector<128x512xbf16>, vector<64x512xf32> -> vector<64x512xf32>
    %c0_8 = arith.constant 0 : index
    %c0_9 = arith.constant 0 : index
    %13 = vector.load %arg4[%c0_8, %c0_9] : memref<1x512xf32, #tpu.memory_space<vmem>>, vector<1x512xf32>
    %14 = vector.broadcast %13 : vector<1x512xf32> to vector<64x512xf32>
    %15 = arith.addf %12, %14 : vector<64x512xf32>
    %c0_10 = arith.constant 0 : index
    %c0_11 = arith.constant 0 : index
    %16 = vector.load %arg3[%c0_10, %c0_11] : memref<128x512xbf16, #tpu.memory_space<vmem>>, vector<128x512xbf16>
    %c0_12 = arith.constant 0 : index
    %c0_13 = arith.constant 0 : index
    %17 = vector.load %arg5[%c0_12, %c0_13] : memref<256x512xbf16, #tpu.memory_space<vmem>>, vector<256x512xbf16>
    %c0_14 = arith.constant 0 : index
    %c0_15 = arith.constant 0 : index
    %18 = vector.load %arg6[%c0_14, %c0_15] : memref<1x512xf32, #tpu.memory_space<vmem>>, vector<1x512xf32>
    %c0_16 = arith.constant 0 : index
    %c0_17 = arith.constant 0 : index
    %c0_18 = arith.constant 0 : index
    %19 = vector.load %arg9[%c0_16, %c0_17, %c0_18] : memref<2x8x128xf32, #tpu.memory_space<vmem>>, vector<1x8x128xf32>
    %20 = vector.shape_cast %19 : vector<1x8x128xf32> to vector<8x128xf32>
    %c1 = arith.constant 1 : index
    %c0_19 = arith.constant 0 : index
    %c0_20 = arith.constant 0 : index
    %21 = vector.load %arg9[%c1, %c0_19, %c0_20] : memref<2x8x128xf32, #tpu.memory_space<vmem>>, vector<1x8x128xf32>
    %22 = vector.shape_cast %21 : vector<1x8x128xf32> to vector<8x128xf32>
    %c0_21 = arith.constant 0 : index
    %c0_22 = arith.constant 0 : index
    %c0_23 = arith.constant 0 : index
    %23 = vector.load %arg10[%c0_21, %c0_22, %c0_23] : memref<2x8x128xf32, #tpu.memory_space<vmem>>, vector<1x8x128xf32>
    %24 = vector.shape_cast %23 : vector<1x8x128xf32> to vector<8x128xf32>
    %c1_24 = arith.constant 1 : index
    %c0_25 = arith.constant 0 : index
    %c0_26 = arith.constant 0 : index
    %25 = vector.load %arg10[%c1_24, %c0_25, %c0_26] : memref<2x8x128xf32, #tpu.memory_space<vmem>>, vector<1x8x128xf32>
    %26 = vector.shape_cast %25 : vector<1x8x128xf32> to vector<8x128xf32>
    %27 = vector.extract_strided_slice %15 {offsets = [0, 0], sizes = [8, 512], strides = [1, 1]} : vector<64x512xf32> to vector<8x512xf32>
    %28 = arith.truncf %20 : vector<8x128xf32> to vector<8x128xbf16>
    %cst_27 = arith.constant dense<0.000000e+00> : vector<8x512xf32>
    %29 = tpu.matmul %28, %16, %cst_27 {dimension_numbers = #tpu.dot_dimension_numbers<[1], [0], [0], [1], [0, 0, 1, 1], [], []>} : vector<8x128xbf16>, vector<128x512xbf16>, vector<8x512xf32> -> vector<8x512xf32>
    %30 = arith.addf %27, %29 : vector<8x512xf32>
    %31 = vector.extract_strided_slice %30 {offsets = [0, 0], sizes = [8, 384], strides = [1, 1]} : vector<8x512xf32> to vector<8x384xf32>
    %32 = arith.negf %31 : vector<8x384xf32>
    %33 = math.exp %32 : vector<8x384xf32>
    %cst_28 = arith.constant 1.000000e+00 : f32
    %34 = vector.broadcast %cst_28 : f32 to vector<8x384xf32>
    %35 = arith.addf %34, %33 : vector<8x384xf32>
    %36 = arith.divf %34, %35 : vector<8x384xf32>
    %37 = vector.extract_strided_slice %36 {offsets = [0, 0], sizes = [8, 128], strides = [1, 1]} : vector<8x384xf32> to vector<8x128xf32>
    %38 = vector.extract_strided_slice %36 {offsets = [0, 128], sizes = [8, 128], strides = [1, 1]} : vector<8x384xf32> to vector<8x128xf32>
    %39 = vector.extract_strided_slice %36 {offsets = [0, 256], sizes = [8, 128], strides = [1, 1]} : vector<8x384xf32> to vector<8x128xf32>
    %40 = vector.extract_strided_slice %30 {offsets = [0, 384], sizes = [8, 128], strides = [1, 1]} : vector<8x512xf32> to vector<8x128xf32>
    %41 = math.tanh %40 : vector<8x128xf32>
    %42 = arith.mulf %38, %24 : vector<8x128xf32>
    %43 = arith.mulf %37, %41 : vector<8x128xf32>
    %44 = arith.addf %42, %43 : vector<8x128xf32>
    %45 = math.tanh %44 : vector<8x128xf32>
    %46 = arith.mulf %39, %45 : vector<8x128xf32>
    %47 = arith.truncf %46 : vector<8x128xf32> to vector<8x128xbf16>
    %48 = arith.truncf %22 : vector<8x128xf32> to vector<8x128xbf16>
    %49 = tpu.concatenate %47, %48 in 1 : vector<8x128xbf16>, vector<8x128xbf16> -> vector<8x256xbf16>
    %cst_29 = arith.constant dense<0.000000e+00> : vector<8x512xf32>
    %50 = tpu.matmul %49, %17, %cst_29 {dimension_numbers = #tpu.dot_dimension_numbers<[1], [0], [0], [1], [0, 0, 1, 1], [], []>} : vector<8x256xbf16>, vector<256x512xbf16>, vector<8x512xf32> -> vector<8x512xf32>
    %51 = vector.broadcast %18 : vector<1x512xf32> to vector<8x512xf32>
    %52 = arith.addf %50, %51 : vector<8x512xf32>
    %53 = vector.extract_strided_slice %52 {offsets = [0, 0], sizes = [8, 384], strides = [1, 1]} : vector<8x512xf32> to vector<8x384xf32>
    %54 = arith.negf %53 : vector<8x384xf32>
    %55 = math.exp %54 : vector<8x384xf32>
    %cst_30 = arith.constant 1.000000e+00 : f32
    %56 = vector.broadcast %cst_30 : f32 to vector<8x384xf32>
    %57 = arith.addf %56, %55 : vector<8x384xf32>
    %58 = arith.divf %56, %57 : vector<8x384xf32>
    %59 = vector.extract_strided_slice %58 {offsets = [0, 0], sizes = [8, 128], strides = [1, 1]} : vector<8x384xf32> to vector<8x128xf32>
    %60 = vector.extract_strided_slice %58 {offsets = [0, 128], sizes = [8, 128], strides = [1, 1]} : vector<8x384xf32> to vector<8x128xf32>
    %61 = vector.extract_strided_slice %58 {offsets = [0, 256], sizes = [8, 128], strides = [1, 1]} : vector<8x384xf32> to vector<8x128xf32>
    %62 = vector.extract_strided_slice %52 {offsets = [0, 384], sizes = [8, 128], strides = [1, 1]} : vector<8x512xf32> to vector<8x128xf32>
    %63 = math.tanh %62 : vector<8x128xf32>
    %64 = arith.mulf %60, %26 : vector<8x128xf32>
    %65 = arith.mulf %59, %63 : vector<8x128xf32>
    %66 = arith.addf %64, %65 : vector<8x128xf32>
    %67 = math.tanh %66 : vector<8x128xf32>
    %68 = arith.mulf %61, %67 : vector<8x128xf32>
    %c0_31 = arith.constant 0 : index
    %c0_32 = arith.constant 0 : index
    %69 = vector.load %arg14[%c0_31, %c0_32] : memref<64x128xf32, #tpu.memory_space<vmem>>, vector<8x128xf32>
    tpu.vector_store %arg14[%c0_31, %c0_32], %68 {strides = array<i32>} : memref<64x128xf32, #tpu.memory_space<vmem>>, vector<8x128xf32>,
    %70 = vector.extract_strided_slice %15 {offsets = [8, 0], sizes = [8, 512], strides = [1, 1]} : vector<64x512xf32> to vector<8x512xf32>
    %71 = arith.truncf %46 : vector<8x128xf32> to vector<8x128xbf16>
    %cst_33 = arith.constant dense<0.000000e+00> : vector<8x512xf32>
    %72 = tpu.matmul %71, %16, %cst_33 {dimension_numbers = #tpu.dot_dimension_numbers<[1], [0], [0], [1], [0, 0, 1, 1], [], []>} : vector<8x128xbf16>, vector<128x512xbf16>, vector<8x512xf32> -> vector<8x512xf32>
    %73 = arith.addf %70, %72 : vector<8x512xf32>
    %74 = vector.extract_strided_slice %73 {offsets = [0, 0], sizes = [8, 384], strides = [1, 1]} : vector<8x512xf32> to vector<8x384xf32>
    %75 = arith.negf %74 : vector<8x384xf32>
    %76 = math.exp %75 : vector<8x384xf32>
    %cst_34 = arith.constant 1.000000e+00 : f32
    %77 = vector.broadcast %cst_34 : f32 to vector<8x384xf32>
    %78 = arith.addf %77, %76 : vector<8x384xf32>
    %79 = arith.divf %77, %78 : vector<8x384xf32>
    %80 = vector.extract_strided_slice %79 {offsets = [0, 0], sizes = [8, 128], strides = [1, 1]} : vector<8x384xf32> to vector<8x128xf32>
    %81 = vector.extract_strided_slice %79 {offsets = [0, 128], sizes = [8, 128], strides = [1, 1]} : vector<8x384xf32> to vector<8x128xf32>
    %82 = vector.extract_strided_slice %79 {offsets = [0, 256], sizes = [8, 128], strides = [1, 1]} : vector<8x384xf32> to vector<8x128xf32>
    %83 = vector.extract_strided_slice %73 {offsets = [0, 384], sizes = [8, 128], strides = [1, 1]} : vector<8x512xf32> to vector<8x128xf32>
    %84 = math.tanh %83 : vector<8x128xf32>
    %85 = arith.mulf %81, %44 : vector<8x128xf32>
    %86 = arith.mulf %80, %84 : vector<8x128xf32>
    %87 = arith.addf %85, %86 : vector<8x128xf32>
    %88 = math.tanh %87 : vector<8x128xf32>
    %89 = arith.mulf %82, %88 : vector<8x128xf32>
    %90 = arith.truncf %89 : vector<8x128xf32> to vector<8x128xbf16>
    %91 = arith.truncf %68 : vector<8x128xf32> to vector<8x128xbf16>
    %92 = tpu.concatenate %90, %91 in 1 : vector<8x128xbf16>, vector<8x128xbf16> -> vector<8x256xbf16>
    %cst_35 = arith.constant dense<0.000000e+00> : vector<8x512xf32>
    %93 = tpu.matmul %92, %17, %cst_35 {dimension_numbers = #tpu.dot_dimension_numbers<[1], [0], [0], [1], [0, 0, 1, 1], [], []>} : vector<8x256xbf16>, vector<256x512xbf16>, vector<8x512xf32> -> vector<8x512xf32>
    %94 = vector.broadcast %18 : vector<1x512xf32> to vector<8x512xf32>
    %95 = arith.addf %93, %94 : vector<8x512xf32>
    %96 = vector.extract_strided_slice %95 {offsets = [0, 0], sizes = [8, 384], strides = [1, 1]} : vector<8x512xf32> to vector<8x384xf32>
    %97 = arith.negf %96 : vector<8x384xf32>
    %98 = math.exp %97 : vector<8x384xf32>
    %cst_36 = arith.constant 1.000000e+00 : f32
    %99 = vector.broadcast %cst_36 : f32 to vector<8x384xf32>
    %100 = arith.addf %99, %98 : vector<8x384xf32>
    %101 = arith.divf %99, %100 : vector<8x384xf32>
    %102 = vector.extract_strided_slice %101 {offsets = [0, 0], sizes = [8, 128], strides = [1, 1]} : vector<8x384xf32> to vector<8x128xf32>
    %103 = vector.extract_strided_slice %101 {offsets = [0, 128], sizes = [8, 128], strides = [1, 1]} : vector<8x384xf32> to vector<8x128xf32>
    %104 = vector.extract_strided_slice %101 {offsets = [0, 256], sizes = [8, 128], strides = [1, 1]} : vector<8x384xf32> to vector<8x128xf32>
    %105 = vector.extract_strided_slice %95 {offsets = [0, 384], sizes = [8, 128], strides = [1, 1]} : vector<8x512xf32> to vector<8x128xf32>
    %106 = math.tanh %105 : vector<8x128xf32>
    %107 = arith.mulf %103, %66 : vector<8x128xf32>
    %108 = arith.mulf %102, %106 : vector<8x128xf32>
    %109 = arith.addf %107, %108 : vector<8x128xf32>
    %110 = math.tanh %109 : vector<8x128xf32>
    %111 = arith.mulf %104, %110 : vector<8x128xf32>
    %c8 = arith.constant 8 : index
    %c0_37 = arith.constant 0 : index
    %112 = vector.load %arg14[%c8, %c0_37] : memref<64x128xf32, #tpu.memory_space<vmem>>, vector<8x128xf32>
    tpu.vector_store %arg14[%c8, %c0_37], %111 {strides = array<i32>} : memref<64x128xf32, #tpu.memory_space<vmem>>, vector<8x128xf32>,
    %113 = vector.extract_strided_slice %15 {offsets = [16, 0], sizes = [8, 512], strides = [1, 1]} : vector<64x512xf32> to vector<8x512xf32>
    %114 = arith.truncf %89 : vector<8x128xf32> to vector<8x128xbf16>
    %cst_38 = arith.constant dense<0.000000e+00> : vector<8x512xf32>
    %115 = tpu.matmul %114, %16, %cst_38 {dimension_numbers = #tpu.dot_dimension_numbers<[1], [0], [0], [1], [0, 0, 1, 1], [], []>} : vector<8x128xbf16>, vector<128x512xbf16>, vector<8x512xf32> -> vector<8x512xf32>
    %116 = arith.addf %113, %115 : vector<8x512xf32>
    %117 = vector.extract_strided_slice %116 {offsets = [0, 0], sizes = [8, 384], strides = [1, 1]} : vector<8x512xf32> to vector<8x384xf32>
    %118 = arith.negf %117 : vector<8x384xf32>
    %119 = math.exp %118 : vector<8x384xf32>
    %cst_39 = arith.constant 1.000000e+00 : f32
    %120 = vector.broadcast %cst_39 : f32 to vector<8x384xf32>
    %121 = arith.addf %120, %119 : vector<8x384xf32>
    %122 = arith.divf %120, %121 : vector<8x384xf32>
    %123 = vector.extract_strided_slice %122 {offsets = [0, 0], sizes = [8, 128], strides = [1, 1]} : vector<8x384xf32> to vector<8x128xf32>
    %124 = vector.extract_strided_slice %122 {offsets = [0, 128], sizes = [8, 128], strides = [1, 1]} : vector<8x384xf32> to vector<8x128xf32>
    %125 = vector.extract_strided_slice %122 {offsets = [0, 256], sizes = [8, 128], strides = [1, 1]} : vector<8x384xf32> to vector<8x128xf32>
    %126 = vector.extract_strided_slice %116 {offsets = [0, 384], sizes = [8, 128], strides = [1, 1]} : vector<8x512xf32> to vector<8x128xf32>
    %127 = math.tanh %126 : vector<8x128xf32>
    %128 = arith.mulf %124, %87 : vector<8x128xf32>
    %129 = arith.mulf %123, %127 : vector<8x128xf32>
    %130 = arith.addf %128, %129 : vector<8x128xf32>
    %131 = math.tanh %130 : vector<8x128xf32>
    %132 = arith.mulf %125, %131 : vector<8x128xf32>
    %133 = arith.truncf %132 : vector<8x128xf32> to vector<8x128xbf16>
    %134 = arith.truncf %111 : vector<8x128xf32> to vector<8x128xbf16>
    %135 = tpu.concatenate %133, %134 in 1 : vector<8x128xbf16>, vector<8x128xbf16> -> vector<8x256xbf16>
    %cst_40 = arith.constant dense<0.000000e+00> : vector<8x512xf32>
    %136 = tpu.matmul %135, %17, %cst_40 {dimension_numbers = #tpu.dot_dimension_numbers<[1], [0], [0], [1], [0, 0, 1, 1], [], []>} : vector<8x256xbf16>, vector<256x512xbf16>, vector<8x512xf32> -> vector<8x512xf32>
    %137 = vector.broadcast %18 : vector<1x512xf32> to vector<8x512xf32>
    %138 = arith.addf %136, %137 : vector<8x512xf32>
    %139 = vector.extract_strided_slice %138 {offsets = [0, 0], sizes = [8, 384], strides = [1, 1]} : vector<8x512xf32> to vector<8x384xf32>
    %140 = arith.negf %139 : vector<8x384xf32>
    %141 = math.exp %140 : vector<8x384xf32>
    %cst_41 = arith.constant 1.000000e+00 : f32
    %142 = vector.broadcast %cst_41 : f32 to vector<8x384xf32>
    %143 = arith.addf %142, %141 : vector<8x384xf32>
    %144 = arith.divf %142, %143 : vector<8x384xf32>
    %145 = vector.extract_strided_slice %144 {offsets = [0, 0], sizes = [8, 128], strides = [1, 1]} : vector<8x384xf32> to vector<8x128xf32>
    %146 = vector.extract_strided_slice %144 {offsets = [0, 128], sizes = [8, 128], strides = [1, 1]} : vector<8x384xf32> to vector<8x128xf32>
    %147 = vector.extract_strided_slice %144 {offsets = [0, 256], sizes = [8, 128], strides = [1, 1]} : vector<8x384xf32> to vector<8x128xf32>
    %148 = vector.extract_strided_slice %138 {offsets = [0, 384], sizes = [8, 128], strides = [1, 1]} : vector<8x512xf32> to vector<8x128xf32>
    %149 = math.tanh %148 : vector<8x128xf32>
    %150 = arith.mulf %146, %109 : vector<8x128xf32>
    %151 = arith.mulf %145, %149 : vector<8x128xf32>
    %152 = arith.addf %150, %151 : vector<8x128xf32>
    %153 = math.tanh %152 : vector<8x128xf32>
    %154 = arith.mulf %147, %153 : vector<8x128xf32>
    %c16 = arith.constant 16 : index
    %c0_42 = arith.constant 0 : index
    %155 = vector.load %arg14[%c16, %c0_42] : memref<64x128xf32, #tpu.memory_space<vmem>>, vector<8x128xf32>
    tpu.vector_store %arg14[%c16, %c0_42], %154 {strides = array<i32>} : memref<64x128xf32, #tpu.memory_space<vmem>>, vector<8x128xf32>,
    %156 = vector.extract_strided_slice %15 {offsets = [24, 0], sizes = [8, 512], strides = [1, 1]} : vector<64x512xf32> to vector<8x512xf32>
    %157 = arith.truncf %132 : vector<8x128xf32> to vector<8x128xbf16>
    %cst_43 = arith.constant dense<0.000000e+00> : vector<8x512xf32>
    %158 = tpu.matmul %157, %16, %cst_43 {dimension_numbers = #tpu.dot_dimension_numbers<[1], [0], [0], [1], [0, 0, 1, 1], [], []>} : vector<8x128xbf16>, vector<128x512xbf16>, vector<8x512xf32> -> vector<8x512xf32>
    %159 = arith.addf %156, %158 : vector<8x512xf32>
    %160 = vector.extract_strided_slice %159 {offsets = [0, 0], sizes = [8, 384], strides = [1, 1]} : vector<8x512xf32> to vector<8x384xf32>
    %161 = arith.negf %160 : vector<8x384xf32>
    %162 = math.exp %161 : vector<8x384xf32>
    %cst_44 = arith.constant 1.000000e+00 : f32
    %163 = vector.broadcast %cst_44 : f32 to vector<8x384xf32>
    %164 = arith.addf %163, %162 : vector<8x384xf32>
    %165 = arith.divf %163, %164 : vector<8x384xf32>
    %166 = vector.extract_strided_slice %165 {offsets = [0, 0], sizes = [8, 128], strides = [1, 1]} : vector<8x384xf32> to vector<8x128xf32>
    %167 = vector.extract_strided_slice %165 {offsets = [0, 128], sizes = [8, 128], strides = [1, 1]} : vector<8x384xf32> to vector<8x128xf32>
    %168 = vector.extract_strided_slice %165 {offsets = [0, 256], sizes = [8, 128], strides = [1, 1]} : vector<8x384xf32> to vector<8x128xf32>
    %169 = vector.extract_strided_slice %159 {offsets = [0, 384], sizes = [8, 128], strides = [1, 1]} : vector<8x512xf32> to vector<8x128xf32>
    %170 = math.tanh %169 : vector<8x128xf32>
    %171 = arith.mulf %167, %130 : vector<8x128xf32>
    %172 = arith.mulf %166, %170 : vector<8x128xf32>
    %173 = arith.addf %171, %172 : vector<8x128xf32>
    %174 = math.tanh %173 : vector<8x128xf32>
    %175 = arith.mulf %168, %174 : vector<8x128xf32>
    %176 = arith.truncf %175 : vector<8x128xf32> to vector<8x128xbf16>
    %177 = arith.truncf %154 : vector<8x128xf32> to vector<8x128xbf16>
    %178 = tpu.concatenate %176, %177 in 1 : vector<8x128xbf16>, vector<8x128xbf16> -> vector<8x256xbf16>
    %cst_45 = arith.constant dense<0.000000e+00> : vector<8x512xf32>
    %179 = tpu.matmul %178, %17, %cst_45 {dimension_numbers = #tpu.dot_dimension_numbers<[1], [0], [0], [1], [0, 0, 1, 1], [], []>} : vector<8x256xbf16>, vector<256x512xbf16>, vector<8x512xf32> -> vector<8x512xf32>
    %180 = vector.broadcast %18 : vector<1x512xf32> to vector<8x512xf32>
    %181 = arith.addf %179, %180 : vector<8x512xf32>
    %182 = vector.extract_strided_slice %181 {offsets = [0, 0], sizes = [8, 384], strides = [1, 1]} : vector<8x512xf32> to vector<8x384xf32>
    %183 = arith.negf %182 : vector<8x384xf32>
    %184 = math.exp %183 : vector<8x384xf32>
    %cst_46 = arith.constant 1.000000e+00 : f32
    %185 = vector.broadcast %cst_46 : f32 to vector<8x384xf32>
    %186 = arith.addf %185, %184 : vector<8x384xf32>
    %187 = arith.divf %185, %186 : vector<8x384xf32>
    %188 = vector.extract_strided_slice %187 {offsets = [0, 0], sizes = [8, 128], strides = [1, 1]} : vector<8x384xf32> to vector<8x128xf32>
    %189 = vector.extract_strided_slice %187 {offsets = [0, 128], sizes = [8, 128], strides = [1, 1]} : vector<8x384xf32> to vector<8x128xf32>
    %190 = vector.extract_strided_slice %187 {offsets = [0, 256], sizes = [8, 128], strides = [1, 1]} : vector<8x384xf32> to vector<8x128xf32>
    %191 = vector.extract_strided_slice %181 {offsets = [0, 384], sizes = [8, 128], strides = [1, 1]} : vector<8x512xf32> to vector<8x128xf32>
    %192 = math.tanh %191 : vector<8x128xf32>
    %193 = arith.mulf %189, %152 : vector<8x128xf32>
    %194 = arith.mulf %188, %192 : vector<8x128xf32>
    %195 = arith.addf %193, %194 : vector<8x128xf32>
    %196 = math.tanh %195 : vector<8x128xf32>
    %197 = arith.mulf %190, %196 : vector<8x128xf32>
    %c24 = arith.constant 24 : index
    %c0_47 = arith.constant 0 : index
    %198 = vector.load %arg14[%c24, %c0_47] : memref<64x128xf32, #tpu.memory_space<vmem>>, vector<8x128xf32>
    tpu.vector_store %arg14[%c24, %c0_47], %197 {strides = array<i32>} : memref<64x128xf32, #tpu.memory_space<vmem>>, vector<8x128xf32>,
    %199 = vector.extract_strided_slice %15 {offsets = [32, 0], sizes = [8, 512], strides = [1, 1]} : vector<64x512xf32> to vector<8x512xf32>
    %200 = arith.truncf %175 : vector<8x128xf32> to vector<8x128xbf16>
    %cst_48 = arith.constant dense<0.000000e+00> : vector<8x512xf32>
    %201 = tpu.matmul %200, %16, %cst_48 {dimension_numbers = #tpu.dot_dimension_numbers<[1], [0], [0], [1], [0, 0, 1, 1], [], []>} : vector<8x128xbf16>, vector<128x512xbf16>, vector<8x512xf32> -> vector<8x512xf32>
    %202 = arith.addf %199, %201 : vector<8x512xf32>
    %203 = vector.extract_strided_slice %202 {offsets = [0, 0], sizes = [8, 384], strides = [1, 1]} : vector<8x512xf32> to vector<8x384xf32>
    %204 = arith.negf %203 : vector<8x384xf32>
    %205 = math.exp %204 : vector<8x384xf32>
    %cst_49 = arith.constant 1.000000e+00 : f32
    %206 = vector.broadcast %cst_49 : f32 to vector<8x384xf32>
    %207 = arith.addf %206, %205 : vector<8x384xf32>
    %208 = arith.divf %206, %207 : vector<8x384xf32>
    %209 = vector.extract_strided_slice %208 {offsets = [0, 0], sizes = [8, 128], strides = [1, 1]} : vector<8x384xf32> to vector<8x128xf32>
    %210 = vector.extract_strided_slice %208 {offsets = [0, 128], sizes = [8, 128], strides = [1, 1]} : vector<8x384xf32> to vector<8x128xf32>
    %211 = vector.extract_strided_slice %208 {offsets = [0, 256], sizes = [8, 128], strides = [1, 1]} : vector<8x384xf32> to vector<8x128xf32>
    %212 = vector.extract_strided_slice %202 {offsets = [0, 384], sizes = [8, 128], strides = [1, 1]} : vector<8x512xf32> to vector<8x128xf32>
    %213 = math.tanh %212 : vector<8x128xf32>
    %214 = arith.mulf %210, %173 : vector<8x128xf32>
    %215 = arith.mulf %209, %213 : vector<8x128xf32>
    %216 = arith.addf %214, %215 : vector<8x128xf32>
    %217 = math.tanh %216 : vector<8x128xf32>
    %218 = arith.mulf %211, %217 : vector<8x128xf32>
    %219 = arith.truncf %218 : vector<8x128xf32> to vector<8x128xbf16>
    %220 = arith.truncf %197 : vector<8x128xf32> to vector<8x128xbf16>
    %221 = tpu.concatenate %219, %220 in 1 : vector<8x128xbf16>, vector<8x128xbf16> -> vector<8x256xbf16>
    %cst_50 = arith.constant dense<0.000000e+00> : vector<8x512xf32>
    %222 = tpu.matmul %221, %17, %cst_50 {dimension_numbers = #tpu.dot_dimension_numbers<[1], [0], [0], [1], [0, 0, 1, 1], [], []>} : vector<8x256xbf16>, vector<256x512xbf16>, vector<8x512xf32> -> vector<8x512xf32>
    %223 = vector.broadcast %18 : vector<1x512xf32> to vector<8x512xf32>
    %224 = arith.addf %222, %223 : vector<8x512xf32>
    %225 = vector.extract_strided_slice %224 {offsets = [0, 0], sizes = [8, 384], strides = [1, 1]} : vector<8x512xf32> to vector<8x384xf32>
    %226 = arith.negf %225 : vector<8x384xf32>
    %227 = math.exp %226 : vector<8x384xf32>
    %cst_51 = arith.constant 1.000000e+00 : f32
    %228 = vector.broadcast %cst_51 : f32 to vector<8x384xf32>
    %229 = arith.addf %228, %227 : vector<8x384xf32>
    %230 = arith.divf %228, %229 : vector<8x384xf32>
    %231 = vector.extract_strided_slice %230 {offsets = [0, 0], sizes = [8, 128], strides = [1, 1]} : vector<8x384xf32> to vector<8x128xf32>
    %232 = vector.extract_strided_slice %230 {offsets = [0, 128], sizes = [8, 128], strides = [1, 1]} : vector<8x384xf32> to vector<8x128xf32>
    %233 = vector.extract_strided_slice %230 {offsets = [0, 256], sizes = [8, 128], strides = [1, 1]} : vector<8x384xf32> to vector<8x128xf32>
    %234 = vector.extract_strided_slice %224 {offsets = [0, 384], sizes = [8, 128], strides = [1, 1]} : vector<8x512xf32> to vector<8x128xf32>
    %235 = math.tanh %234 : vector<8x128xf32>
    %236 = arith.mulf %232, %195 : vector<8x128xf32>
    %237 = arith.mulf %231, %235 : vector<8x128xf32>
    %238 = arith.addf %236, %237 : vector<8x128xf32>
    %239 = math.tanh %238 : vector<8x128xf32>
    %240 = arith.mulf %233, %239 : vector<8x128xf32>
    %c32 = arith.constant 32 : index
    %c0_52 = arith.constant 0 : index
    %241 = vector.load %arg14[%c32, %c0_52] : memref<64x128xf32, #tpu.memory_space<vmem>>, vector<8x128xf32>
    tpu.vector_store %arg14[%c32, %c0_52], %240 {strides = array<i32>} : memref<64x128xf32, #tpu.memory_space<vmem>>, vector<8x128xf32>,
    %242 = vector.extract_strided_slice %15 {offsets = [40, 0], sizes = [8, 512], strides = [1, 1]} : vector<64x512xf32> to vector<8x512xf32>
    %243 = arith.truncf %218 : vector<8x128xf32> to vector<8x128xbf16>
    %cst_53 = arith.constant dense<0.000000e+00> : vector<8x512xf32>
    %244 = tpu.matmul %243, %16, %cst_53 {dimension_numbers = #tpu.dot_dimension_numbers<[1], [0], [0], [1], [0, 0, 1, 1], [], []>} : vector<8x128xbf16>, vector<128x512xbf16>, vector<8x512xf32> -> vector<8x512xf32>
    %245 = arith.addf %242, %244 : vector<8x512xf32>
    %246 = vector.extract_strided_slice %245 {offsets = [0, 0], sizes = [8, 384], strides = [1, 1]} : vector<8x512xf32> to vector<8x384xf32>
    %247 = arith.negf %246 : vector<8x384xf32>
    %248 = math.exp %247 : vector<8x384xf32>
    %cst_54 = arith.constant 1.000000e+00 : f32
    %249 = vector.broadcast %cst_54 : f32 to vector<8x384xf32>
    %250 = arith.addf %249, %248 : vector<8x384xf32>
    %251 = arith.divf %249, %250 : vector<8x384xf32>
    %252 = vector.extract_strided_slice %251 {offsets = [0, 0], sizes = [8, 128], strides = [1, 1]} : vector<8x384xf32> to vector<8x128xf32>
    %253 = vector.extract_strided_slice %251 {offsets = [0, 128], sizes = [8, 128], strides = [1, 1]} : vector<8x384xf32> to vector<8x128xf32>
    %254 = vector.extract_strided_slice %251 {offsets = [0, 256], sizes = [8, 128], strides = [1, 1]} : vector<8x384xf32> to vector<8x128xf32>
    %255 = vector.extract_strided_slice %245 {offsets = [0, 384], sizes = [8, 128], strides = [1, 1]} : vector<8x512xf32> to vector<8x128xf32>
    %256 = math.tanh %255 : vector<8x128xf32>
    %257 = arith.mulf %253, %216 : vector<8x128xf32>
    %258 = arith.mulf %252, %256 : vector<8x128xf32>
    %259 = arith.addf %257, %258 : vector<8x128xf32>
    %260 = math.tanh %259 : vector<8x128xf32>
    %261 = arith.mulf %254, %260 : vector<8x128xf32>
    %262 = arith.truncf %261 : vector<8x128xf32> to vector<8x128xbf16>
    %263 = arith.truncf %240 : vector<8x128xf32> to vector<8x128xbf16>
    %264 = tpu.concatenate %262, %263 in 1 : vector<8x128xbf16>, vector<8x128xbf16> -> vector<8x256xbf16>
    %cst_55 = arith.constant dense<0.000000e+00> : vector<8x512xf32>
    %265 = tpu.matmul %264, %17, %cst_55 {dimension_numbers = #tpu.dot_dimension_numbers<[1], [0], [0], [1], [0, 0, 1, 1], [], []>} : vector<8x256xbf16>, vector<256x512xbf16>, vector<8x512xf32> -> vector<8x512xf32>
    %266 = vector.broadcast %18 : vector<1x512xf32> to vector<8x512xf32>
    %267 = arith.addf %265, %266 : vector<8x512xf32>
    %268 = vector.extract_strided_slice %267 {offsets = [0, 0], sizes = [8, 384], strides = [1, 1]} : vector<8x512xf32> to vector<8x384xf32>
    %269 = arith.negf %268 : vector<8x384xf32>
    %270 = math.exp %269 : vector<8x384xf32>
    %cst_56 = arith.constant 1.000000e+00 : f32
    %271 = vector.broadcast %cst_56 : f32 to vector<8x384xf32>
    %272 = arith.addf %271, %270 : vector<8x384xf32>
    %273 = arith.divf %271, %272 : vector<8x384xf32>
    %274 = vector.extract_strided_slice %273 {offsets = [0, 0], sizes = [8, 128], strides = [1, 1]} : vector<8x384xf32> to vector<8x128xf32>
    %275 = vector.extract_strided_slice %273 {offsets = [0, 128], sizes = [8, 128], strides = [1, 1]} : vector<8x384xf32> to vector<8x128xf32>
    %276 = vector.extract_strided_slice %273 {offsets = [0, 256], sizes = [8, 128], strides = [1, 1]} : vector<8x384xf32> to vector<8x128xf32>
    %277 = vector.extract_strided_slice %267 {offsets = [0, 384], sizes = [8, 128], strides = [1, 1]} : vector<8x512xf32> to vector<8x128xf32>
    %278 = math.tanh %277 : vector<8x128xf32>
    %279 = arith.mulf %275, %238 : vector<8x128xf32>
    %280 = arith.mulf %274, %278 : vector<8x128xf32>
    %281 = arith.addf %279, %280 : vector<8x128xf32>
    %282 = math.tanh %281 : vector<8x128xf32>
    %283 = arith.mulf %276, %282 : vector<8x128xf32>
    %c40 = arith.constant 40 : index
    %c0_57 = arith.constant 0 : index
    %284 = vector.load %arg14[%c40, %c0_57] : memref<64x128xf32, #tpu.memory_space<vmem>>, vector<8x128xf32>
    tpu.vector_store %arg14[%c40, %c0_57], %283 {strides = array<i32>} : memref<64x128xf32, #tpu.memory_space<vmem>>, vector<8x128xf32>,
    %285 = vector.extract_strided_slice %15 {offsets = [48, 0], sizes = [8, 512], strides = [1, 1]} : vector<64x512xf32> to vector<8x512xf32>
    %286 = arith.truncf %261 : vector<8x128xf32> to vector<8x128xbf16>
    %cst_58 = arith.constant dense<0.000000e+00> : vector<8x512xf32>
    %287 = tpu.matmul %286, %16, %cst_58 {dimension_numbers = #tpu.dot_dimension_numbers<[1], [0], [0], [1], [0, 0, 1, 1], [], []>} : vector<8x128xbf16>, vector<128x512xbf16>, vector<8x512xf32> -> vector<8x512xf32>
    %288 = arith.addf %285, %287 : vector<8x512xf32>
    %289 = vector.extract_strided_slice %288 {offsets = [0, 0], sizes = [8, 384], strides = [1, 1]} : vector<8x512xf32> to vector<8x384xf32>
    %290 = arith.negf %289 : vector<8x384xf32>
    %291 = math.exp %290 : vector<8x384xf32>
    %cst_59 = arith.constant 1.000000e+00 : f32
    %292 = vector.broadcast %cst_59 : f32 to vector<8x384xf32>
    %293 = arith.addf %292, %291 : vector<8x384xf32>
    %294 = arith.divf %292, %293 : vector<8x384xf32>
    %295 = vector.extract_strided_slice %294 {offsets = [0, 0], sizes = [8, 128], strides = [1, 1]} : vector<8x384xf32> to vector<8x128xf32>
    %296 = vector.extract_strided_slice %294 {offsets = [0, 128], sizes = [8, 128], strides = [1, 1]} : vector<8x384xf32> to vector<8x128xf32>
    %297 = vector.extract_strided_slice %294 {offsets = [0, 256], sizes = [8, 128], strides = [1, 1]} : vector<8x384xf32> to vector<8x128xf32>
    %298 = vector.extract_strided_slice %288 {offsets = [0, 384], sizes = [8, 128], strides = [1, 1]} : vector<8x512xf32> to vector<8x128xf32>
    %299 = math.tanh %298 : vector<8x128xf32>
    %300 = arith.mulf %296, %259 : vector<8x128xf32>
    %301 = arith.mulf %295, %299 : vector<8x128xf32>
    %302 = arith.addf %300, %301 : vector<8x128xf32>
    %303 = math.tanh %302 : vector<8x128xf32>
    %304 = arith.mulf %297, %303 : vector<8x128xf32>
    %305 = arith.truncf %304 : vector<8x128xf32> to vector<8x128xbf16>
    %306 = arith.truncf %283 : vector<8x128xf32> to vector<8x128xbf16>
    %307 = tpu.concatenate %305, %306 in 1 : vector<8x128xbf16>, vector<8x128xbf16> -> vector<8x256xbf16>
    %cst_60 = arith.constant dense<0.000000e+00> : vector<8x512xf32>
    %308 = tpu.matmul %307, %17, %cst_60 {dimension_numbers = #tpu.dot_dimension_numbers<[1], [0], [0], [1], [0, 0, 1, 1], [], []>} : vector<8x256xbf16>, vector<256x512xbf16>, vector<8x512xf32> -> vector<8x512xf32>
    %309 = vector.broadcast %18 : vector<1x512xf32> to vector<8x512xf32>
    %310 = arith.addf %308, %309 : vector<8x512xf32>
    %311 = vector.extract_strided_slice %310 {offsets = [0, 0], sizes = [8, 384], strides = [1, 1]} : vector<8x512xf32> to vector<8x384xf32>
    %312 = arith.negf %311 : vector<8x384xf32>
    %313 = math.exp %312 : vector<8x384xf32>
    %cst_61 = arith.constant 1.000000e+00 : f32
    %314 = vector.broadcast %cst_61 : f32 to vector<8x384xf32>
    %315 = arith.addf %314, %313 : vector<8x384xf32>
    %316 = arith.divf %314, %315 : vector<8x384xf32>
    %317 = vector.extract_strided_slice %316 {offsets = [0, 0], sizes = [8, 128], strides = [1, 1]} : vector<8x384xf32> to vector<8x128xf32>
    %318 = vector.extract_strided_slice %316 {offsets = [0, 128], sizes = [8, 128], strides = [1, 1]} : vector<8x384xf32> to vector<8x128xf32>
    %319 = vector.extract_strided_slice %316 {offsets = [0, 256], sizes = [8, 128], strides = [1, 1]} : vector<8x384xf32> to vector<8x128xf32>
    %320 = vector.extract_strided_slice %310 {offsets = [0, 384], sizes = [8, 128], strides = [1, 1]} : vector<8x512xf32> to vector<8x128xf32>
    %321 = math.tanh %320 : vector<8x128xf32>
    %322 = arith.mulf %318, %281 : vector<8x128xf32>
    %323 = arith.mulf %317, %321 : vector<8x128xf32>
    %324 = arith.addf %322, %323 : vector<8x128xf32>
    %325 = math.tanh %324 : vector<8x128xf32>
    %326 = arith.mulf %319, %325 : vector<8x128xf32>
    %c48 = arith.constant 48 : index
    %c0_62 = arith.constant 0 : index
    %327 = vector.load %arg14[%c48, %c0_62] : memref<64x128xf32, #tpu.memory_space<vmem>>, vector<8x128xf32>
    tpu.vector_store %arg14[%c48, %c0_62], %326 {strides = array<i32>} : memref<64x128xf32, #tpu.memory_space<vmem>>, vector<8x128xf32>,
    %328 = vector.extract_strided_slice %15 {offsets = [56, 0], sizes = [8, 512], strides = [1, 1]} : vector<64x512xf32> to vector<8x512xf32>
    %329 = arith.truncf %304 : vector<8x128xf32> to vector<8x128xbf16>
    %cst_63 = arith.constant dense<0.000000e+00> : vector<8x512xf32>
    %330 = tpu.matmul %329, %16, %cst_63 {dimension_numbers = #tpu.dot_dimension_numbers<[1], [0], [0], [1], [0, 0, 1, 1], [], []>} : vector<8x128xbf16>, vector<128x512xbf16>, vector<8x512xf32> -> vector<8x512xf32>
    %331 = arith.addf %328, %330 : vector<8x512xf32>
    %332 = vector.extract_strided_slice %331 {offsets = [0, 0], sizes = [8, 384], strides = [1, 1]} : vector<8x512xf32> to vector<8x384xf32>
    %333 = arith.negf %332 : vector<8x384xf32>
    %334 = math.exp %333 : vector<8x384xf32>
    %cst_64 = arith.constant 1.000000e+00 : f32
    %335 = vector.broadcast %cst_64 : f32 to vector<8x384xf32>
    %336 = arith.addf %335, %334 : vector<8x384xf32>
    %337 = arith.divf %335, %336 : vector<8x384xf32>
    %338 = vector.extract_strided_slice %337 {offsets = [0, 0], sizes = [8, 128], strides = [1, 1]} : vector<8x384xf32> to vector<8x128xf32>
    %339 = vector.extract_strided_slice %337 {offsets = [0, 128], sizes = [8, 128], strides = [1, 1]} : vector<8x384xf32> to vector<8x128xf32>
    %340 = vector.extract_strided_slice %337 {offsets = [0, 256], sizes = [8, 128], strides = [1, 1]} : vector<8x384xf32> to vector<8x128xf32>
    %341 = vector.extract_strided_slice %331 {offsets = [0, 384], sizes = [8, 128], strides = [1, 1]} : vector<8x512xf32> to vector<8x128xf32>
    %342 = math.tanh %341 : vector<8x128xf32>
    %343 = arith.mulf %339, %302 : vector<8x128xf32>
    %344 = arith.mulf %338, %342 : vector<8x128xf32>
    %345 = arith.addf %343, %344 : vector<8x128xf32>
    %346 = math.tanh %345 : vector<8x128xf32>
    %347 = arith.mulf %340, %346 : vector<8x128xf32>
    %348 = arith.truncf %347 : vector<8x128xf32> to vector<8x128xbf16>
    %349 = arith.truncf %326 : vector<8x128xf32> to vector<8x128xbf16>
    %350 = tpu.concatenate %348, %349 in 1 : vector<8x128xbf16>, vector<8x128xbf16> -> vector<8x256xbf16>
    %cst_65 = arith.constant dense<0.000000e+00> : vector<8x512xf32>
    %351 = tpu.matmul %350, %17, %cst_65 {dimension_numbers = #tpu.dot_dimension_numbers<[1], [0], [0], [1], [0, 0, 1, 1], [], []>} : vector<8x256xbf16>, vector<256x512xbf16>, vector<8x512xf32> -> vector<8x512xf32>
    %352 = vector.broadcast %18 : vector<1x512xf32> to vector<8x512xf32>
    %353 = arith.addf %351, %352 : vector<8x512xf32>
    %354 = vector.extract_strided_slice %353 {offsets = [0, 0], sizes = [8, 384], strides = [1, 1]} : vector<8x512xf32> to vector<8x384xf32>
    %355 = arith.negf %354 : vector<8x384xf32>
    %356 = math.exp %355 : vector<8x384xf32>
    %cst_66 = arith.constant 1.000000e+00 : f32
    %357 = vector.broadcast %cst_66 : f32 to vector<8x384xf32>
    %358 = arith.addf %357, %356 : vector<8x384xf32>
    %359 = arith.divf %357, %358 : vector<8x384xf32>
    %360 = vector.extract_strided_slice %359 {offsets = [0, 0], sizes = [8, 128], strides = [1, 1]} : vector<8x384xf32> to vector<8x128xf32>
    %361 = vector.extract_strided_slice %359 {offsets = [0, 128], sizes = [8, 128], strides = [1, 1]} : vector<8x384xf32> to vector<8x128xf32>
    %362 = vector.extract_strided_slice %359 {offsets = [0, 256], sizes = [8, 128], strides = [1, 1]} : vector<8x384xf32> to vector<8x128xf32>
    %363 = vector.extract_strided_slice %353 {offsets = [0, 384], sizes = [8, 128], strides = [1, 1]} : vector<8x512xf32> to vector<8x128xf32>
    %364 = math.tanh %363 : vector<8x128xf32>
    %365 = arith.mulf %361, %324 : vector<8x128xf32>
    %366 = arith.mulf %360, %364 : vector<8x128xf32>
    %367 = arith.addf %365, %366 : vector<8x128xf32>
    %368 = math.tanh %367 : vector<8x128xf32>
    %369 = arith.mulf %362, %368 : vector<8x128xf32>
    %c56 = arith.constant 56 : index
    %c0_67 = arith.constant 0 : index
    %370 = vector.load %arg14[%c56, %c0_67] : memref<64x128xf32, #tpu.memory_space<vmem>>, vector<8x128xf32>
    tpu.vector_store %arg14[%c56, %c0_67], %369 {strides = array<i32>} : memref<64x128xf32, #tpu.memory_space<vmem>>, vector<8x128xf32>,
    %c0_68 = arith.constant 0 : index
    %c0_69 = arith.constant 0 : index
    %c0_70 = arith.constant 0 : index
    %371 = vector.load %arg12[%c0_68, %c0_69, %c0_70] : memref<2x8x128xf32, #tpu.memory_space<vmem>>, vector<1x8x128xf32>
    %372 = vector.shape_cast %371 : vector<1x8x128xf32> to vector<8x128xf32>
    %373 = vector.shape_cast %347 : vector<8x128xf32> to vector<1x8x128xf32>
    tpu.vector_store %arg12[%c0_68, %c0_69, %c0_70], %373 {strides = array<i32>} : memref<2x8x128xf32, #tpu.memory_space<vmem>>, vector<1x8x128xf32>,
    %c0_71 = arith.constant 0 : index
    %c0_72 = arith.constant 0 : index
    %c0_73 = arith.constant 0 : index
    %374 = vector.load %arg13[%c0_71, %c0_72, %c0_73] : memref<2x8x128xf32, #tpu.memory_space<vmem>>, vector<1x8x128xf32>
    %375 = vector.shape_cast %374 : vector<1x8x128xf32> to vector<8x128xf32>
    %376 = vector.shape_cast %345 : vector<8x128xf32> to vector<1x8x128xf32>
    tpu.vector_store %arg13[%c0_71, %c0_72, %c0_73], %376 {strides = array<i32>} : memref<2x8x128xf32, #tpu.memory_space<vmem>>, vector<1x8x128xf32>,
    %c1_74 = arith.constant 1 : index
    %c0_75 = arith.constant 0 : index
    %c0_76 = arith.constant 0 : index
    %377 = vector.load %arg12[%c1_74, %c0_75, %c0_76] : memref<2x8x128xf32, #tpu.memory_space<vmem>>, vector<1x8x128xf32>
    %378 = vector.shape_cast %377 : vector<1x8x128xf32> to vector<8x128xf32>
    %379 = vector.shape_cast %369 : vector<8x128xf32> to vector<1x8x128xf32>
    tpu.vector_store %arg12[%c1_74, %c0_75, %c0_76], %379 {strides = array<i32>} : memref<2x8x128xf32, #tpu.memory_space<vmem>>, vector<1x8x128xf32>,
    %c1_77 = arith.constant 1 : index
    %c0_78 = arith.constant 0 : index
    %c0_79 = arith.constant 0 : index
    %380 = vector.load %arg13[%c1_77, %c0_78, %c0_79] : memref<2x8x128xf32, #tpu.memory_space<vmem>>, vector<1x8x128xf32>
    %381 = vector.shape_cast %380 : vector<1x8x128xf32> to vector<8x128xf32>
    %382 = vector.shape_cast %367 : vector<8x128xf32> to vector<1x8x128xf32>
    tpu.vector_store %arg13[%c1_77, %c0_78, %c0_79], %382 {strides = array<i32>} : memref<2x8x128xf32, #tpu.memory_space<vmem>>, vector<1x8x128xf32>,
    %c0_80 = arith.constant 0 : index
    %c0_81 = arith.constant 0 : index
    %383 = vector.load %arg14[%c0_80, %c0_81] : memref<64x128xf32, #tpu.memory_space<vmem>>, vector<64x128xf32>
    %384 = arith.truncf %383 : vector<64x128xf32> to vector<64x128xbf16>
    %c0_82 = arith.constant 0 : index
    %c0_83 = arith.constant 0 : index
    %385 = vector.load %arg7[%c0_82, %c0_83] : memref<128x256xbf16, #tpu.memory_space<vmem>>, vector<128x256xbf16>
    %cst_84 = arith.constant dense<0.000000e+00> : vector<64x256xf32>
    %386 = tpu.matmul %384, %385, %cst_84 {dimension_numbers = #tpu.dot_dimension_numbers<[1], [0], [0], [1], [0, 0, 1, 1], [], []>} : vector<64x128xbf16>, vector<128x256xbf16>, vector<64x256xf32> -> vector<64x256xf32>
    %c0_85 = arith.constant 0 : index
    %c0_86 = arith.constant 0 : index
    %387 = vector.load %arg8[%c0_85, %c0_86] : memref<1x256xf32, #tpu.memory_space<vmem>>, vector<1x256xf32>
    %388 = vector.broadcast %387 : vector<1x256xf32> to vector<64x256xf32>
    %389 = arith.addf %386, %388 : vector<64x256xf32>
    %c0_87 = arith.constant 0 : index
    %c0_88 = arith.constant 0 : index
    %390 = vector.load %arg11[%c0_87, %c0_88] : memref<64x256xf32, #tpu.memory_space<vmem>>, vector<64x256xf32>
    tpu.vector_store %arg11[%c0_87, %c0_88], %389 {strides = array<i32>} : memref<64x256xf32, #tpu.memory_space<vmem>>, vector<64x256xf32>,
    return
  }
}

</mosaic_0001>

<bundles_post_ra>
// kernel: tpu_custom_call.1
= control target key start
LH: loop header
LB: loop body
LE: loop exit
PB: predicated region body
PF: predicated region fallthrough
CT: control target
= control target key end

     0   :  { %19 = vsyncpa [#allocation4], 0  ;;  %s6911_s0 = inlined_call_operand.vmem [shape: s32[64,1], index: 0, kind: input, shape index: {}]   ;;  %s6912_s1 = inlined_call_operand.hbm [shape: bf16[256,128], index: 1, kind: input, shape index: {}]   ;;  %s6913_s2 = inlined_call_operand.hbm [shape: bf16[128,512], index: 2, kind: input, shape index: {}]   ;;  %s6914_s3 = inlined_call_operand.hbm [shape: bf16[128,512], index: 3, kind: input, shape index: {}]   ;;  %s6915_s4 = inlined_call_operand.vmem [shape: f32[1,512], index: 4, kind: input, shape index: {}]   ;;  %s6916_s5 = inlined_call_operand.hbm [shape: bf16[256,512], index: 5, kind: input, shape index: {}]   ;;  %s6917_s6 = inlined_call_operand.vmem [shape: f32[1,512], index: 6, kind: input, shape index: {}]   ;;  %s6918_s7 = inlined_call_operand.hbm [shape: bf16[128,256], index: 7, kind: input, shape index: {}]   ;;  %s6919_s8 = inlined_call_operand.vmem [shape: f32[1,256], index: 8, kind: input, shape index: {}]   ;;  %s6920_s9 = inlined_call_operand.vmem [shape: f32[2,8,128], index: 9, kind: input, shape index: {}]   ;;  %s6921_s10 = inlined_call_operand.vmem [shape: f32[2,8,128], index: 10, kind: input, shape index: {}]   ;;  %s6922_s11 = inlined_call_operand.hbm [shape: f32[64,256], index: 11, kind: output, shape index: {0}]   ;;  %s6923_s12 = inlined_call_operand.hbm [shape: f32[2,8,128], index: 12, kind: output, shape index: {1}]   ;;  %s6924_s13 = inlined_call_operand.hbm [shape: f32[2,8,128], index: 13, kind: output, shape index: {2}]  }
   0x1   :  { %20 = vsyncpa [#allocation7], 0 }
   0x2   :  { %21 = vsyncpa [#allocation10], 0 }
   0x3   :  { %22 = vsyncpa [#allocation5], 0  ;;  %s43_s27 = sshll.u32 %s6913_s2, 4  ;;  %s44_s27 = int_to_ptr.hbm [resolvable:$true] %s43_s27 }
   0x4   :  { %23 = vsyncpa [#allocation14], 0  ;;  %s5218_s28 = smov [#allocation6]   ;;  %s71_s15 = sshll.u32 %s6916_s5, 4  ;;  %s72_s15 = int_to_ptr.hbm [resolvable:$true] %s71_s15 }
   0x5   :  { %s45_s29 = sshll.u32 %s5218_s28, 4  ;;  %s5219_s16 = smov 256   ;;  %s46_s29 = int_to_ptr.vmem [resolvable:$true] %s45_s29 }
   0x6   :  { %s5220_s17 = smov 16   ;;  %s5221_s18 = smov [#allocation9]  }
   0x7   :  { %51 = dma.hbm_to_vmem [thread:$0]  %s44_s27, 4096, %s46_s29, [#allocation7], %s5219_s16, %s5219_s16, %s5220_s17  }
   0x8   :  { %s73_s19 = sshll.u32 %s5221_s18, 4  ;;  %s30_s21 = sshll.u32 %s6912_s1, 4  ;;  %s74_s19 = int_to_ptr.vmem [resolvable:$true] %s73_s19  ;;  %s31_s21 = int_to_ptr.hbm [resolvable:$true] %s30_s21 }
   0x9   :  { %79 = dma.hbm_to_vmem [thread:$0]  %s72_s15, 8192, %s74_s19, [#allocation10], %s5219_s16, %s5219_s16, %s5220_s17  }
   0xa   :  { %s5222_s5 = smov [#allocation3]   ;;  %s56_s25 = sshll.u32 %s6914_s3, 4  ;;  %s57_s25 = int_to_ptr.hbm [resolvable:$true] %s56_s25 }
   0xb   :  { %s32_s22 = sshll.u32 %s5222_s5, 4  ;;  %s5223_s26 = smov 64   ;;  %s33_s22 = int_to_ptr.vmem [resolvable:$true] %s32_s22 }
   0xc   :  { %s5224_s27 = smov 4   ;;  %s5225_s28 = smov [#allocation8]  }
   0xd   :  { %38 = dma.hbm_to_vmem [thread:$0]  %s31_s21, 2048, %s33_s22, [#allocation4], %s5223_s26, %s5223_s26, %s5224_s27  }
   0xe   :  { %s58_s29 = sshll.u32 %s5225_s28, 4  ;;  %s86_s14 = sshll.u32 %s6918_s7, 4  ;;  %s59_s29 = int_to_ptr.vmem [resolvable:$true] %s58_s29  ;;  %s87_s14 = int_to_ptr.hbm [resolvable:$true] %s86_s14 }
   0xf   :  { %64 = dma.hbm_to_vmem [thread:$0]  %s57_s25, 4096, %s59_s29, [#allocation7], %s5219_s16, %s5219_s16, %s5220_s17  }
  0x10   :  { %s5226_s15 = smov [#allocation11]   ;;  %s5227_s3 = smov 128  }
  0x11   :  { %s88_s18 = sshll.u32 %s5226_s15, 4  ;;  %s5228_s19 = smov 8   ;;  %s89_s18 = int_to_ptr.vmem [resolvable:$true] %s88_s18 }
  0x12   :  { %94 = dma.hbm_to_vmem [thread:$0]  %s87_s14, 2048, %s89_s18, [#allocation10], %s5227_s3, %s5227_s3, %s5228_s19  }
  0x13   :  { %5208 = dma.done.wait [#allocation4], 2048  }
  0x14   :  { %5209 = vsyncadd [#allocation4], 4294965248 }
  0x15   :  { %5210 = dma.done.wait [#allocation7], 8192  }
  0x16   :  { %5211 = vsyncadd [#allocation7], 4294959104 }
  0x17   :  { %5212 = dma.done.wait [#allocation10], 10240  }
  0x18   :  { %5213 = vsyncadd [#allocation10], 4294957056  ;;  %v5229_v0 = vmov 0   ;;  %v123_v1 = vld [vmem:[%s6911_s0 + $0x10] sm:$0xff]  ;;  %v121_v2 = vld [vmem:[%s6911_s0] sm:$0xff]  ;;  %v129_v25 = vlaneseq  ;;  %s3822_s27 = sshll.u32 %s6923_s12, 4  ;;  %s3823_s27 = int_to_ptr.hbm [resolvable:$true] %s3822_s27 }
  0x19   :  { %4758 = vset.pattern.permute.xlu1 %v5229_v0  ;;  %4757 = vset.pattern.permute.xlu0 %v5229_v0  ;;  %v125_v3 = vld [vmem:[%s6911_s0 + $0x20] sm:$0xff]  ;;  %v4572_v4 = vld [vmem:[#allocation3 + $0x38] sm:$0xff]  ;;  %v4571_v6 = vld [vmem:[#allocation3 + $0x30] sm:$0xff]  ;;  %v5230_v30 = vmov 1.0|1.0   ;;  %s5232_s28 = smov [#allocation15]  }
  0x1a   :  { %4759 = vset.pattern.permute.xlu2 %v5229_v0  ;;  %139 = vperm.xlu1 %4758, %v123_v1   ;;  %v4580_v5 = vld [vmem:[#allocation3 + $0x78] sm:$0xff]  ;;  %v122_v8 = vld [vmem:[%s6911_s0 + $0x8] sm:$0xff]  ;;  %v4579_v9 = vld [vmem:[#allocation3 + $0x70] sm:$0xff]  ;;  %v5355_v26 = vand.u32 127, %v129_v25  ;;  %s3833_s29 = sshll.u32 %s5232_s28, 4  ;;  %s3835_s14 = sshll.u32 %s6924_s13, 4  ;;  %s3834_s29 = int_to_ptr.vmem [resolvable:$true] %s3833_s29  ;;  %s3836_s14 = int_to_ptr.hbm [resolvable:$true] %s3835_s14 }
  0x1b   :  { %133 = vperm.xlu0 %4757, %v121_v2   ;;  %145 = vperm.xlu2 %4759, %v125_v3   ;;  %v124_v7 = vld [vmem:[%s6911_s0 + $0x18] sm:$0xff]  ;;  %v126_v10 = vld [vmem:[%s6911_s0 + $0x28] sm:$0xff]  ;;  %v4569_v13 = vld [vmem:[#allocation3 + $0x20] sm:$0xff]  ;;  %s5233_s12 = smov [#allocation12]   ;;  %s3809_s18 = sshll.u32 %s6922_s11, 4  ;;  %s3810_s18 = int_to_ptr.hbm [resolvable:$true] %s3809_s18 }
  0x1c   :  { %4725 = vmatpush.bf16.msra.mxu2 %v4572_v4  ;;  %324 = vmatpush.bf16.msra.mxu0 %v4572_v4  ;;  %v4570_v11 = vld [vmem:[#allocation3 + $0x28] sm:$0xff]  ;;  %v128_v14 = vld [vmem:[%s6911_s0 + $0x38] sm:$0xff]  ;;  %v127_v15 = vld [vmem:[%s6911_s0 + $0x30] sm:$0xff]  ;;  %v5358_v28 = vadd.s32 128, %v5355_v26  ;;  %s3807_s13 = sshll.u32 %s5233_s12, 4  ;;  %s3808_s13 = int_to_ptr.vmem [resolvable:$true] %s3807_s13 }
  0x1d   :  { %4733 = vmatpush.bf16.msra.mxu3 %v4580_v5  ;;  %353 = vmatpush.bf16.msra.mxu1 %v4580_v5  ;;  %v4578_v12 = vld [vmem:[#allocation3 + $0x68] sm:$0xff]  ;;  %v4577_v16 = vld [vmem:[#allocation3 + $0x60] sm:$0xff]  ;;  %v4568_v17 = vld [vmem:[#allocation3 + $0x18] sm:$0xff] }
  0x1e   :  { %v4576_v18 = vld [vmem:[#allocation3 + $0x58] sm:$0xff]  ;;  %v4567_v19 = vld [vmem:[#allocation3 + $0x10] sm:$0xff]  ;;  %v4566_v21 = vld [vmem:[#allocation3 + $0x8] sm:$0xff] }
  0x1f   :  { %v4575_v20 = vld [vmem:[#allocation3 + $0x50] sm:$0xff]  ;;  %v4574_v22 = vld [vmem:[#allocation3 + $0x48] sm:$0xff]  ;;  %v4565_v23 = vld [vmem:[#allocation3] sm:$0xff] }
  0x20   :  { %4726 = vmatpush.bf16.msra.mxu2 %v4571_v6  ;;  %325 = vmatpush.bf16.msra.mxu0 %v4571_v6  ;;  %v4573_v24 = vld [vmem:[#allocation3 + $0x40] sm:$0xff]  ;;  %v4611_v32 = vld [vmem:[#allocation6 + $0xec] sm:$0xf0]  ;;  %v4055_v35 = vld [vmem:[#allocation6 + $0xf0] sm:$0xf0] }
  0x21   :  { %4734 = vmatpush.bf16.msra.mxu3 %v4579_v9  ;;  %354 = vmatpush.bf16.msra.mxu1 %v4579_v9  ;;  %v4053_v31 = vld [vmem:[#allocation6 + $0xe0] sm:$0xf]  ;;  %v4609_v33 = vld [vmem:[#allocation6 + $0xe4] sm:$0xf]  ;;  %v4061_v36 = vld [vmem:[#allocation6 + $0xe8] sm:$0xf] }
  0x22   :  { %142 = vperm.xlu1 %4758, %v124_v7   ;;  %v4054_v34 = vor.u32 %v4611_v32, %v4053_v31  ;;  %v4612_v37 = vld [vmem:[#allocation6 + $0xf4] sm:$0xf0]  ;;  %v4058_v38 = vor.u32 %v4609_v33, %v4055_v35  ;;  %v4610_v40 = vld [vmem:[#allocation6 + $0xec] sm:$0xf]  ;;  %v4063_v41 = vld [vmem:[#allocation6 + $0xf8] sm:$0xf0] }
  0x23   :  { %136 = vperm.xlu0 %4757, %v122_v8   ;;  %148 = vperm.xlu2 %4759, %v126_v10   ;;  %v4062_v39 = vor.u32 %v4612_v37, %v4061_v36  ;;  %v4037_v42 = vld [vmem:[#allocation6 + $0xc0] sm:$0xf]  ;;  %v4066_v43 = vor.u32 %v4610_v40, %v4063_v41  ;;  %v4607_v44 = vld [vmem:[#allocation6 + $0xcc] sm:$0xf0]  ;;  %v4605_v45 = vld [vmem:[#allocation6 + $0xc4] sm:$0xf] }
  0x24   :  { %4727 = vmatpush.bf16.msra.mxu2 %v4570_v11  ;;  %326 = vmatpush.bf16.msra.mxu0 %v4570_v11  ;;  %v4039_v46 = vld [vmem:[#allocation6 + $0xd0] sm:$0xf0]  ;;  %v4038_v49 = vor.u32 %v4607_v44, %v4037_v42  ;;  %v4045_v51 = vld [vmem:[#allocation6 + $0xc8] sm:$0xf]  ;;  %v4608_v52 = vld [vmem:[#allocation6 + $0xd4] sm:$0xf0] }
  0x25   :  { %4735 = vmatpush.bf16.msra.mxu3 %v4578_v12  ;;  %355 = vmatpush.bf16.msra.mxu1 %v4578_v12  ;;  %v4042_v50 = vor.u32 %v4605_v45, %v4039_v46  ;;  %v4606_v53 = vld [vmem:[#allocation6 + $0xcc] sm:$0xf]  ;;  %v4047_v54 = vld [vmem:[#allocation6 + $0xd8] sm:$0xf0]  ;;  %v4021_v55 = vld [vmem:[#allocation6 + $0xa0] sm:$0xf]  ;;  %v4046_v57 = vor.u32 %v4608_v52, %v4045_v51 }
  0x26   :  { %v4603_v56 = vld [vmem:[#allocation6 + $0xac] sm:$0xf0]  ;;  %v4050_v58 = vor.u32 %v4606_v53, %v4047_v54  ;;  %v4601_v59 = vld [vmem:[#allocation6 + $0xa4] sm:$0xf]  ;;  %v4023_v60 = vld [vmem:[#allocation6 + $0xb0] sm:$0xf0] }
  0x27   :  { %v4029_v61 = vld [vmem:[#allocation6 + $0xa8] sm:$0xf]  ;;  %v4022_v62 = vor.u32 %v4603_v56, %v4021_v55  ;;  %v4604_v63 = vld [vmem:[#allocation6 + $0xb4] sm:$0xf0]  ;;  %v4602_v0 = vld [vmem:[#allocation6 + $0xac] sm:$0xf]  ;;  %v4026_v2 = vor.u32 %v4601_v59, %v4023_v60 }
  0x28   :  { %4728 = vmatpush.bf16.msra.mxu2 %v4569_v13  ;;  %327 = vmatpush.bf16.msra.mxu0 %v4569_v13  ;;  %v4031_v1 = vld [vmem:[#allocation6 + $0xb8] sm:$0xf0]  ;;  %v4030_v3 = vor.u32 %v4604_v63, %v4029_v61  ;;  %v4005_v4 = vld [vmem:[#allocation6 + $0x80] sm:$0xf]  ;;  %v4599_v5 = vld [vmem:[#allocation6 + $0x8c] sm:$0xf0] }
  0x29   :  { %4736 = vmatpush.bf16.msra.mxu3 %v4577_v16  ;;  %356 = vmatpush.bf16.msra.mxu1 %v4577_v16  ;;  %v4034_v6 = vor.u32 %v4602_v0, %v4031_v1  ;;  %v4597_v7 = vld [vmem:[#allocation6 + $0x84] sm:$0xf]  ;;  %v4007_v8 = vld [vmem:[#allocation6 + $0x90] sm:$0xf0]  ;;  %v4013_v9 = vld [vmem:[#allocation6 + $0x88] sm:$0xf]  ;;  %v4006_v13 = vor.u32 %v4599_v5, %v4005_v4 }
  0x2a   :  { %154 = vperm.xlu1 %4758, %v128_v14   ;;  %v4600_v10 = vld [vmem:[#allocation6 + $0x94] sm:$0xf0]  ;;  %v4598_v11 = vld [vmem:[#allocation6 + $0x8c] sm:$0xf]  ;;  %v4015_v12 = vld [vmem:[#allocation6 + $0x98] sm:$0xf0]  ;;  %v4010_v16 = vor.u32 %v4597_v7, %v4007_v8 }
  0x2b   :  { %151 = vperm.xlu0 %4757, %v127_v15   ;;  %v3991_v25 = vld [vmem:[#allocation6 + $0x70] sm:$0xf0]  ;;  %v4596_v31 = vld [vmem:[#allocation6 + $0x74] sm:$0xf0]  ;;  %v4594_v32 = vld [vmem:[#allocation6 + $0x6c] sm:$0xf] }
  0x2c   :  { %4729 = vmatpush.bf16.msra.mxu2 %v4568_v17  ;;  %328 = vmatpush.bf16.msra.mxu0 %v4568_v17  ;;  %v3989_v17 = vld [vmem:[#allocation6 + $0x60] sm:$0xf]  ;;  %v3999_v33 = vld [vmem:[#allocation6 + $0x78] sm:$0xf0]  ;;  %v4589_v36 = vld [vmem:[#allocation6 + $0x44] sm:$0xf] }
  0x2d   :  { %4737 = vmatpush.bf16.msra.mxu3 %v4576_v18  ;;  %357 = vmatpush.bf16.msra.mxu1 %v4576_v18  ;;  %v4595_v18 = vld [vmem:[#allocation6 + $0x6c] sm:$0xf0]  ;;  %v3973_v35 = vld [vmem:[#allocation6 + $0x40] sm:$0xf]  ;;  %v4592_v40 = vld [vmem:[#allocation6 + $0x54] sm:$0xf0] }
  0x2e   :  { %v4590_v42 = vld [vmem:[#allocation6 + $0x4c] sm:$0xf]  ;;  %v3957_v44 = vld [vmem:[#allocation6 + $0x20] sm:$0xf]  ;;  %v4587_v46 = vld [vmem:[#allocation6 + $0x2c] sm:$0xf0] }
  0x2f   :  { %v3965_v51 = vld [vmem:[#allocation6 + $0x28] sm:$0xf]  ;;  %v4588_v52 = vld [vmem:[#allocation6 + $0x34] sm:$0xf0]  ;;  %v4586_v53 = vld [vmem:[#allocation6 + $0x2c] sm:$0xf] }
  0x30   :  { %4730 = vmatpush.bf16.msra.mxu2 %v4567_v19  ;;  %329 = vmatpush.bf16.msra.mxu0 %v4567_v19  ;;  %v4014_v19 = vor.u32 %v4600_v10, %v4013_v9  ;;  %v3966_v54 = vor.u32 %v4588_v52, %v3965_v51  ;;  %v3967_v55 = vld [vmem:[#allocation6 + $0x38] sm:$0xf0]  ;;  %v4581_v59 = vld [vmem:[#allocation6 + $0x4] sm:$0xf]  ;;  %v3943_v61 = vld [vmem:[#allocation6 + $0x10] sm:$0xf0] }
  0x31   :  { %4738 = vmatpush.bf16.msra.mxu3 %v4575_v20  ;;  %358 = vmatpush.bf16.msra.mxu1 %v4575_v20  ;;  %v4018_v20 = vor.u32 %v4598_v11, %v4015_v12  ;;  %v3970_v56 = vor.u32 %v4586_v53, %v3967_v55  ;;  %v4584_v63 = vld [vmem:[#allocation6 + $0x14] sm:$0xf0]  ;;  %v3946_v0 = vor.u32 %v4581_v59, %v3943_v61  ;;  %v4183_v5 = vld [vmem:[#allocation8 + $0xe0] sm:$0xf]  ;;  %v4641_v8 = vld [vmem:[#allocation8 + $0xe4] sm:$0xf] }
  0x32   :  { %v4185_v9 = vld [vmem:[#allocation8 + $0xf0] sm:$0xf0]  ;;  %v4167_v10 = vld [vmem:[#allocation8 + $0xc0] sm:$0xf]  ;;  %v4639_v12 = vld [vmem:[#allocation8 + $0xcc] sm:$0xf0] }
  0x33   :  { %v5391_v11 = vor.u32 %v4641_v8, %v4185_v9  ;;  %v4619_v51 = vld [vmem:[#allocation8 + $0x2c] sm:$0xf0]  ;;  %v4617_v52 = vld [vmem:[#allocation8 + $0x24] sm:$0xf]  ;;  %v4089_v53 = vld [vmem:[#allocation8 + $0x30] sm:$0xf0] }
  0x34   :  { %4731 = vmatpush.bf16.msra.mxu2 %v4566_v21  ;;  %330 = vmatpush.bf16.msra.mxu0 %v4566_v21  ;;  %v3990_v21 = vor.u32 %v4595_v18, %v3989_v17  ;;  %v4151_v17 = vld [vmem:[#allocation8 + $0xa0] sm:$0xf]  ;;  %v4635_v18 = vld [vmem:[#allocation8 + $0xac] sm:$0xf0]  ;;  %v4642_v9 = vld [vmem:[#allocation8 + $0xec] sm:$0xf] }
  0x35   :  { %4739 = vmatpush.bf16.msra.mxu3 %v4574_v22  ;;  %359 = vmatpush.bf16.msra.mxu1 %v4574_v22  ;;  %7130 = vst [vmem:[#allocation21_spill] sm:$0xff] %v5391_v11 }
  0x38   :  { %4732 = vmatpush.bf16.msra.mxu2 %v4565_v23  ;;  %331 = vmatpush.bf16.msra.mxu0 %v4565_v23 }
  0x39   :  { %4740 = vmatpush.bf16.msra.mxu3 %v4573_v24  ;;  %360 = vmatpush.bf16.msra.mxu1 %v4573_v24  ;;  %v4593_v24 = vld [vmem:[#allocation6 + $0x64] sm:$0xf] }
  0x3c   :  { %588 = vmatpush.bf16.msrb.mxu2 %v4054_v34  ;;  %646 = vmatpush.bf16.msrb.mxu0 %v4062_v39  ;;  %v3981_v39 = vld [vmem:[#allocation6 + $0x48] sm:$0xf] }
  0x3d   :  { %617 = vmatpush.bf16.msrb.mxu3 %v4058_v38  ;;  %675 = vmatpush.bf16.msrb.mxu1 %v4066_v43  ;;  %v3975_v38 = vld [vmem:[#allocation6 + $0x50] sm:$0xf0]  ;;  %v3982_v41 = vor.u32 %v4592_v40, %v3981_v39  ;;  %v3983_v43 = vld [vmem:[#allocation6 + $0x58] sm:$0xf0]  ;;  %v4625_v39 = vld [vmem:[#allocation8 + $0x64] sm:$0xf] }
  0x3e   :  { %v3986_v45 = vor.u32 %v4590_v42, %v3983_v43  ;;  %v4103_v42 = vld [vmem:[#allocation8 + $0x40] sm:$0xf]  ;;  %v4623_v43 = vld [vmem:[#allocation8 + $0x4c] sm:$0xf0] }
  0x40   :  { %589 = vmatpush.bf16.msrb.mxu2 %v4038_v49  ;;  %647 = vmatpush.bf16.msrb.mxu0 %v4046_v57  ;;  %v3958_v49 = vor.u32 %v4587_v46, %v3957_v44  ;;  %v3941_v57 = vld [vmem:[#allocation6] sm:$0xf]  ;;  %v4621_v46 = vld [vmem:[#allocation8 + $0x44] sm:$0xf] }
  0x41   :  { %618 = vmatpush.bf16.msrb.mxu3 %v4042_v50  ;;  %676 = vmatpush.bf16.msrb.mxu1 %v4050_v58  ;;  %v4583_v58 = vld [vmem:[#allocation6 + $0xc] sm:$0xf0] }
  0x42   :  { %v3942_v60 = vor.u32 %v4583_v58, %v3941_v57  ;;  %v5426_v57 = vor.u32 %v4617_v52, %v4089_v53  ;;  %v4129_v52 = vld [vmem:[#allocation8 + $0x78] sm:$0xf0]  ;;  %v4111_v53 = vld [vmem:[#allocation8 + $0x48] sm:$0xf] }
  0x44   :  { %590 = vmatpush.bf16.msrb.mxu2 %v4022_v62  ;;  %648 = vmatpush.bf16.msrb.mxu0 %v4030_v3  ;;  %v3949_v62 = vld [vmem:[#allocation6 + $0x8] sm:$0xf]  ;;  %v3951_v3 = vld [vmem:[#allocation6 + $0x18] sm:$0xf0]  ;;  %7141 = vst [vmem:[#allocation32_spill] sm:$0xff] %v5426_v57 }
  0x45   :  { %619 = vmatpush.bf16.msrb.mxu3 %v4026_v2  ;;  %677 = vmatpush.bf16.msrb.mxu1 %v4034_v6  ;;  %v3950_v1 = vor.u32 %v4584_v63, %v3949_v62  ;;  %v4582_v2 = vld [vmem:[#allocation6 + $0xc] sm:$0xf]  ;;  %v4643_v6 = vld [vmem:[#allocation8 + $0xec] sm:$0xf0]  ;;  %v4071_v63 = vld [vmem:[#allocation8] sm:$0xf] }
  0x46   :  { %v3954_v4 = vor.u32 %v4582_v2, %v3951_v3  ;;  %v5388_v7 = vor.u32 %v4643_v6, %v4183_v5  ;;  %v4073_v3 = vld [vmem:[#allocation8 + $0x10] sm:$0xf0]  ;;  %v4644_v5 = vld [vmem:[#allocation8 + $0xf4] sm:$0xf0] }
  0x48   :  { %591 = vmatpush.bf16.msrb.mxu2 %v4006_v13  ;;  %649 = vmatpush.bf16.msrb.mxu0 %v4014_v19  ;;  %v5393_v13 = vor.u32 %v4639_v12, %v4167_v10  ;;  %v4633_v19 = vld [vmem:[#allocation8 + $0xa4] sm:$0xf]  ;;  %v4193_v10 = vld [vmem:[#allocation8 + $0xf8] sm:$0xf0] }
  0x49   :  { %620 = vmatpush.bf16.msrb.mxu3 %v4010_v16  ;;  %678 = vmatpush.bf16.msrb.mxu1 %v4018_v20  ;;  %v5436_v12 = vor.u32 %v4642_v9, %v4193_v10  ;;  %v4079_v10 = vld [vmem:[#allocation8 + $0x8] sm:$0xf] }
  0x4b   :  { %7144 = vst [vmem:[#allocation35_spill] sm:$0xff] %v5436_v12 }
  0x4c   :  { %592 = vmatpush.bf16.msrb.mxu2 %v3990_v21  ;;  %v5400_v21 = vor.u32 %v4635_v18, %v4151_v17  ;;  %v4638_v17 = vld [vmem:[#allocation8 + $0xcc] sm:$0xf]  ;;  %v4177_v18 = vld [vmem:[#allocation8 + $0xd8] sm:$0xf0] }
  0x4e   :  { %7132 = vst [vmem:[#allocation23_spill] sm:$0xff] %v5400_v21 }
  0x75   :  { %v146_v27 = vpop.permute.xlu2 %145 }
  0x76   :  { %vm164_vm0 = vcmp.eq.s32.totalorder %v146_v27, %v5355_v26  ;;  %vm165_vm1 = vcmp.eq.s32.totalorder %v146_v27, %v5358_v28  ;;  %v3997_v27 = vld [vmem:[#allocation6 + $0x68] sm:$0xf] }
  0x77   :  { %v3998_v34 = vor.u32 %v4596_v31, %v3997_v27  ;;  %v4137_v31 = vld [vmem:[#allocation8 + $0x90] sm:$0xf0] }
  0x79   :  { %650 = vmatpush.bf16.msrb.mxu0 %v3998_v34 }
  0x7d   :  { %v149_v29 = vpop.permute.xlu2 %148  ;;  %651 = vmatpush.bf16.msrb.mxu0 %v3982_v41  ;;  %v4121_v41 = vld [vmem:[#allocation8 + $0x70] sm:$0xf0] }
  0x7e   :  { %vm166_vm2 = vcmp.eq.s32.totalorder %v149_v29, %v5355_v26  ;;  %vm167_vm3 = vcmp.eq.s32.totalorder %v149_v29, %v5358_v28  ;;  %v3994_v29 = vor.u32 %v4593_v24, %v3991_v25  ;;  %v4631_v24 = vld [vmem:[#allocation8 + $0x8c] sm:$0xf0] }
  0x7f   :  { %vm3927_vm4 = vmpackc.low %vm166_vm2, %vm164_vm0 }
  0x80   :  { %vm3935_vm5 = vmpackc.low %vm167_vm3, %vm165_vm1  ;;  %3928 = vmatmul.msk.bf16.vlgmr.msra.gmra.mxu2 %vm3927_vm4, %v5230_v30  ;;  %621 = vmatpush.bf16.msrb.mxu3 %v3994_v29  ;;  %v4629_v29 = vld [vmem:[#allocation8 + $0x84] sm:$0xf] }
  0x81   :  { %3936 = vmatmul.msk.bf16.vlgmr.msra.gmra.mxu3 %vm3935_vm5, %v5230_v30  ;;  %652 = vmatpush.bf16.msrb.mxu0 %v3966_v54 }
  0x85   :  { %653 = vmatpush.bf16.msrb.mxu0 %v3950_v1  ;;  %v4613_v1 = vld [vmem:[#allocation8 + $0x4] sm:$0xf] }
  0x86   :  { %v5432_v6 = vor.u32 %v4613_v1, %v4073_v3  ;;  %v4097_v1 = vld [vmem:[#allocation8 + $0x38] sm:$0xf0] }
  0x88   :  { %7143 = vst [vmem:[#allocation34_spill] sm:$0xff] %v5432_v6 }
  0x8c   :  { %v5366_v47 = vpop.permute.xlu1 %139 }
  0x8d   :  { %v134_v48 = vpop.permute.xlu0 %133  ;;  %vm160_vm2 = vcmp.eq.s32.totalorder %v5366_v47, %v5355_v26  ;;  %vm161_vm4 = vcmp.eq.s32.totalorder %v5366_v47, %v5358_v28  ;;  %v4585_v47 = vld [vmem:[#allocation6 + $0x24] sm:$0xf] }
  0x8e   :  { %vm156_vm6 = vcmp.eq.s32.totalorder %v134_v48, %v5355_v26  ;;  %vm157_vm9 = vcmp.eq.s32.totalorder %v134_v48, %v5358_v28  ;;  %v3959_v48 = vld [vmem:[#allocation6 + $0x30] sm:$0xf0] }
  0x8f   :  { %v3962_v50 = vor.u32 %v4585_v47, %v3959_v48  ;;  %v4105_v47 = vld [vmem:[#allocation8 + $0x50] sm:$0xf0]  ;;  %v5417_v48 = vor.u32 %v4623_v43, %v4103_v42 }
  0x91   :  { %7138 = vst [vmem:[#allocation29_spill] sm:$0xff] %v5417_v48 }
  0x94   :  { %v143_v14 = vpop.permute.xlu1 %142 }
  0x95   :  { %v137_v15 = vpop.permute.xlu0 %136  ;;  %vm162_vm3 = vcmp.eq.s32.totalorder %v143_v14, %v5355_v26  ;;  %vm163_vm5 = vcmp.eq.s32.totalorder %v143_v14, %v5358_v28  ;;  %v4637_v14 = vld [vmem:[#allocation8 + $0xc4] sm:$0xf] }
  0x96   :  { %vm158_vm7 = vcmp.eq.s32.totalorder %v137_v15, %v5355_v26  ;;  %vm159_vm8 = vcmp.eq.s32.totalorder %v137_v15, %v5358_v28  ;;  %v4169_v15 = vld [vmem:[#allocation8 + $0xd0] sm:$0xf0] }
  0x97   :  { %vm3923_vm10 = vmpackc.low %vm158_vm7, %vm156_vm6  ;;  %v5397_v16 = vor.u32 %v4637_v14, %v4169_v15  ;;  %v4175_v14 = vld [vmem:[#allocation8 + $0xc8] sm:$0xf]  ;;  %v4640_v15 = vld [vmem:[#allocation8 + $0xd4] sm:$0xf0] }
  0x98   :  { %3924 = vmatmul.msk.bf16.vlgmr.msra.gmra.mxu0 %vm3923_vm10, %v5230_v30  ;;  %vm3931_vm11 = vmpackc.low %vm159_vm8, %vm157_vm9 }
  0x99   :  { %3932 = vmatmul.msk.bf16.vlgmr.msra.gmra.mxu1 %vm3931_vm11, %v5230_v30  ;;  %vm3925_vm6 = vmpackc.low %vm162_vm3, %vm160_vm2  ;;  %7131 = vst [vmem:[#allocation22_spill] sm:$0xff] %v5397_v16 }
  0x9a   :  { %vm3933_vm7 = vmpackc.low %vm163_vm5, %vm161_vm4 }
  0x9c   :  { %v155_v22 = vpop.permute.xlu1 %154 }
  0x9d   :  { %v152_v23 = vpop.permute.xlu0 %151  ;;  %vm170_vm12 = vcmp.eq.s32.totalorder %v155_v22, %v5355_v26  ;;  %vm171_vm13 = vcmp.eq.s32.totalorder %v155_v22, %v5358_v28  ;;  %v4153_v22 = vld [vmem:[#allocation8 + $0xb0] sm:$0xf0] }
  0x9e   :  { %vm168_vm14 = vcmp.eq.s32.totalorder %v152_v23, %v5355_v26  ;;  %vm169_vm15 = vcmp.eq.s32.totalorder %v152_v23, %v5358_v28  ;;  %v4002_v26 = vor.u32 %v4594_v32, %v3999_v33  ;;  %v4591_v28 = vld [vmem:[#allocation6 + $0x4c] sm:$0xf0]  ;;  %v4135_v23 = vld [vmem:[#allocation8 + $0x80] sm:$0xf]  ;;  %v5402_v27 = vor.u32 %v4633_v19, %v4153_v22 }
  0x9f   :  { %vm3929_vm0 = vmpackc.low %vm170_vm12, %vm168_vm14  ;;  %v3974_v37 = vor.u32 %v4591_v28, %v3973_v35  ;;  %v5405_v32 = vor.u32 %v4631_v24, %v4135_v23  ;;  %v5408_v33 = vor.u32 %v4629_v29, %v4137_v31  ;;  %v5442_v22 = vor.u32 %v4640_v15, %v4175_v14  ;;  %v4159_v24 = vld [vmem:[#allocation8 + $0xa8] sm:$0xf]  ;;  %v4634_v29 = vld [vmem:[#allocation8 + $0xac] sm:$0xf] }
  0xa0   :  { %vm3937_vm1 = vmpackc.low %vm171_vm13, %vm169_vm15  ;;  %3930 = vmatmul.msk.bf16.gmra.mxu2 %vm3929_vm0, %v5230_v30  ;;  %679 = vmatpush.bf16.msrb.mxu1 %v4002_v26  ;;  %7133 = vst [vmem:[#allocation24_spill] sm:$0xff] %v5402_v27  ;;  %v5444_v23 = vor.u32 %v4638_v17, %v4177_v18  ;;  %v4161_v31 = vld [vmem:[#allocation8 + $0xb8] sm:$0xf0]  ;;  %v4616_v14 = vld [vmem:[#allocation8 + $0x14] sm:$0xf0] }
  0xa1   :  { %3938 = vmatmul.msk.bf16.gmra.mxu3 %vm3937_vm1, %v5230_v30  ;;  %593 = vmatpush.bf16.msrb.mxu2 %v3974_v37  ;;  %7134 = vst [vmem:[#allocation25_spill] sm:$0xff] %v5405_v32  ;;  %v4119_v37 = vld [vmem:[#allocation8 + $0x60] sm:$0xf]  ;;  %v4614_v15 = vld [vmem:[#allocation8 + $0xc] sm:$0xf] }
  0xa2   :  { %7135 = vst [vmem:[#allocation26_spill] sm:$0xff] %v5408_v33  ;;  %v4081_v17 = vld [vmem:[#allocation8 + $0x18] sm:$0xf0] }
  0xa3   :  { %7145 = vst [vmem:[#allocation36_spill] sm:$0xff] %v5444_v23 }
  0xa4   :  { %680 = vmatpush.bf16.msrb.mxu1 %v3986_v45  ;;  %v5414_v45 = vor.u32 %v4625_v39, %v4121_v41 }
  0xa5   :  { %594 = vmatpush.bf16.msrb.mxu2 %v3958_v49  ;;  %v5420_v49 = vor.u32 %v4621_v46, %v4105_v47  ;;  %v4127_v46 = vld [vmem:[#allocation8 + $0x68] sm:$0xf]  ;;  %v4628_v47 = vld [vmem:[#allocation8 + $0x74] sm:$0xf0] }
  0xa6   :  { %7137 = vst [vmem:[#allocation28_spill] sm:$0xff] %v5414_v45 }
  0xa7   :  { %7139 = vst [vmem:[#allocation30_spill] sm:$0xff] %v5420_v49 }
  0xa8   :  { %3926 = vmatmul.msk.bf16.gmra.mxu0 %vm3925_vm6, %v5230_v30  ;;  %681 = vmatpush.bf16.msrb.mxu1 %v3970_v56 }
  0xa9   :  { %3934 = vmatmul.msk.bf16.gmra.mxu1 %vm3933_vm7, %v5230_v30  ;;  %v3978_v30 = vor.u32 %v4589_v36, %v3975_v38  ;;  %595 = vmatpush.bf16.msrb.mxu2 %v3942_v60  ;;  %v4627_v38 = vld [vmem:[#allocation8 + $0x6c] sm:$0xf0] }
  0xab   :  { %622 = vmatpush.bf16.msrb.mxu3 %v3978_v30  ;;  %v5412_v30 = vor.u32 %v4627_v38, %v4119_v37  ;;  %v4145_v37 = vld [vmem:[#allocation8 + $0x98] sm:$0xf0] }
  0xac   :  { %682 = vmatpush.bf16.msrb.mxu1 %v3954_v4  ;;  %v4191_v4 = vld [vmem:[#allocation8 + $0xe8] sm:$0xf] }
  0xad   :  { %968 = vmatpush.bf16.msra.mxu2 %v5388_v7  ;;  %7136 = vst [vmem:[#allocation27_spill] sm:$0xff] %v5412_v30  ;;  %v5434_v8 = vor.u32 %v4644_v5, %v4191_v4 }
  0xaf   :  { %623 = vmatpush.bf16.msrb.mxu3 %v3962_v50  ;;  %v4087_v50 = vld [vmem:[#allocation8 + $0x20] sm:$0xf] }
  0xb0   :  { %v5423_v54 = vor.u32 %v4619_v51, %v4087_v50  ;;  %v4626_v50 = vld [vmem:[#allocation8 + $0x6c] sm:$0xf]  ;;  %v5460_v51 = vor.u32 %v4628_v47, %v4127_v46  ;;  %v4703_v46 = vld [vmem:[#allocation9 + $0x1cc] sm:$0xf0]  ;;  %v4701_v47 = vld [vmem:[#allocation9 + $0x1c4] sm:$0xf] }
  0xb1   :  { %969 = vmatpush.bf16.msra.mxu2 %v5393_v13 }
  0xb2   :  { %7140 = vst [vmem:[#allocation31_spill] sm:$0xff] %v5423_v54 }
  0xb3   :  { %624 = vmatpush.bf16.msrb.mxu3 %v3946_v0  ;;  %v4615_v0 = vld [vmem:[#allocation8 + $0xc] sm:$0xf0]  ;;  %7149 = vst [vmem:[#allocation40_spill] sm:$0xff] %v5460_v51 }
  0xb4   :  { %v5430_v2 = vor.u32 %v4615_v0, %v4071_v63  ;;  %v4620_v63 = vld [vmem:[#allocation8 + $0x34] sm:$0xf0]  ;;  %v4618_v0 = vld [vmem:[#allocation8 + $0x2c] sm:$0xf] }
  0xb5   :  { %970 = vmatpush.bf16.msra.mxu2 %v5400_v21  ;;  %v5474_v9 = vor.u32 %v4618_v0, %v4097_v1  ;;  %v4412_v1 = vld [vmem:[#allocation9 + $0x1b0] sm:$0xf0]  ;;  %v4698_v21 = vld [vmem:[#allocation9 + $0x1ac] sm:$0xf] }
  0xb6   :  { %7142 = vst [vmem:[#allocation33_spill] sm:$0xff] %v5430_v2 }
  0xb7   :  { %981 = vmatpush.bf16.msra.mxu3 %v5391_v11 }
  0xb9   :  { %971 = vmatpush.bf16.msra.mxu2 %v5405_v32 }
  0xbb   :  { %982 = vmatpush.bf16.msra.mxu3 %v5397_v16 }
  0xbd   :  { %972 = vmatpush.bf16.msra.mxu2 %v5412_v30 }
  0xbf   :  { %983 = vmatpush.bf16.msra.mxu3 %v5402_v27 }
  0xc1   :  { %973 = vmatpush.bf16.msra.mxu2 %v5417_v48 }
  0xc3   :  { %984 = vmatpush.bf16.msra.mxu3 %v5408_v33 }
  0xc5   :  { %974 = vmatpush.bf16.msra.mxu2 %v5423_v54  ;;  %v4452_v54 = vld [vmem:[#allocation9 + $0x1f8] sm:$0xf0] }
  0xc7   :  { %985 = vmatpush.bf16.msra.mxu3 %v5414_v45 }
  0xc9   :  { %975 = vmatpush.bf16.msra.mxu2 %v5430_v2  ;;  %v4675_v2 = vld [vmem:[#allocation9 + $0xec] sm:$0xf0] }
  0xcb   :  { %986 = vmatpush.bf16.msra.mxu3 %v5420_v49 }
  0xcf   :  { %987 = vmatpush.bf16.msra.mxu3 %v5426_v57 }
  0xd3   :  { %988 = vmatpush.bf16.msra.mxu3 %v5432_v6 }
 0x103   :  { %v343_v55 = vpop.f32.mrf.mxu2 }
 0x104   :  { %v372_v56 = vpop.f32.mrf.mxu3 }
 0x105   :  { %v373_v38 = vadd.f32 %v372_v56, %v343_v55  ;;  %v4624_v55 = vld [vmem:[#allocation8 + $0x54] sm:$0xf0]  ;;  %v5462_v56 = vor.u32 %v4626_v50, %v4129_v52  ;;  %v4428_v52 = vld [vmem:[#allocation9 + $0x1d0] sm:$0xf0] }
 0x107   :  { %7150 = vst [vmem:[#allocation41_spill] sm:$0xff] %v5462_v56 }
 0x10b   :  { %v345_v19 = vpop.f32.mrf.mxu2 }
 0x115   :  { %v333_v20 = vpop.f32.mrf.mxu0 }
 0x116   :  { %v362_v25 = vpop.f32.mrf.mxu1 }
 0x117   :  { %v363_v35 = vadd.f32 %v362_v25, %v333_v20  ;;  %v374_v20 = vpop.f32.mrf.mxu3  ;;  %v4636_v25 = vld [vmem:[#allocation8 + $0xb4] sm:$0xf0] }
 0x118   :  { %v375_v39 = vadd.f32 %v374_v20, %v345_v19  ;;  %v5478_v19 = vor.u32 %v4616_v14, %v4079_v10  ;;  %v5480_v20 = vor.u32 %v4614_v15, %v4081_v17  ;;  %v4394_v14 = vld [vmem:[#allocation9 + $0x180] sm:$0xf]  ;;  %v4695_v15 = vld [vmem:[#allocation9 + $0x18c] sm:$0xf0]  ;;  %v4693_v17 = vld [vmem:[#allocation9 + $0x184] sm:$0xf] }
 0x11a   :  { %7154 = vst [vmem:[#allocation45_spill] sm:$0xff] %v5478_v19 }
 0x11d   :  { %v335_v34 = vpop.f32.mrf.mxu0 }
 0x11e   :  { %v364_v26 = vpop.f32.mrf.mxu1 }
 0x11f   :  { %v365_v28 = vadd.f32 %v364_v26, %v335_v34  ;;  %v5448_v34 = vor.u32 %v4636_v25, %v4159_v24  ;;  %v5450_v26 = vor.u32 %v4634_v29, %v4161_v31  ;;  %v801_v29 = vld [vmem:[%s6920_s9] sm:$0xff] }
 0x120   :  { %v807_v31 = vpack.c.bf16 %v801_v29, %v801_v29  ;;  %v418_v29 = vld [vmem:[%s6915_s4] sm:$0xf] }
 0x121   :  { %v382_v36 = vpack.c.bf16 %v365_v28, %v363_v35  ;;  %7146 = vst [vmem:[#allocation37_spill] sm:$0xff] %v5448_v34  ;;  %v4143_v35 = vld [vmem:[#allocation8 + $0x88] sm:$0xf]  ;;  %v4632_v28 = vld [vmem:[#allocation8 + $0x94] sm:$0xf0] }
 0x123   :  { %596 = vmatmul.bf16.vlgmr.msrb.gmra.mxu2 %v382_v36  ;;  %625 = vmatmul.bf16.vlgmr.msrb.gmra.mxu3 %v382_v36  ;;  %v348_v42 = vpop.f32.mrf.mxu2 }
 0x124   :  { %654 = vmatmul.bf16.vlgmr.msrb.gmra.mxu0 %v382_v36  ;;  %683 = vmatmul.bf16.vlgmr.msrb.gmra.mxu1 %v382_v36  ;;  %v4630_v36 = vld [vmem:[#allocation8 + $0x8c] sm:$0xf]  ;;  %v377_v43 = vpop.f32.mrf.mxu3 }
 0x125   :  { %v338_v40 = vpop.f32.mrf.mxu0  ;;  %994 = vmatpush.bf16.msrb.mxu2 %v5434_v8  ;;  %1007 = vmatpush.bf16.msrb.mxu3 %v5436_v12  ;;  %v5456_v41 = vor.u32 %v4630_v36, %v4145_v37  ;;  %v378_v24 = vadd.f32 %v377_v43, %v348_v42  ;;  %v4705_v36 = vld [vmem:[#allocation9 + $0x1e4] sm:$0xf] }
 0x126   :  { %v367_v44 = vpop.f32.mrf.mxu1 }
 0x127   :  { %v368_v60 = vadd.f32 %v367_v44, %v338_v40  ;;  %v5454_v40 = vor.u32 %v4632_v28, %v4143_v35  ;;  %7148 = vst [vmem:[#allocation39_spill] sm:$0xff] %v5456_v41  ;;  %v384_v44 = vpack.c.bf16 %v375_v39, %v373_v38  ;;  %v4442_v35 = vld [vmem:[#allocation9 + $0x1e0] sm:$0xf]  ;;  %v4707_v28 = vld [vmem:[#allocation9 + $0x1ec] sm:$0xf0] }
 0x128   :  { %v5487_v37 = vor.u32 %v4707_v28, %v4442_v35  ;;  %v4444_v38 = vld [vmem:[#allocation9 + $0x1f0] sm:$0xf0]  ;;  %v4378_v28 = vld [vmem:[#allocation9 + $0x160] sm:$0xf] }
 0x129   :  { %995 = vmatpush.bf16.msrb.mxu2 %v5442_v22  ;;  %1008 = vmatpush.bf16.msrb.mxu3 %v5444_v23  ;;  %7147 = vst [vmem:[#allocation38_spill] sm:$0xff] %v5454_v40  ;;  %v5489_v39 = vor.u32 %v4705_v36, %v4444_v38  ;;  %v4691_v36 = vld [vmem:[#allocation9 + $0x16c] sm:$0xf0]  ;;  %v4689_v38 = vld [vmem:[#allocation9 + $0x164] sm:$0xf] }
 0x12a   :  { %1431 = vmatpush.bf16.msra.mxu1 %v5487_v37 }
 0x12b   :  { %v350_v3 = vpop.f32.mrf.mxu2 }
 0x12c   :  { %v379_v4 = vpop.f32.mrf.mxu3 }
 0x12d   :  { %v340_v58 = vpop.f32.mrf.mxu0  ;;  %996 = vmatpush.bf16.msrb.mxu2 %v5448_v34  ;;  %1009 = vmatpush.bf16.msrb.mxu3 %v5450_v26  ;;  %v380_v18 = vadd.f32 %v379_v4, %v350_v3  ;;  %v4700_v34 = vld [vmem:[#allocation9 + $0x1b4] sm:$0xf0] }
 0x12e   :  { %v369_v59 = vpop.f32.mrf.mxu1 }
 0x12f   :  { %v370_v61 = vadd.f32 %v369_v59, %v340_v58  ;;  %v4622_v58 = vld [vmem:[#allocation8 + $0x4c] sm:$0xf]  ;;  %v4113_v59 = vld [vmem:[#allocation8 + $0x58] sm:$0xf0]  ;;  %v385_v25 = vpack.c.bf16 %v380_v18, %v378_v24  ;;  %v5517_v18 = vor.u32 %v4695_v15, %v4394_v14  ;;  %v4396_v24 = vld [vmem:[#allocation9 + $0x190] sm:$0xf0] }
 0x130   :  { %v4362_v15 = vld [vmem:[#allocation9 + $0x140] sm:$0xf] }
 0x131   :  { %v383_v62 = vpack.c.bf16 %v370_v61, %v368_v60  ;;  %997 = vmatpush.bf16.msrb.mxu2 %v5454_v40  ;;  %1010 = vmatpush.bf16.msrb.mxu3 %v5456_v41  ;;  %v5466_v60 = vor.u32 %v4624_v55, %v4111_v53  ;;  %v5468_v61 = vor.u32 %v4622_v58, %v4113_v59  ;;  %v4410_v59 = vld [vmem:[#allocation9 + $0x1a0] sm:$0xf]  ;;  %v4418_v40 = vld [vmem:[#allocation9 + $0x1a8] sm:$0xf] }
 0x132   :  { %v5499_v53 = vor.u32 %v4701_v47, %v4428_v52  ;;  %v5532_v47 = vperm.slane %v418_v29, 2  ;;  %v5534_v52 = vperm.slane %v418_v29, 3 }
 0x133   :  { %601 = vmatmul.bf16.gmra.mxu2 %v383_v62  ;;  %630 = vmatmul.bf16.gmra.mxu3 %v383_v62  ;;  %7151 = vst [vmem:[#allocation42_spill] sm:$0xff] %v5466_v60 }
 0x134   :  { %659 = vmatmul.bf16.gmra.mxu0 %v383_v62  ;;  %688 = vmatmul.bf16.gmra.mxu1 %v383_v62  ;;  %7152 = vst [vmem:[#allocation43_spill] sm:$0xff] %v5468_v61  ;;  %v4095_v62 = vld [vmem:[#allocation8 + $0x28] sm:$0xf] }
 0x135   :  { %998 = vmatpush.bf16.msrb.mxu2 %v5460_v51  ;;  %1011 = vmatpush.bf16.msrb.mxu3 %v5462_v56  ;;  %v5472_v5 = vor.u32 %v4620_v63, %v4095_v62  ;;  %7156 = vst [vmem:[#allocation47_spill] sm:$0xff] %v5499_v53  ;;  %v4699_v62 = vld [vmem:[#allocation9 + $0x1ac] sm:$0xf0]  ;;  %v4697_v63 = vld [vmem:[#allocation9 + $0x1a4] sm:$0xf] }
 0x136   :  { %v5507_v0 = vor.u32 %v4699_v62, %v4410_v59  ;;  %v5509_v3 = vor.u32 %v4697_v63, %v4412_v1  ;;  %7164 = vst [vmem:[#allocation55_spill] sm:$0xff] %v5532_v47 }
 0x137   :  { %7153 = vst [vmem:[#allocation44_spill] sm:$0xff] %v5472_v5 }
 0x138   :  { %7157 = vst [vmem:[#allocation48_spill] sm:$0xff] %v5509_v3 }
 0x139   :  { %999 = vmatpush.bf16.msrb.mxu2 %v5466_v60  ;;  %1012 = vmatpush.bf16.msrb.mxu3 %v5468_v61  ;;  %7165 = vst [vmem:[#allocation56_spill] sm:$0xff] %v5534_v52 }
 0x13d   :  { %1000 = vmatpush.bf16.msrb.mxu2 %v5472_v5  ;;  %1013 = vmatpush.bf16.msrb.mxu3 %v5474_v9  ;;  %v4706_v5 = vld [vmem:[#allocation9 + $0x1ec] sm:$0xf] }
 0x141   :  { %1001 = vmatpush.bf16.msrb.mxu2 %v5478_v19  ;;  %1014 = vmatpush.bf16.msrb.mxu3 %v5480_v20  ;;  %v4314_v19 = vld [vmem:[#allocation9 + $0xe0] sm:$0xf] }
 0x143   :  { %606 = vmatmul.bf16.gmra.mxu2 %v384_v44  ;;  %635 = vmatmul.bf16.gmra.mxu3 %v384_v44 }
 0x144   :  { %664 = vmatmul.bf16.gmra.mxu0 %v384_v44  ;;  %693 = vmatmul.bf16.gmra.mxu1 %v384_v44  ;;  %v4426_v44 = vld [vmem:[#allocation9 + $0x1c0] sm:$0xf] }
 0x145   :  { %v5497_v50 = vor.u32 %v4703_v46, %v4426_v44  ;;  %v5530_v44 = vor.u32 %v4691_v36, %v4378_v28  ;;  %v4380_v46 = vld [vmem:[#allocation9 + $0x170] sm:$0xf0] }
 0x146   :  { %v5536_v59 = vor.u32 %v4689_v38, %v4380_v46  ;;  %v4364_v36 = vld [vmem:[#allocation9 + $0x150] sm:$0xf0]  ;;  %v5550_v46 = vperm.slane %v418_v29, 0 }
 0x147   :  { %7155 = vst [vmem:[#allocation46_spill] sm:$0xff] %v5497_v50  ;;  %1432 = vmatpush.bf16.msra.mxu1 %v5497_v50 }
 0x148   :  { %7163 = vst [vmem:[#allocation54_spill] sm:$0xff] %v5530_v44 }
 0x149   :  { %7166 = vst [vmem:[#allocation57_spill] sm:$0xff] %v5536_v59 }
 0x14a   :  { %7171 = vst [vmem:[#allocation62_spill] sm:$0xff] %v5550_v46 }
 0x14b   :  { %1433 = vmatpush.bf16.msra.mxu1 %v5507_v0 }
 0x14f   :  { %1434 = vmatpush.bf16.msra.mxu1 %v5517_v18 }
 0x153   :  { %611 = vmatmul.bf16.gmra.mxu2 %v385_v25  ;;  %640 = vmatmul.bf16.gmra.mxu3 %v385_v25 }
 0x154   :  { %669 = vmatmul.bf16.gmra.mxu0 %v385_v25  ;;  %698 = vmatmul.bf16.gmra.mxu1 %v385_v25  ;;  %v5519_v25 = vor.u32 %v4693_v17, %v4396_v24  ;;  %v4687_v17 = vld [vmem:[#allocation9 + $0x14c] sm:$0xf0]  ;;  %v4685_v24 = vld [vmem:[#allocation9 + $0x144] sm:$0xf] }
 0x155   :  { %1435 = vmatpush.bf16.msra.mxu1 %v5530_v44  ;;  %v5546_v28 = vor.u32 %v4687_v17, %v4362_v15  ;;  %v5548_v38 = vor.u32 %v4685_v24, %v4364_v36  ;;  %v4348_v24 = vld [vmem:[#allocation9 + $0x130] sm:$0xf0] }
 0x156   :  { %7160 = vst [vmem:[#allocation51_spill] sm:$0xff] %v5519_v25 }
 0x157   :  { %7169 = vst [vmem:[#allocation60_spill] sm:$0xff] %v5546_v28 }
 0x158   :  { %7170 = vst [vmem:[#allocation61_spill] sm:$0xff] %v5548_v38 }
 0x159   :  { %1436 = vmatpush.bf16.msra.mxu1 %v5546_v28 }
 0x163   :  { %976 = vmatmul.bf16.vlgmr.msra.gmra.mxu2 %v807_v31  ;;  %989 = vmatmul.bf16.vlgmr.msra.gmra.mxu3 %v807_v31 }
 0x164   :  { %1457 = vmatpush.bf16.msra.mxu3 %v5489_v39 }
 0x168   :  { %1458 = vmatpush.bf16.msra.mxu3 %v5499_v53 }
 0x16c   :  { %1459 = vmatpush.bf16.msra.mxu3 %v5509_v3 }
 0x170   :  { %1460 = vmatpush.bf16.msra.mxu3 %v5519_v25 }
 0x173   :  { %1002 = vmatmul.bf16.vlgmr.msrb.gmra.mxu2 %v807_v31  ;;  %1015 = vmatmul.bf16.vlgmr.msrb.gmra.mxu3 %v807_v31 }
 0x174   :  { %1461 = vmatpush.bf16.msra.mxu3 %v5536_v59 }
 0x178   :  { %1462 = vmatpush.bf16.msra.mxu3 %v5548_v38 }
 0x1a1   :  { %v5491_v42 = vpop.f32.mrf.mxu0  ;;  %v5493_v43 = vpop.f32.mrf.mxu1 }
 0x1a6   :  { %v5502_v55 = vpop.f32.mrf.mxu2  ;;  %v5504_v58 = vpop.f32.mrf.mxu3 }
 0x1a9   :  { %v5511_v4 = vpop.f32.mrf.mxu0  ;;  %v5513_v10 = vpop.f32.mrf.mxu1 }
 0x1aa   :  { %7158 = vst [vmem:[#allocation49_spill] sm:$0xff] %v5511_v4  ;;  %v4681_v4 = vld [vmem:[#allocation9 + $0x124] sm:$0xf] }
 0x1ab   :  { %7159 = vst [vmem:[#allocation50_spill] sm:$0xff] %v5513_v10  ;;  %v5552_v10 = vperm.slane %v418_v29, 1  ;;  %v5564_v29 = vor.u32 %v4681_v4, %v4348_v24  ;;  %v4450_v24 = vld [vmem:[#allocation9 + $0x1e8] sm:$0xf] }
 0x1ad   :  { %7172 = vst [vmem:[#allocation63_spill] sm:$0xff] %v5552_v10  ;;  %1463 = vmatpush.bf16.msra.mxu3 %v5564_v29 }
 0x1ae   :  { %v5525_v31 = vpop.f32.mrf.mxu2  ;;  %v5527_v35 = vpop.f32.mrf.mxu3  ;;  %7176 = vst [vmem:[#allocation67_spill] sm:$0xff] %v5564_v29 }
 0x1af   :  { %7161 = vst [vmem:[#allocation52_spill] sm:$0xff] %v5525_v31 }
 0x1b0   :  { %7162 = vst [vmem:[#allocation53_spill] sm:$0xff] %v5527_v35 }
 0x1b1   :  { %v660_v62 = vpop.f32.mrf.mxu0  ;;  %v689_v63 = vpop.f32.mrf.mxu1 }
 0x1b2   :  { %v5540_v1 = vadd.f32 %v660_v62, %v5532_v47  ;;  %v5543_v14 = vadd.f32 %v689_v63, %v5534_v52  ;;  %v4346_v63 = vld [vmem:[#allocation9 + $0x120] sm:$0xf] }
 0x1b4   :  { %7167 = vst [vmem:[#allocation58_spill] sm:$0xff] %v5540_v1 }
 0x1b5   :  { %7168 = vst [vmem:[#allocation59_spill] sm:$0xff] %v5543_v14  ;;  %v4683_v14 = vld [vmem:[#allocation9 + $0x12c] sm:$0xf0] }
 0x1b6   :  { %v602_v62 = vpop.f32.mrf.mxu2  ;;  %v631_v1 = vpop.f32.mrf.mxu3  ;;  %v5562_v17 = vor.u32 %v4683_v14, %v4346_v63  ;;  %v4332_v14 = vld [vmem:[#allocation9 + $0x110] sm:$0xf0] }
 0x1b7   :  { %v5557_v31 = vadd.f32 %v602_v62, %v5550_v46  ;;  %v5560_v15 = vadd.f32 %v631_v1, %v5552_v10  ;;  %v4330_v62 = vld [vmem:[#allocation9 + $0x100] sm:$0xf]  ;;  %v4679_v1 = vld [vmem:[#allocation9 + $0x10c] sm:$0xf0] }
 0x1b8   :  { %7175 = vst [vmem:[#allocation66_spill] sm:$0xff] %v5562_v17  ;;  %1437 = vmatpush.bf16.msra.mxu1 %v5562_v17  ;;  %v5574_v63 = vor.u32 %v4679_v1, %v4330_v62  ;;  %v4298_v1 = vld [vmem:[#allocation9 + $0xc0] sm:$0xf] }
 0x1b9   :  { %7173 = vst [vmem:[#allocation64_spill] sm:$0xff] %v5557_v31  ;;  %v5566_v36 = vpop.f32.mrf.mxu0  ;;  %v5568_v35 = vpop.f32.mrf.mxu1  ;;  %v5572_v31 = vor.u32 %v4675_v2, %v4314_v19  ;;  %v5587_v2 = vor.u32 %v4706_v5, %v4452_v54  ;;  %v4673_v19 = vld [vmem:[#allocation9 + $0xe4] sm:$0xf] }
 0x1ba   :  { %7174 = vst [vmem:[#allocation65_spill] sm:$0xff] %v5560_v15  ;;  %v4677_v15 = vld [vmem:[#allocation9 + $0x104] sm:$0xf] }
 0x1bb   :  { %7177 = vst [vmem:[#allocation68_spill] sm:$0xff] %v5566_v36  ;;  %v5576_v4 = vor.u32 %v4677_v15, %v4332_v14  ;;  %v4708_v36 = vld [vmem:[#allocation9 + $0x1f4] sm:$0xf0]  ;;  %1418 = vmatpush.bf16.msra.mxu0 %v5572_v31  ;;  %v4316_v15 = vld [vmem:[#allocation9 + $0xf0] sm:$0xf0] }
 0x1bc   :  { %7178 = vst [vmem:[#allocation69_spill] sm:$0xff] %v5568_v35  ;;  %v5579_v35 = vor.u32 %v4708_v36, %v4450_v24  ;;  %1438 = vmatpush.bf16.msra.mxu1 %v5574_v63  ;;  %v5590_v62 = vor.u32 %v4673_v19, %v4316_v15  ;;  %v4671_v36 = vld [vmem:[#allocation9 + $0xcc] sm:$0xf0]  ;;  %v4434_v14 = vld [vmem:[#allocation9 + $0x1c8] sm:$0xf] }
 0x1bd   :  { %7179 = vst [vmem:[#allocation70_spill] sm:$0xff] %v5572_v31  ;;  %1464 = vmatpush.bf16.msra.mxu3 %v5576_v4  ;;  %v5593_v24 = vor.u32 %v4671_v36, %v4298_v1  ;;  %v4436_v31 = vld [vmem:[#allocation9 + $0x1d8] sm:$0xf0]  ;;  %v4669_v19 = vld [vmem:[#allocation9 + $0xc4] sm:$0xf] }
 0x1be   :  { %7180 = vst [vmem:[#allocation71_spill] sm:$0xff] %v5574_v63  ;;  %v5581_v60 = vpop.f32.mrf.mxu2  ;;  %v5583_v48 = vpop.f32.mrf.mxu3  ;;  %1444 = vmatpush.bf16.msra.mxu2 %v5590_v62  ;;  %v4300_v15 = vld [vmem:[#allocation9 + $0xd0] sm:$0xf0] }
 0x1bf   :  { %7181 = vst [vmem:[#allocation72_spill] sm:$0xff] %v5576_v4  ;;  %1419 = vmatpush.bf16.msra.mxu0 %v5593_v24  ;;  %v5607_v36 = vor.u32 %v4669_v19, %v4300_v15 }
 0x1c0   :  { %7182 = vst [vmem:[#allocation73_spill] sm:$0xff] %v5579_v35  ;;  %1483 = vmatpush.bf16.msrb.mxu1 %v5579_v35 }
 0x1c1   :  { %7183 = vst [vmem:[#allocation74_spill] sm:$0xff] %v5581_v60  ;;  %1509 = vmatpush.bf16.msrb.mxu3 %v5587_v2  ;;  %v4704_v60 = vld [vmem:[#allocation9 + $0x1d4] sm:$0xf0]  ;;  %v665_v51 = vpop.f32.mrf.mxu0  ;;  %v694_v30 = vpop.f32.mrf.mxu1 }
 0x1c2   :  { %7184 = vst [vmem:[#allocation75_spill] sm:$0xff] %v5583_v48  ;;  %v4702_v48 = vld [vmem:[#allocation9 + $0x1cc] sm:$0xf]  ;;  %v5596_v54 = vor.u32 %v4704_v60, %v4434_v14  ;;  %v5601_v32 = vadd.f32 %v665_v51, %v5532_v47  ;;  %v5604_v1 = vadd.f32 %v694_v30, %v5534_v52  ;;  %1445 = vmatpush.bf16.msra.mxu2 %v5607_v36  ;;  %v4667_v14 = vld [vmem:[#allocation9 + $0xac] sm:$0xf0] }
 0x1c3   :  { %7185 = vst [vmem:[#allocation76_spill] sm:$0xff] %v5587_v2  ;;  %v5598_v5 = vor.u32 %v4702_v48, %v4436_v31  ;;  %v5610_v48 = vor.u32 %v4700_v34, %v4418_v40  ;;  %v4282_v31 = vld [vmem:[#allocation9 + $0xa0] sm:$0xf]  ;;  %v4284_v40 = vld [vmem:[#allocation9 + $0xb0] sm:$0xf0] }
 0x1c4   :  { %7186 = vst [vmem:[#allocation77_spill] sm:$0xff] %v5590_v62  ;;  %v4420_v62 = vld [vmem:[#allocation9 + $0x1b8] sm:$0xf0]  ;;  %1484 = vmatpush.bf16.msrb.mxu1 %v5596_v54  ;;  %v5623_v34 = vor.u32 %v4667_v14, %v4282_v31  ;;  %v4266_v31 = vld [vmem:[#allocation9 + $0x80] sm:$0xf] }
 0x1c5   :  { %7187 = vst [vmem:[#allocation78_spill] sm:$0xff] %v5593_v24  ;;  %1510 = vmatpush.bf16.msrb.mxu3 %v5598_v5  ;;  %v5613_v60 = vor.u32 %v4698_v21, %v4420_v62  ;;  %v4402_v21 = vld [vmem:[#allocation9 + $0x188] sm:$0xf]  ;;  %v4696_v62 = vld [vmem:[#allocation9 + $0x194] sm:$0xf0] }
 0x1c6   :  { %7188 = vst [vmem:[#allocation79_spill] sm:$0xff] %v5596_v54  ;;  %v607_v51 = vpop.f32.mrf.mxu2  ;;  %v636_v30 = vpop.f32.mrf.mxu3  ;;  %v4694_v24 = vld [vmem:[#allocation9 + $0x18c] sm:$0xf]  ;;  %1420 = vmatpush.bf16.msra.mxu0 %v5623_v34  ;;  %v4663_v14 = vld [vmem:[#allocation9 + $0x8c] sm:$0xf0] }
 0x1c7   :  { %7189 = vst [vmem:[#allocation80_spill] sm:$0xff] %v5598_v5  ;;  %v5617_v19 = vadd.f32 %v607_v51, %v5550_v46  ;;  %v5620_v15 = vadd.f32 %v636_v30, %v5552_v10  ;;  %v4404_v5 = vld [vmem:[#allocation9 + $0x198] sm:$0xf0] }
 0x1c8   :  { %7190 = vst [vmem:[#allocation81_spill] sm:$0xff] %v5601_v32  ;;  %1485 = vmatpush.bf16.msrb.mxu1 %v5610_v48  ;;  %v5635_v30 = vor.u32 %v4694_v24, %v4404_v5  ;;  %v4690_v24 = vld [vmem:[#allocation9 + $0x16c] sm:$0xf]  ;;  %v4388_v5 = vld [vmem:[#allocation9 + $0x178] sm:$0xf0] }
 0x1c9   :  { %7191 = vst [vmem:[#allocation82_spill] sm:$0xff] %v5604_v1  ;;  %v4665_v1 = vld [vmem:[#allocation9 + $0xa4] sm:$0xf]  ;;  %1511 = vmatpush.bf16.msrb.mxu3 %v5613_v60  ;;  %v5630_v51 = vpop.f32.mrf.mxu0 }
 0x1ca   :  { %7192 = vst [vmem:[#allocation83_spill] sm:$0xff] %v5607_v36  ;;  %v5626_v32 = vor.u32 %v4665_v1, %v4284_v40  ;;  %v5628_v36 = vor.u32 %v4696_v62, %v4402_v21  ;;  %v5639_v1 = vor.u32 %v4663_v14, %v4266_v31  ;;  %v4268_v40 = vld [vmem:[#allocation9 + $0x90] sm:$0xf0]  ;;  %v4386_v21 = vld [vmem:[#allocation9 + $0x168] sm:$0xf] }
 0x1cb   :  { %7193 = vst [vmem:[#allocation84_spill] sm:$0xff] %v5610_v48  ;;  %v4692_v62 = vld [vmem:[#allocation9 + $0x174] sm:$0xf0]  ;;  %v4250_v31 = vld [vmem:[#allocation9 + $0x60] sm:$0xf] }
 0x1cc   :  { %7194 = vst [vmem:[#allocation85_spill] sm:$0xff] %v5613_v60  ;;  %1446 = vmatpush.bf16.msra.mxu2 %v5626_v32  ;;  %1486 = vmatpush.bf16.msrb.mxu1 %v5628_v36  ;;  %v4659_v14 = vld [vmem:[#allocation9 + $0x6c] sm:$0xf0]  ;;  %v4657_v60 = vld [vmem:[#allocation9 + $0x64] sm:$0xf] }
 0x1cd   :  { %7195 = vst [vmem:[#allocation86_spill] sm:$0xff] %v5617_v19  ;;  %v5632_v19 = vpop.f32.mrf.mxu1  ;;  %1512 = vmatpush.bf16.msrb.mxu3 %v5635_v30  ;;  %1421 = vmatpush.bf16.msra.mxu0 %v5639_v1 }
 0x1ce   :  { %7196 = vst [vmem:[#allocation87_spill] sm:$0xff] %v5620_v15  ;;  %v4661_v15 = vld [vmem:[#allocation9 + $0x84] sm:$0xf] }
 0x1cf   :  { %7197 = vst [vmem:[#allocation88_spill] sm:$0xff] %v5623_v34  ;;  %v5649_v34 = vpop.f32.mrf.mxu2 }
 0x1d0   :  { %7198 = vst [vmem:[#allocation89_spill] sm:$0xff] %v5626_v32  ;;  %v5647_v32 = vor.u32 %v4690_v24, %v4388_v5 }
 0x1d1   :  { %7199 = vst [vmem:[#allocation90_spill] sm:$0xff] %v5628_v36  ;;  %v5651_v36 = vpop.f32.mrf.mxu3 }
 0x1d2   :  { %7200 = vst [vmem:[#allocation91_spill] sm:$0xff] %v5630_v51  ;;  %v5642_v51 = vor.u32 %v4661_v15, %v4268_v40  ;;  %v5655_v15 = vor.u32 %v4659_v14, %v4250_v31  ;;  %v4252_v40 = vld [vmem:[#allocation9 + $0x70] sm:$0xf0]  ;;  %1513 = vmatpush.bf16.msrb.mxu3 %v5647_v32 }
 0x1d3   :  { %7201 = vst [vmem:[#allocation92_spill] sm:$0xff] %v5632_v19  ;;  %v5644_v19 = vor.u32 %v4692_v62, %v4386_v21  ;;  %v4370_v21 = vld [vmem:[#allocation9 + $0x148] sm:$0xf]  ;;  %v4688_v62 = vld [vmem:[#allocation9 + $0x154] sm:$0xf0]  ;;  %v5658_v24 = vor.u32 %v4657_v60, %v4252_v40 }
 0x1d4   :  { %7202 = vst [vmem:[#allocation93_spill] sm:$0xff] %v5635_v30  ;;  %1447 = vmatpush.bf16.msra.mxu2 %v5642_v51  ;;  %v5660_v5 = vor.u32 %v4688_v62, %v4370_v21  ;;  %1422 = vmatpush.bf16.msra.mxu0 %v5655_v15  ;;  %v4234_v60 = vld [vmem:[#allocation9 + $0x40] sm:$0xf]  ;;  %v4655_v40 = vld [vmem:[#allocation9 + $0x4c] sm:$0xf0] }
 0x1d5   :  { %7203 = vst [vmem:[#allocation94_spill] sm:$0xff] %v5639_v1  ;;  %1487 = vmatpush.bf16.msrb.mxu1 %v5644_v19  ;;  %v670_v1 = vpop.f32.mrf.mxu0  ;;  %v4653_v21 = vld [vmem:[#allocation9 + $0x44] sm:$0xf]  ;;  %v5673_v62 = vor.u32 %v4655_v40, %v4234_v60 }
 0x1d6   :  { %7204 = vst [vmem:[#allocation95_spill] sm:$0xff] %v5642_v51  ;;  %v699_v51 = vpop.f32.mrf.mxu1  ;;  %v5666_v31 = vadd.f32 %v670_v1, %v5532_v47  ;;  %v4356_v1 = vld [vmem:[#allocation9 + $0x138] sm:$0xf0] }
 0x1d7   :  { %7205 = vst [vmem:[#allocation96_spill] sm:$0xff] %v5644_v19  ;;  %v5669_v14 = vadd.f32 %v699_v51, %v5534_v52  ;;  %v4354_v19 = vld [vmem:[#allocation9 + $0x128] sm:$0xf]  ;;  %v4682_v51 = vld [vmem:[#allocation9 + $0x12c] sm:$0xf] }
 0x1d8   :  { %7206 = vst [vmem:[#allocation97_spill] sm:$0xff] %v5647_v32  ;;  %1448 = vmatpush.bf16.msra.mxu2 %v5658_v24  ;;  %v4236_v32 = vld [vmem:[#allocation9 + $0x50] sm:$0xf0]  ;;  %1423 = vmatpush.bf16.msra.mxu0 %v5673_v62 }
 0x1d9   :  { %7207 = vst [vmem:[#allocation98_spill] sm:$0xff] %v5649_v34  ;;  %v4686_v34 = vld [vmem:[#allocation9 + $0x14c] sm:$0xf]  ;;  %1488 = vmatpush.bf16.msrb.mxu1 %v5660_v5 }
 0x1da   :  { %7208 = vst [vmem:[#allocation99_spill] sm:$0xff] %v5651_v36  ;;  %v4372_v36 = vld [vmem:[#allocation9 + $0x158] sm:$0xf0] }
 0x1db   :  { %7209 = vst [vmem:[#allocation100_spill] sm:$0xff] %v5655_v15  ;;  %v5663_v30 = vor.u32 %v4686_v34, %v4372_v36  ;;  %v4684_v15 = vld [vmem:[#allocation9 + $0x134] sm:$0xf0]  ;;  %v5676_v36 = vor.u32 %v4653_v21, %v4236_v32  ;;  %v4218_v32 = vld [vmem:[#allocation9 + $0x20] sm:$0xf] }
 0x1dc   :  { %7210 = vst [vmem:[#allocation101_spill] sm:$0xff] %v5658_v24  ;;  %v5678_v34 = vor.u32 %v4684_v15, %v4354_v19  ;;  %v641_v24 = vpop.f32.mrf.mxu3  ;;  %v4651_v19 = vld [vmem:[#allocation9 + $0x2c] sm:$0xf0]  ;;  %v4649_v15 = vld [vmem:[#allocation9 + $0x24] sm:$0xf] }
 0x1dd   :  { %7211 = vst [vmem:[#allocation102_spill] sm:$0xff] %v5660_v5  ;;  %1514 = vmatpush.bf16.msrb.mxu3 %v5663_v30  ;;  %1449 = vmatpush.bf16.msra.mxu2 %v5676_v36  ;;  %v5688_v40 = vadd.f32 %v641_v24, %v5552_v10  ;;  %v5692_v21 = vor.u32 %v4651_v19, %v4218_v32  ;;  %v4680_v24 = vld [vmem:[#allocation9 + $0x114] sm:$0xf0]  ;;  %v4202_v32 = vld [vmem:[#allocation9] sm:$0xf] }
 0x1de   :  { %7212 = vst [vmem:[#allocation103_spill] sm:$0xff] %v5663_v30  ;;  %1489 = vmatpush.bf16.msrb.mxu1 %v5678_v34  ;;  %v4647_v19 = vld [vmem:[#allocation9 + $0xc] sm:$0xf0]  ;;  %v4645_v30 = vld [vmem:[#allocation9 + $0x4] sm:$0xf] }
 0x1df   :  { %7213 = vst [vmem:[#allocation104_spill] sm:$0xff] %v5666_v31  ;;  %v612_v31 = vpop.f32.mrf.mxu2  ;;  %1424 = vmatpush.bf16.msra.mxu0 %v5692_v21 }
 0x1e0   :  { %7214 = vst [vmem:[#allocation105_spill] sm:$0xff] %v5669_v14  ;;  %v5681_v14 = vor.u32 %v4682_v51, %v4356_v1  ;;  %v5685_v60 = vadd.f32 %v612_v31, %v5550_v46  ;;  %v4220_v51 = vld [vmem:[#allocation9 + $0x30] sm:$0xf0]  ;;  %v4067_v1 = vld [vmem:[%s6920_s9 + $0x8] sm:$0xff] }
 0x1e1   :  { %7215 = vst [vmem:[#allocation106_spill] sm:$0xff] %v5673_v62  ;;  %v5697_v31 = vor.u32 %v4649_v15, %v4220_v51  ;;  %v4340_v62 = vld [vmem:[#allocation9 + $0x118] sm:$0xf0]  ;;  %v5710_v15 = vor.u32 %v4647_v19, %v4202_v32  ;;  %v4204_v51 = vld [vmem:[#allocation9 + $0x10] sm:$0xf0] }
 0x1e2   :  { %7216 = vst [vmem:[#allocation107_spill] sm:$0xff] %v5676_v36  ;;  %1515 = vmatpush.bf16.msrb.mxu3 %v5681_v14  ;;  %v4338_v36 = vld [vmem:[#allocation9 + $0x108] sm:$0xf]  ;;  %v4670_v19 = vld [vmem:[#allocation9 + $0xcc] sm:$0xf] }
 0x1e3   :  { %7217 = vst [vmem:[#allocation108_spill] sm:$0xff] %v5678_v34  ;;  %v5702_v34 = vor.u32 %v4680_v24, %v4338_v36  ;;  %1450 = vmatpush.bf16.msra.mxu2 %v5697_v31  ;;  %v4324_v24 = vld [vmem:[#allocation9 + $0xf8] sm:$0xf0]  ;;  %1425 = vmatpush.bf16.msra.mxu0 %v5710_v15 }
 0x1e4   :  { %7218 = vst [vmem:[#allocation109_spill] sm:$0xff] %v5681_v14  ;;  %v5720_v5 = vpop.f32.mrf.mxu3 }
 0x1e5   :  { %7219 = vst [vmem:[#allocation110_spill] sm:$0xff] %v5685_v60  ;;  %v5699_v60 = vpack.c.bf16 %v4067_v1, %v4067_v1  ;;  %1490 = vmatpush.bf16.msrb.mxu1 %v5702_v34  ;;  %v4322_v1 = vld [vmem:[#allocation9 + $0xe8] sm:$0xf] }
 0x1e6   :  { %7220 = vst [vmem:[#allocation111_spill] sm:$0xff] %v5688_v40  ;;  %v4678_v40 = vld [vmem:[#allocation9 + $0x10c] sm:$0xf] }
 0x1e7   :  { %7221 = vst [vmem:[#allocation112_spill] sm:$0xff] %v5692_v21  ;;  %v5704_v14 = vor.u32 %v4678_v40, %v4340_v62  ;;  %1439 = vmatmul.bf16.vlgmr.msra.gmra.mxu1 %v5699_v60  ;;  %1465 = vmatmul.bf16.vlgmr.msra.gmra.mxu3 %v5699_v60  ;;  %v4676_v21 = vld [vmem:[#allocation9 + $0xf4] sm:$0xf0]  ;;  %v5714_v62 = vor.u32 %v4645_v30, %v4204_v51  ;;  %v4674_v40 = vld [vmem:[#allocation9 + $0xec] sm:$0xf] }
 0x1e8   :  { %7222 = vst [vmem:[#allocation113_spill] sm:$0xff] %v5697_v31  ;;  %v5716_v36 = vor.u32 %v4676_v21, %v4322_v1  ;;  %v5718_v31 = vpop.f32.mrf.mxu2  ;;  %v5724_v32 = vor.u32 %v4674_v40, %v4324_v24  ;;  %v4306_v30 = vld [vmem:[#allocation9 + $0xc8] sm:$0xf]  ;;  %v4672_v21 = vld [vmem:[#allocation9 + $0xd4] sm:$0xf0] }
 0x1e9   :  { %7223 = vst [vmem:[#allocation114_spill] sm:$0xff] %v5702_v34  ;;  %1516 = vmatpush.bf16.msrb.mxu3 %v5704_v14  ;;  %1599 = vmatpush.bf16.msra.mxu1 %v5391_v11  ;;  %v5730_v51 = vor.u32 %v4672_v21, %v4306_v30  ;;  %v4308_v1 = vld [vmem:[#allocation9 + $0xd8] sm:$0xf0]  ;;  %v4290_v40 = vld [vmem:[#allocation9 + $0xa8] sm:$0xf] }
 0x1ea   :  { %7224 = vst [vmem:[#allocation115_spill] sm:$0xff] %v5704_v14  ;;  %1451 = vmatpush.bf16.msra.mxu2 %v5714_v62  ;;  %1470 = vmatpush.bf16.msrb.mxu0 %v5716_v36  ;;  %v4668_v24 = vld [vmem:[#allocation9 + $0xb4] sm:$0xf0]  ;;  %v4292_v21 = vld [vmem:[#allocation9 + $0xb8] sm:$0xf0] }
 0x1eb   :  { %7225 = vst [vmem:[#allocation116_spill] sm:$0xff] %v5710_v15  ;;  %v5742_v30 = vor.u32 %v4668_v24, %v4290_v40  ;;  %v4276_v24 = vld [vmem:[#allocation9 + $0x98] sm:$0xf0] }
 0x1ec   :  { %7226 = vst [vmem:[#allocation117_spill] sm:$0xff] %v5714_v62 }
 0x1ed   :  { %7227 = vst [vmem:[#allocation118_spill] sm:$0xff] %v5716_v36  ;;  %1625 = vmatpush.bf16.msra.mxu3 %v5436_v12  ;;  %1600 = vmatpush.bf16.msra.mxu1 %v5397_v16  ;;  %v598_v12 = vadd.f32 %v5502_v55, %v5550_v46  ;;  %v627_v16 = vadd.f32 %v5504_v58, %v5552_v10  ;;  %v4274_v55 = vld [vmem:[#allocation9 + $0x88] sm:$0xf]  ;;  %v4664_v46 = vld [vmem:[#allocation9 + $0x94] sm:$0xf0] }
 0x1ee   :  { %7228 = vst [vmem:[#allocation119_spill] sm:$0xff] %v5718_v31  ;;  %1496 = vmatpush.bf16.msrb.mxu2 %v5724_v32  ;;  %v5733_v31 = vor.u32 %v4670_v19, %v4308_v1  ;;  %1471 = vmatpush.bf16.msrb.mxu0 %v5730_v51  ;;  %v990_v1 = vpop.f32.mrf.mxu3  ;;  %v4662_v58 = vld [vmem:[#allocation9 + $0x8c] sm:$0xf]  ;;  %v5750_v40 = vor.u32 %v4664_v46, %v4274_v55 }
 0x1ef   :  { %7229 = vst [vmem:[#allocation120_spill] sm:$0xff] %v5720_v5  ;;  %v4666_v5 = vld [vmem:[#allocation9 + $0xac] sm:$0xf] }
 0x1f0   :  { %7230 = vst [vmem:[#allocation121_spill] sm:$0xff] %v5724_v32  ;;  %v977_v19 = vpop.f32.mrf.mxu2 }
 0x1f1   :  { %7231 = vst [vmem:[#allocation122_spill] sm:$0xff] %v5730_v51  ;;  %1626 = vmatpush.bf16.msra.mxu3 %v5444_v23  ;;  %1601 = vmatpush.bf16.msra.mxu1 %v5402_v27  ;;  %v5745_v23 = vor.u32 %v4666_v5, %v4292_v21  ;;  %v1020_v11 = vadd.f32 %v977_v19, %v598_v12  ;;  %v4658_v12 = vld [vmem:[#allocation9 + $0x6c] sm:$0xf] }
 0x1f2   :  { %7232 = vst [vmem:[#allocation123_spill] sm:$0xff] %v5733_v31  ;;  %1497 = vmatpush.bf16.msrb.mxu2 %v5733_v31  ;;  %v1021_v31 = vadd.f32 %v990_v1, %v627_v16  ;;  %1472 = vmatpush.bf16.msrb.mxu0 %v5742_v30  ;;  %v5753_v5 = vor.u32 %v4662_v58, %v4276_v24  ;;  %v4660_v16 = vld [vmem:[#allocation9 + $0x74] sm:$0xf0]  ;;  %v4654_v1 = vld [vmem:[#allocation9 + $0x4c] sm:$0xf] }
 0x1f3   :  { %7233 = vst [vmem:[#allocation124_spill] sm:$0xff] %v5742_v30  ;;  %v4197_v10 = vmul.f32 -1.442695, %v1020_v11  ;;  %v4258_v11 = vld [vmem:[#allocation9 + $0x68] sm:$0xf] }
 0x1f4   :  { %7234 = vst [vmem:[#allocation125_spill] sm:$0xff] %v5745_v23  ;;  %v4198_v27 = vmul.f32 -1.442695, %v1021_v31  ;;  %v5760_v46 = vor.u32 %v4660_v16, %v4258_v11  ;;  %v4260_v31 = vld [vmem:[#allocation9 + $0x78] sm:$0xf0] }
 0x1f5   :  { %1627 = vmatpush.bf16.msra.mxu3 %v5450_v26  ;;  %1602 = vmatpush.bf16.msra.mxu1 %v5408_v33  ;;  %7235 = vst [vmem:[#allocation126_spill] sm:$0xff] %v5750_v40  ;;  %4760 = vpow2.f32 %v4197_v10  ;;  %v5763_v10 = vor.u32 %v4658_v12, %v4260_v31  ;;  %v4244_v24 = vld [vmem:[#allocation9 + $0x58] sm:$0xf0] }
 0x1f6   :  { %1498 = vmatpush.bf16.msrb.mxu2 %v5745_v23  ;;  %7236 = vst [vmem:[#allocation127_spill] sm:$0xff] %v5753_v5  ;;  %1473 = vmatpush.bf16.msrb.mxu0 %v5750_v40  ;;  %4762 = vpow2.f32 %v4198_v27  ;;  %v992_v19 = vpop.f32.mrf.mxu3  ;;  %v4242_v27 = vld [vmem:[#allocation9 + $0x48] sm:$0xf]  ;;  %v5773_v12 = vor.u32 %v4654_v1, %v4244_v24  ;;  %v4650_v24 = vld [vmem:[#allocation9 + $0x2c] sm:$0xf] }
 0x1f7   :  { %1491 = vmatmul.bf16.vlgmr.msrb.gmra.mxu1 %v5699_v60  ;;  %1517 = vmatmul.bf16.vlgmr.msrb.gmra.mxu3 %v5699_v60  ;;  %7237 = vst [vmem:[#allocation128_spill] sm:$0xff] %v5760_v46  ;;  %v4656_v60 = vld [vmem:[#allocation9 + $0x54] sm:$0xf0]  ;;  %v656_v19 = vadd.f32 %v5491_v42, %v5532_v47 }
 0x1f8   :  { %v979_v21 = vpop.f32.mrf.mxu2  ;;  %7238 = vst [vmem:[#allocation129_spill] sm:$0xff] %v5763_v10  ;;  %v5768_v58 = vor.u32 %v4656_v60, %v4242_v27  ;;  %v4652_v27 = vld [vmem:[#allocation9 + $0x34] sm:$0xf0] }
 0x1f9   :  { %1628 = vmatpush.bf16.msra.mxu3 %v5456_v41  ;;  %1603 = vmatpush.bf16.msra.mxu1 %v5414_v45  ;;  %7240 = vst [vmem:[#allocation131_spill] sm:$0xff] %v5773_v12  ;;  %v4226_v21 = vld [vmem:[#allocation9 + $0x28] sm:$0xf]  ;;  %v4648_v42 = vld [vmem:[#allocation9 + $0x14] sm:$0xf0] }
 0x1fa   :  { %1499 = vmatpush.bf16.msrb.mxu2 %v5753_v5  ;;  %1474 = vmatpush.bf16.msrb.mxu0 %v5760_v46  ;;  %7239 = vst [vmem:[#allocation130_spill] sm:$0xff] %v5768_v58  ;;  %v4646_v45 = vld [vmem:[#allocation9 + $0xc] sm:$0xf] }
 0x1fb   :  { %v4761_v55 = vpop.eup %4760 }
 0x1fc   :  { %v4763_v11 = vpop.eup %4762  ;;  %v5770_v16 = vadd.f32 1.0, %v4761_v55  ;;  %v5785_v55 = vor.u32 %v4652_v27, %v4226_v21  ;;  %v4212_v21 = vld [vmem:[#allocation9 + $0x18] sm:$0xf0] }
 0x1fd   :  { %1629 = vmatpush.bf16.msra.mxu3 %v5462_v56  ;;  %1604 = vmatpush.bf16.msra.mxu1 %v5420_v49  ;;  %v5775_v31 = vadd.f32 1.0, %v4763_v11  ;;  %v4228_v11 = vld [vmem:[#allocation9 + $0x38] sm:$0xf0]  ;;  %v4210_v56 = vld [vmem:[#allocation9 + $0x8] sm:$0xf] }
 0x1fe   :  { %1500 = vmatpush.bf16.msrb.mxu2 %v5763_v10  ;;  %1475 = vmatpush.bf16.msrb.mxu0 %v5768_v58  ;;  %4764 = vrcp.f32 %v5770_v16  ;;  %v1016_v1 = vpop.f32.mrf.mxu3  ;;  %7241 = vst [vmem:[#allocation132_spill] sm:$0xff] %v5785_v55  ;;  %v5788_v49 = vor.u32 %v4650_v24, %v4228_v11  ;;  %v5793_v33 = vor.u32 %v4648_v42, %v4210_v56  ;;  %vm1041_vm10 = vweird.f32 %v5770_v16 }
 0x1ff   :  { %4766 = vrcp.f32 %v5775_v31  ;;  %vm1056_vm12 = vweird.f32 %v5775_v31 }
 0x200   :  { %v1003_v60 = vpop.f32.mrf.mxu2  ;;  %7242 = vst [vmem:[#allocation133_spill] sm:$0xff] %v5788_v49 }
 0x201   :  { %1630 = vmatpush.bf16.msra.mxu3 %v5468_v61  ;;  %1605 = vmatpush.bf16.msra.mxu1 %v5426_v57  ;;  %v1022_v61 = vadd.f32 %v1003_v60, %v656_v19  ;;  %v685_v57 = vadd.f32 %v5493_v43, %v5534_v52  ;;  %7243 = vst [vmem:[#allocation134_spill] sm:$0xff] %v5793_v33 }
 0x202   :  { %1501 = vmatpush.bf16.msrb.mxu2 %v5773_v12  ;;  %1476 = vmatpush.bf16.msrb.mxu0 %v5785_v55  ;;  %v5797_v19 = vor.u32 %v4646_v45, %v4212_v21  ;;  %v1047_v21 = vand.u32 2147483648, %v5770_v16 }
 0x203   :  { %v4199_v41 = vmul.f32 -1.442695, %v1022_v61  ;;  %v1023_v11 = vadd.f32 %v1016_v1, %v685_v57  ;;  %v1045_v1 = vand.u32 2147483647, %v5770_v16 }
 0x204   :  { %v4765_v27 = vpop.eup %4764  ;;  %7244 = vst [vmem:[#allocation135_spill] sm:$0xff] %v5797_v19 }
 0x205   :  { %1631 = vmatpush.bf16.msra.mxu3 %v5474_v9  ;;  %1606 = vmatpush.bf16.msra.mxu1 %v5432_v6  ;;  %v4767_v60 = vpop.eup %4766  ;;  %v1037_v24 = vmul.f32 %v4765_v27, %v5770_v16  ;;  %4768 = vpow2.f32 %v4199_v41  ;;  %vm1042_vm8 = vweird.f32 %v4765_v27  ;;  %v1062_v41 = vand.u32 2147483648, %v5775_v31  ;;  %v804_v16 = vld [vmem:[%s6921_s10] sm:$0xff] }
 0x206   :  { %1502 = vmatpush.bf16.msrb.mxu2 %v5788_v49  ;;  %v1052_v56 = vmul.f32 %v4767_v60, %v5775_v31  ;;  %1477 = vmatpush.bf16.msrb.mxu0 %v5793_v33  ;;  %v1018_v6 = vpop.f32.mrf.mxu3  ;;  %4770 = vtanh.f32 %v1023_v11  ;;  %vm1057_vm9 = vweird.f32 %v4767_v60  ;;  %vm1043_vm11 = vmor %vm1041_vm10, %vm1042_vm8  ;;  %vm1046_vm14 = vcmp.eq.f32.partialorder %v1045_v1, 8.507059e+37 }
 0x207   :  { %v1038_v61 = vsub.f32 1.0, %v1037_v24  ;;  %v1060_v6 = vand.u32 2147483647, %v5775_v31  ;;  %vm1058_vm13 = vmor %vm1056_vm12, %vm1057_vm9 }
 0x208   :  { %v1053_v43 = vsub.f32 1.0, %v1052_v56  ;;  %v1005_v42 = vpop.f32.mrf.mxu2 }
 0x209   :  { %1632 = vmatpush.bf16.msra.mxu3 %v5480_v20  ;;  %1720 = vmatpush.bf16.msrb.mxu1 %v5487_v37  ;;  %v1039_v45 = vmul.f32 %v4765_v27, %v1038_v61  ;;  %vm1061_vm15 = vcmp.eq.f32.partialorder %v1060_v6, 8.507059e+37 }
 0x20a   :  { %1503 = vmatpush.bf16.msrb.mxu2 %v5797_v19  ;;  %v1054_v57 = vmul.f32 %v4767_v60, %v1053_v43  ;;  %v1063_v43 = vor.u32 1.1754944e-38, %v1062_v41 }
 0x20b   :  { %v4769_v24 = vpop.eup %4768  ;;  %v1040_v56 = vadd.f32 %v4765_v27, %v1039_v45 }
 0x20c   :  { %v1035_v61 = vadd.f32 1.0, %v4769_v24  ;;  %v1055_v42 = vadd.f32 %v4767_v60, %v1054_v57  ;;  %v4771_v45 = vpop.eup %4770 }
 0x20d   :  { %1746 = vmatpush.bf16.msrb.mxu3 %v5489_v39  ;;  %1721 = vmatpush.bf16.msrb.mxu1 %v5497_v50  ;;  %v1044_v11 = vsel %vm1043_vm11, %v4765_v27, %v1040_v56  ;;  %v1048_v50 = vor.u32 1.1754944e-38, %v1047_v21 }
 0x20e   :  { %4772 = vrcp.f32 %v1035_v61  ;;  %vm1071_vm1 = vweird.f32 %v1035_v61 }
 0x20f   :  { %v1049_v24 = vsel %vm1046_vm14, %v1048_v50, %v1044_v11 }
 0x210   :  { %v1083_v31 = vmul.f32 %v4771_v45, %v1049_v24  ;;  %v7247_v24 = vld [vmem:[#allocation37_spill] sm:$0xff] }
 0x211   :  { %1747 = vmatpush.bf16.msrb.mxu3 %v5499_v53  ;;  %1722 = vmatpush.bf16.msrb.mxu1 %v5507_v0  ;;  %v1059_v53 = vsel %vm1058_vm13, %v4767_v60, %v1055_v42 }
 0x212   :  { %v1064_v57 = vsel %vm1061_vm15, %v1063_v43, %v1059_v53  ;;  %v1075_v53 = vand.u32 2147483647, %v1035_v61 }
 0x213   :  { %v1082_v27 = vmul.f32 %v1064_v57, %v804_v16  ;;  %v7248_v57 = vld [vmem:[#allocation85_spill] sm:$0xff] }
 0x214   :  { %v4773_v41 = vpop.eup %4772  ;;  %vm1076_vm3 = vcmp.eq.f32.partialorder %v1075_v53, 8.507059e+37  ;;  %v7255_v53 = vld [vmem:[#allocation96_spill] sm:$0xff] }
 0x215   :  { %1748 = vmatpush.bf16.msrb.mxu3 %v5509_v3  ;;  %1723 = vmatpush.bf16.msrb.mxu1 %v5517_v18  ;;  %v5820_v21 = vadd.f32 %v1083_v31, %v1082_v27  ;;  %v1067_v56 = vmul.f32 %v4773_v41, %v1035_v61  ;;  %v1077_v3 = vand.u32 2147483648, %v1035_v61  ;;  %vm1072_vm0 = vweird.f32 %v4773_v41  ;;  %v7246_v61 = vld [vmem:[#allocation23_spill] sm:$0xff]  ;;  %v7249_v31 = vld [vmem:[#allocation25_spill] sm:$0xff]  ;;  %v7250_v27 = vld [vmem:[#allocation38_spill] sm:$0xff] }
 0x216   :  { %vm1073_vm2 = vmor %vm1071_vm1, %vm1072_vm0 }
 0x217   :  { %v1068_v1 = vsub.f32 1.0, %v1067_v56  ;;  %4774 = vtanh.f32 %v5820_v21  ;;  %v1078_v6 = vor.u32 1.1754944e-38, %v1077_v3  ;;  %v7245_v3 = vld [vmem:[#allocation80_spill] sm:$0xff]  ;;  %v7252_v56 = vld [vmem:[#allocation93_spill] sm:$0xff] }
 0x219   :  { %1749 = vmatpush.bf16.msrb.mxu3 %v5519_v25  ;;  %1724 = vmatpush.bf16.msrb.mxu1 %v5530_v44  ;;  %v1069_v50 = vmul.f32 %v4773_v41, %v1068_v1  ;;  %v7253_v1 = vld [vmem:[#allocation27_spill] sm:$0xff] }
 0x21b   :  { %v1070_v60 = vadd.f32 %v4773_v41, %v1069_v50  ;;  %v7254_v50 = vld [vmem:[#allocation40_spill] sm:$0xff] }
 0x21d   :  { %1750 = vmatpush.bf16.msrb.mxu3 %v5536_v59  ;;  %1725 = vmatpush.bf16.msrb.mxu1 %v5546_v28  ;;  %v1074_v42 = vsel %vm1073_vm2, %v4773_v41, %v1070_v60  ;;  %v4775_v11 = vpop.eup %4774  ;;  %v7251_v41 = vld [vmem:[#allocation90_spill] sm:$0xff]  ;;  %v7256_v60 = vld [vmem:[#allocation97_spill] sm:$0xff] }
 0x21e   :  { %v1079_v43 = vsel %vm1076_vm3, %v1078_v6, %v1074_v42  ;;  %v7257_v6 = vld [vmem:[#allocation29_spill] sm:$0xff]  ;;  %v7258_v42 = vld [vmem:[#allocation42_spill] sm:$0xff] }
 0x21f   :  { %v1086_v16 = vmul.f32 %v4775_v11, %v1079_v43  ;;  %v7259_v11 = vld [vmem:[#allocation102_spill] sm:$0xff]  ;;  %v7260_v43 = vld [vmem:[#allocation103_spill] sm:$0xff] }
 0x221   :  { %1751 = vmatpush.bf16.msrb.mxu3 %v5548_v38  ;;  %1726 = vmatpush.bf16.msrb.mxu1 %v5562_v17  ;;  %v1087_v45 = vpack.c.bf16 %v1086_v16, %v1086_v16  ;;  %v7261_v16 = vld [vmem:[#allocation31_spill] sm:$0xff] }
 0x223   :  { %1426 = vmatmul.bf16.vlgmr.msra.gmra.mxu0 %v1087_v45  ;;  %1452 = vmatmul.bf16.vlgmr.msra.gmra.mxu2 %v1087_v45 }
 0x224   :  { %1607 = vmatmul.bf16.vlgmr.msra.gmra.mxu1 %v1087_v45  ;;  %1633 = vmatmul.bf16.vlgmr.msra.gmra.mxu3 %v1087_v45 }
 0x225   :  { %1752 = vmatpush.bf16.msrb.mxu3 %v5564_v29  ;;  %1727 = vmatpush.bf16.msrb.mxu1 %v5574_v63  ;;  %v7280_v63 = vld [vmem:[#allocation112_spill] sm:$0xff] }
 0x226   :  { %1586 = vmatpush.bf16.msra.mxu0 %v5388_v7  ;;  %1612 = vmatpush.bf16.msra.mxu2 %v5434_v8 }
 0x229   :  { %1753 = vmatpush.bf16.msrb.mxu3 %v5576_v4  ;;  %1772 = vmatpush.bf16.msra.mxu1 %v5579_v35  ;;  %v7275_v35 = vld [vmem:[#allocation100_spill] sm:$0xff]  ;;  %v7276_v4 = vld [vmem:[#allocation101_spill] sm:$0xff] }
 0x22a   :  { %1587 = vmatpush.bf16.msra.mxu0 %v5393_v13  ;;  %1613 = vmatpush.bf16.msra.mxu2 %v5442_v22 }
 0x22d   :  { %1798 = vmatpush.bf16.msra.mxu3 %v5587_v2  ;;  %1773 = vmatpush.bf16.msra.mxu1 %v5596_v54  ;;  %v7273_v54 = vld [vmem:[#allocation94_spill] sm:$0xff]  ;;  %v7274_v2 = vld [vmem:[#allocation95_spill] sm:$0xff] }
 0x22e   :  { %1588 = vmatpush.bf16.msra.mxu0 %v7246_v61  ;;  %1614 = vmatpush.bf16.msra.mxu2 %v7247_v24 }
 0x231   :  { %1799 = vmatpush.bf16.msra.mxu3 %v7245_v3  ;;  %1774 = vmatpush.bf16.msra.mxu1 %v5610_v48  ;;  %v7265_v48 = vld [vmem:[#allocation33_spill] sm:$0xff] }
 0x232   :  { %1589 = vmatpush.bf16.msra.mxu0 %v7249_v31  ;;  %1615 = vmatpush.bf16.msra.mxu2 %v7250_v27  ;;  %v7268_v3 = vld [vmem:[#allocation77_spill] sm:$0xff] }
 0x233   :  { %1478 = vmatmul.bf16.vlgmr.msrb.gmra.mxu0 %v1087_v45  ;;  %1504 = vmatmul.bf16.vlgmr.msrb.gmra.mxu2 %v1087_v45 }
 0x235   :  { %1800 = vmatpush.bf16.msra.mxu3 %v7248_v57  ;;  %1775 = vmatpush.bf16.msra.mxu1 %v7251_v41  ;;  %v7263_v41 = vld [vmem:[#allocation108_spill] sm:$0xff]  ;;  %v7264_v57 = vld [vmem:[#allocation109_spill] sm:$0xff] }
 0x236   :  { %1590 = vmatpush.bf16.msra.mxu0 %v7253_v1  ;;  %1616 = vmatpush.bf16.msra.mxu2 %v7254_v50 }
 0x239   :  { %1801 = vmatpush.bf16.msra.mxu3 %v7252_v56  ;;  %1776 = vmatpush.bf16.msra.mxu1 %v7255_v53  ;;  %v7262_v56 = vld [vmem:[#allocation44_spill] sm:$0xff]  ;;  %v7266_v53 = vld [vmem:[#allocation45_spill] sm:$0xff] }
 0x23a   :  { %1591 = vmatpush.bf16.msra.mxu0 %v7257_v6  ;;  %1617 = vmatpush.bf16.msra.mxu2 %v7258_v42 }
 0x23d   :  { %1802 = vmatpush.bf16.msra.mxu3 %v7256_v60  ;;  %1777 = vmatpush.bf16.msra.mxu1 %v7259_v11  ;;  %v7267_v60 = vld [vmem:[#allocation70_spill] sm:$0xff]  ;;  %v7270_v11 = vld [vmem:[#allocation83_spill] sm:$0xff] }
 0x23e   :  { %1592 = vmatpush.bf16.msra.mxu0 %v7261_v16  ;;  %1618 = vmatpush.bf16.msra.mxu2 %v7262_v56 }
 0x241   :  { %1803 = vmatpush.bf16.msra.mxu3 %v7260_v43  ;;  %1778 = vmatpush.bf16.msra.mxu1 %v7263_v41  ;;  %v7269_v43 = vld [vmem:[#allocation78_spill] sm:$0xff]  ;;  %v7271_v41 = vld [vmem:[#allocation88_spill] sm:$0xff] }
 0x242   :  { %1593 = vmatpush.bf16.msra.mxu0 %v7265_v48  ;;  %1619 = vmatpush.bf16.msra.mxu2 %v7266_v53 }
 0x245   :  { %1804 = vmatpush.bf16.msra.mxu3 %v7264_v57  ;;  %1779 = vmatpush.bf16.msra.mxu1 %v5702_v34  ;;  %v7272_v57 = vld [vmem:[#allocation89_spill] sm:$0xff]  ;;  %v7277_v34 = vld [vmem:[#allocation106_spill] sm:$0xff] }
 0x246   :  { %1707 = vmatpush.bf16.msrb.mxu0 %v7267_v60  ;;  %1733 = vmatpush.bf16.msrb.mxu2 %v7268_v3 }
 0x247   :  { %1594 = vmatmul.bf16.vlgmr.msra.gmra.mxu0 %v1087_v45  ;;  %1620 = vmatmul.bf16.vlgmr.msra.gmra.mxu2 %v1087_v45  ;;  %v5875_v45 = vpop.f32.mrf.mxu1 }
 0x248   :  { %7279 = vst [vmem:[#allocation23_spill] sm:$0xff] %v5875_v45 }
 0x249   :  { %1805 = vmatpush.bf16.msra.mxu3 %v5704_v14  ;;  %v7278_v14 = vld [vmem:[#allocation107_spill] sm:$0xff] }
 0x24a   :  { %1708 = vmatpush.bf16.msrb.mxu0 %v7269_v43  ;;  %1734 = vmatpush.bf16.msrb.mxu2 %v7270_v11  ;;  %v7281_v11 = vld [vmem:[#allocation113_spill] sm:$0xff] }
 0x24e   :  { %1709 = vmatpush.bf16.msrb.mxu0 %v7271_v41  ;;  %1735 = vmatpush.bf16.msrb.mxu2 %v7272_v57 }
 0x252   :  { %1710 = vmatpush.bf16.msrb.mxu0 %v7273_v54  ;;  %1736 = vmatpush.bf16.msrb.mxu2 %v7274_v2 }
 0x256   :  { %1711 = vmatpush.bf16.msrb.mxu0 %v7275_v35  ;;  %1737 = vmatpush.bf16.msrb.mxu2 %v7276_v4 }
 0x25a   :  { %1712 = vmatpush.bf16.msrb.mxu0 %v7277_v34  ;;  %1738 = vmatpush.bf16.msrb.mxu2 %v7278_v14  ;;  %v7282_v34 = vld [vmem:[#allocation123_spill] sm:$0xff] }
 0x25e   :  { %1713 = vmatpush.bf16.msrb.mxu0 %v7280_v63  ;;  %1739 = vmatpush.bf16.msrb.mxu2 %v7281_v11 }
 0x262   :  { %1714 = vmatpush.bf16.msrb.mxu0 %v5710_v15  ;;  %1740 = vmatpush.bf16.msrb.mxu2 %v5714_v62  ;;  %v7287_v62 = vld [vmem:[#allocation53_spill] sm:$0xff] }
 0x264   :  { %v1440_v35 = vpop.f32.mrf.mxu1 }
 0x266   :  { %1759 = vmatpush.bf16.msra.mxu0 %v5716_v36  ;;  %1785 = vmatpush.bf16.msra.mxu2 %v5724_v32 }
 0x26a   :  { %1760 = vmatpush.bf16.msra.mxu0 %v5730_v51  ;;  %1786 = vmatpush.bf16.msra.mxu2 %v7282_v34  ;;  %v1466_v45 = vpop.f32.mrf.mxu3  ;;  %v7286_v51 = vld [vmem:[#allocation63_spill] sm:$0xff] }
 0x26b   :  { %v629_v15 = vadd.f32 %v7287_v62, %v7286_v51 }
 0x26c   :  { %v1442_v63 = vpop.f32.mrf.mxu1 }
 0x26e   :  { %1761 = vmatpush.bf16.msra.mxu0 %v5742_v30  ;;  %1787 = vmatpush.bf16.msra.mxu2 %v5745_v23 }
 0x272   :  { %1762 = vmatpush.bf16.msra.mxu0 %v5750_v40  ;;  %1788 = vmatpush.bf16.msra.mxu2 %v5753_v5  ;;  %v1468_v32 = vpop.f32.mrf.mxu3 }
 0x273   :  { %v800_v32 = vld [vmem:[%s6917_s6] sm:$0xf] }
 0x274   :  { %v1492_v36 = vpop.f32.mrf.mxu1  ;;  %v5905_v40 = vperm.slane %v800_v32, 1 }
 0x276   :  { %1763 = vmatpush.bf16.msra.mxu0 %v5760_v46  ;;  %1789 = vmatpush.bf16.msra.mxu2 %v5763_v10  ;;  %v5897_v46 = vpop.f32.mrf.mxu0  ;;  %7285 = vst [vmem:[#allocation38_spill] sm:$0xff] %v5905_v40 }
 0x277   :  { %7283 = vst [vmem:[#allocation37_spill] sm:$0xff] %v5897_v46 }
 0x27a   :  { %1764 = vmatpush.bf16.msra.mxu0 %v5768_v58  ;;  %1790 = vmatpush.bf16.msra.mxu2 %v5773_v12  ;;  %v1518_v23 = vpop.f32.mrf.mxu3  ;;  %v5902_v58 = vperm.slane %v800_v32, 0 }
 0x27c   :  { %v1494_v63 = vpop.f32.mrf.mxu1  ;;  %7284 = vst [vmem:[#allocation25_spill] sm:$0xff] %v5902_v58 }
 0x27e   :  { %1765 = vmatpush.bf16.msra.mxu0 %v5785_v55  ;;  %1791 = vmatpush.bf16.msra.mxu2 %v5788_v49 }
 0x282   :  { %1766 = vmatpush.bf16.msra.mxu0 %v5793_v33  ;;  %1792 = vmatpush.bf16.msra.mxu2 %v5797_v19  ;;  %v1520_v5 = vpop.f32.mrf.mxu3 }
 0x2a0   :  { %v1427_v12 = vpop.f32.mrf.mxu0 }
 0x2a1   :  { %v1428_v55 = vadd.f32 %v1427_v12, %v5902_v58  ;;  %v1608_v10 = vpop.f32.mrf.mxu1 }
 0x2a2   :  { %v1639_v14 = vadd.f32 %v1608_v10, %v629_v15 }
 0x2a3   :  { %v1441_v49 = vadd.f32 %v1440_v35, %v1428_v55  ;;  %v5912_v35 = vperm.slane %v800_v32, 2 }
 0x2a5   :  { %v4456_v63 = vmul.f32 -1.442695, %v1441_v49  ;;  %7288 = vst [vmem:[#allocation27_spill] sm:$0xff] %v5912_v35 }
 0x2a6   :  { %v1453_v33 = vpop.f32.mrf.mxu2 }
 0x2a7   :  { %4776 = vpow2.f32 %v4456_v63  ;;  %v1454_v5 = vadd.f32 %v1453_v33, %v5905_v40  ;;  %v5908_v19 = vpop.f32.mrf.mxu3  ;;  %v4460_v63 = vmul.f32 -1.442695, %v1639_v14 }
 0x2a8   :  { %v1429_v46 = vpop.f32.mrf.mxu0 }
 0x2a9   :  { %v1467_v30 = vadd.f32 %v1466_v45, %v1454_v5  ;;  %v1610_v34 = vpop.f32.mrf.mxu1 }
 0x2aa   :  { %v5915_v34 = vperm.slane %v800_v32, 3 }
 0x2ab   :  { %v4457_v11 = vmul.f32 -1.442695, %v1467_v30 }
 0x2ac   :  { %7289 = vst [vmem:[#allocation40_spill] sm:$0xff] %v5915_v34 }
 0x2ad   :  { %v4777_v12 = vpop.eup %4776  ;;  %4778 = vpow2.f32 %v4457_v11 }
 0x2ae   :  { %v1531_v55 = vadd.f32 1.0, %v4777_v12  ;;  %v1455_v49 = vpop.f32.mrf.mxu2 }
 0x2af   :  { %v1636_v58 = vpop.f32.mrf.mxu3 }
 0x2b0   :  { %4780 = vrcp.f32 %v1531_v55  ;;  %v1479_v33 = vpop.f32.mrf.mxu0  ;;  %v1545_v51 = vand.u32 2147483648, %v1531_v55  ;;  %vm1539_vm5 = vweird.f32 %v1531_v55 }
 0x2b1   :  { %v1480_v40 = vadd.f32 %v1479_v33, %v5912_v35  ;;  %4782 = vpow2.f32 %v4460_v63 }
 0x2b3   :  { %v4779_v46 = vpop.eup %4778  ;;  %v1493_v45 = vadd.f32 %v1492_v36, %v1480_v40  ;;  %v1543_v36 = vand.u32 2147483647, %v1531_v55 }
 0x2b4   :  { %v1532_v62 = vadd.f32 1.0, %v4779_v46 }
 0x2b5   :  { %v4458_v30 = vmul.f32 -1.442695, %v1493_v45  ;;  %vm1544_vm7 = vcmp.eq.f32.partialorder %v1543_v36, 8.507059e+37  ;;  %v4068_v36 = vld [vmem:[%s6921_s10 + $0x8] sm:$0xff] }
 0x2b6   :  { %v4781_v15 = vpop.eup %4780  ;;  %4784 = vrcp.f32 %v1532_v62  ;;  %v1505_v10 = vpop.f32.mrf.mxu2  ;;  %vm1554_vm9 = vweird.f32 %v1532_v62 }
 0x2b7   :  { %v1535_v11 = vmul.f32 %v4781_v15, %v1531_v55  ;;  %4786 = vpow2.f32 %v4458_v30  ;;  %v1506_v5 = vadd.f32 %v1505_v10, %v5915_v34  ;;  %v4783_v49 = vpop.eup %4782  ;;  %vm1540_vm4 = vweird.f32 %v4781_v15 }
 0x2b8   :  { %v1481_v58 = vpop.f32.mrf.mxu0  ;;  %v5918_v63 = vadd.f32 1.0, %v4783_v49  ;;  %vm1541_vm6 = vmor %vm1539_vm5, %vm1540_vm4  ;;  %v1546_v30 = vor.u32 1.1754944e-38, %v1545_v51  ;;  %v1560_v34 = vand.u32 2147483648, %v1532_v62 }
 0x2b9   :  { %v1536_v12 = vsub.f32 1.0, %v1535_v11  ;;  %v1519_v14 = vadd.f32 %v1518_v23, %v1506_v5  ;;  %v7290_v23 = vld [vmem:[#allocation62_spill] sm:$0xff]  ;;  %v7291_v5 = vld [vmem:[#allocation52_spill] sm:$0xff] }
 0x2ba   :  { %vm1674_vm1 = vweird.f32 %v5918_v63 }
 0x2bb   :  { %v1537_v33 = vmul.f32 %v4781_v15, %v1536_v12  ;;  %4788 = vtanh.f32 %v1519_v14  ;;  %v600_v12 = vadd.f32 %v7291_v5, %v7290_v23 }
 0x2bc   :  { %v4785_v40 = vpop.eup %4784 }
 0x2bd   :  { %v4787_v32 = vpop.eup %4786  ;;  %v1550_v46 = vmul.f32 %v4785_v40, %v1532_v62  ;;  %v1538_v45 = vadd.f32 %v4781_v15, %v1537_v33  ;;  %vm1555_vm8 = vweird.f32 %v4785_v40  ;;  %v1558_v33 = vand.u32 2147483647, %v1532_v62 }
 0x2be   :  { %v1533_v35 = vadd.f32 1.0, %v4787_v32  ;;  %v1507_v10 = vpop.f32.mrf.mxu2  ;;  %vm1556_vm10 = vmor %vm1554_vm9, %vm1555_vm8 }
 0x2bf   :  { %v1551_v58 = vsub.f32 1.0, %v1550_v46  ;;  %v1542_v11 = vsel %vm1541_vm6, %v4781_v15, %v1538_v45  ;;  %v1561_v15 = vor.u32 1.1754944e-38, %v1560_v34  ;;  %vm1559_vm11 = vcmp.eq.f32.partialorder %v1558_v33, 8.507059e+37  ;;  %v7292_v10 = vld [vmem:[#allocation49_spill] sm:$0xff] }
 0x2c0   :  { %4790 = vrcp.f32 %v1533_v35  ;;  %v1547_v14 = vsel %vm1544_vm7, %v1546_v30, %v1542_v11  ;;  %vm1569_vm13 = vweird.f32 %v1533_v35 }
 0x2c1   :  { %v4789_v4 = vpop.eup %4788  ;;  %4792 = vrcp.f32 %v5918_v63  ;;  %v1552_v49 = vmul.f32 %v4785_v40, %v1551_v58  ;;  %v658_v58 = vadd.f32 %v7292_v10, %v5532_v47 }
 0x2c2   :  { %v1581_v32 = vmul.f32 %v4789_v4, %v1547_v14 }
 0x2c3   :  { %v1553_v51 = vadd.f32 %v4785_v40, %v1552_v49 }
 0x2c4   :  { %v1595_v55 = vpop.f32.mrf.mxu0 }
 0x2c5   :  { %v1638_v2 = vadd.f32 %v1595_v55, %v600_v12  ;;  %v1557_v45 = vsel %vm1556_vm10, %v4785_v40, %v1553_v51  ;;  %v1575_v51 = vand.u32 2147483648, %v1533_v35 }
 0x2c6   :  { %v4791_v30 = vpop.eup %4790  ;;  %v1562_v11 = vsel %vm1559_vm11, %v1561_v15, %v1557_v45 }
 0x2c7   :  { %v4459_v46 = vmul.f32 -1.442695, %v1638_v2  ;;  %v5928_v5 = vpop.eup %4792  ;;  %v1565_v4 = vmul.f32 %v4791_v30, %v1533_v35  ;;  %v1580_v62 = vmul.f32 %v4068_v36, %v1562_v11  ;;  %vm1570_vm12 = vweird.f32 %v4791_v30 }
 0x2c8   :  { %v1670_v2 = vmul.f32 %v5928_v5, %v5918_v63  ;;  %vm1571_vm14 = vmor %vm1569_vm13, %vm1570_vm12  ;;  %vm1675_vm0 = vweird.f32 %v5928_v5 }
 0x2c9   :  { %4794 = vpow2.f32 %v4459_v46  ;;  %v1566_v34 = vsub.f32 1.0, %v1565_v4  ;;  %v5930_v49 = vadd.f32 %v1581_v32, %v1580_v62  ;;  %v1573_v46 = vand.u32 2147483647, %v1533_v35  ;;  %vm5950_vm2 = vmor %vm1674_vm1, %vm1675_vm0 }
 0x2ca   :  { %v1621_v12 = vpop.f32.mrf.mxu2  ;;  %v1671_v10 = vsub.f32 1.0, %v1670_v2 }
 0x2cb   :  { %v1640_v14 = vadd.f32 %v1621_v12, %v658_v58  ;;  %4796 = vtanh.f32 %v5930_v49  ;;  %v1567_v33 = vmul.f32 %v4791_v30, %v1566_v34  ;;  %v1576_v58 = vor.u32 1.1754944e-38, %v1575_v51 }
 0x2cc   :  { %v1597_v55 = vpop.f32.mrf.mxu0  ;;  %vm1574_vm15 = vcmp.eq.f32.partialorder %v1573_v46, 8.507059e+37  ;;  %v1680_v46 = vand.u32 2147483648, %v5918_v63 }
 0x2cd   :  { %v4461_v40 = vmul.f32 -1.442695, %v1640_v14  ;;  %v1568_v36 = vadd.f32 %v4791_v30, %v1567_v33  ;;  %v1672_v14 = vmul.f32 %v5928_v5, %v1671_v10  ;;  %v7294_v55 = vld [vmem:[#allocation50_spill] sm:$0xff]  ;;  %v7296_v10 = vld [vmem:[#allocation35_spill] sm:$0xff] }
 0x2cf   :  { %v4795_v15 = vpop.eup %4794  ;;  %4798 = vpow2.f32 %v4461_v40  ;;  %v1572_v11 = vsel %vm1571_vm14, %v4791_v30, %v1568_v36  ;;  %v687_v40 = vadd.f32 %v7294_v55, %v5534_v52  ;;  %v1673_v30 = vadd.f32 %v5928_v5, %v1672_v14  ;;  %v7295_v36 = vld [vmem:[#allocation21_spill] sm:$0xff] }
 0x2d0   :  { %v1651_v45 = vadd.f32 1.0, %v4795_v15  ;;  %v1577_v62 = vsel %vm1574_vm15, %v1576_v58, %v1572_v11  ;;  %v1681_v55 = vor.u32 1.1754944e-38, %v1680_v46 }
 0x2d1   :  { %v4797_v4 = vpop.eup %4796  ;;  %v1641_v33 = vadd.f32 %v5908_v19, %v687_v40  ;;  %v7299_v40 = vld [vmem:[#allocation22_spill] sm:$0xff] }
 0x2d2   :  { %4800 = vrcp.f32 %v1651_v45  ;;  %v1623_v32 = vpop.f32.mrf.mxu2  ;;  %v5936_v34 = vmul.f32 %v4797_v4, %v1577_v62  ;;  %v1665_v11 = vand.u32 2147483648, %v1651_v45  ;;  %v1677_v4 = vsel %vm5950_vm2, %v5928_v5, %v1673_v30 }
 0x2d3   :  { %v1678_v32 = vand.u32 2147483647, %v5918_v63  ;;  %vm1659_vm5 = vweird.f32 %v1651_v45 }
 0x2d4   :  { %7293 = vst [vmem:[#allocation53_spill] sm:$0xff] %v5936_v34  ;;  %v1706_v35 = vpack.c.bf16 %v5936_v34, %v5936_v34  ;;  %v7300_v34 = vld [vmem:[#allocation36_spill] sm:$0xff] }
 0x2d5   :  { %v4799_v12 = vpop.eup %4798  ;;  %vm1679_vm4 = vcmp.eq.f32.partialorder %v1678_v32, 8.507059e+37 }
 0x2d6   :  { %v1653_v15 = vadd.f32 1.0, %v4799_v12  ;;  %1728 = vmatmul.bf16.vlgmr.msrb.gmra.mxu1 %v1706_v35  ;;  %1754 = vmatmul.bf16.vlgmr.msrb.gmra.mxu3 %v1706_v35  ;;  %v1663_v12 = vand.u32 2147483647, %v1651_v45  ;;  %v1682_v52 = vsel %vm1679_vm4, %v1681_v55, %v1677_v4  ;;  %v7302_v4 = vld [vmem:[#allocation26_spill] sm:$0xff] }
 0x2d7   :  { %1888 = vmatpush.bf16.msrb.mxu1 %v7295_v36  ;;  %1914 = vmatpush.bf16.msrb.mxu3 %v7296_v10  ;;  %v1700_v46 = vmul.f32 %v1682_v52, %v5820_v21  ;;  %v7304_v52 = vld [vmem:[#allocation28_spill] sm:$0xff]  ;;  %v7305_v21 = vld [vmem:[#allocation41_spill] sm:$0xff] }
 0x2d8   :  { %v4801_v2 = vpop.eup %4800  ;;  %4802 = vrcp.f32 %v1653_v15  ;;  %vm1664_vm7 = vcmp.eq.f32.partialorder %v1663_v12, 8.507059e+37  ;;  %vm1689_vm9 = vweird.f32 %v1653_v15 }
 0x2d9   :  { %v1655_v51 = vmul.f32 %v4801_v2, %v1651_v45  ;;  %4804 = vtanh.f32 %v1641_v33  ;;  %vm1660_vm3 = vweird.f32 %v4801_v2  ;;  %v1666_v33 = vor.u32 1.1754944e-38, %v1665_v11  ;;  %v7303_v11 = vld [vmem:[#allocation39_spill] sm:$0xff] }
 0x2da   :  { %vm1661_vm6 = vmor %vm1659_vm5, %vm1660_vm3 }
 0x2db   :  { %v1656_v58 = vsub.f32 1.0, %v1655_v51  ;;  %1889 = vmatpush.bf16.msrb.mxu1 %v7299_v40  ;;  %1915 = vmatpush.bf16.msrb.mxu3 %v7300_v34 }
 0x2dd   :  { %v1657_v62 = vmul.f32 %v4801_v2, %v1656_v58  ;;  %v7301_v58 = vld [vmem:[#allocation24_spill] sm:$0xff] }
 0x2de   :  { %v4803_v14 = vpop.eup %4802 }
 0x2df   :  { %v1658_v63 = vadd.f32 %v4801_v2, %v1657_v62  ;;  %v1685_v51 = vmul.f32 %v4803_v14, %v1653_v15  ;;  %v4805_v5 = vpop.eup %4804  ;;  %1890 = vmatpush.bf16.msrb.mxu1 %v7301_v58  ;;  %1916 = vmatpush.bf16.msrb.mxu3 %v5450_v26  ;;  %vm1690_vm8 = vweird.f32 %v4803_v14 }
 0x2e0   :  { %vm1691_vm10 = vmor %vm1689_vm9, %vm1690_vm8 }
 0x2e1   :  { %v1662_v47 = vsel %vm1661_vm6, %v4801_v2, %v1658_v63  ;;  %v1686_v19 = vsub.f32 1.0, %v1685_v51  ;;  %v1695_v2 = vand.u32 2147483648, %v1653_v15  ;;  %v7306_v63 = vld [vmem:[#allocation30_spill] sm:$0xff]  ;;  %v7307_v51 = vld [vmem:[#allocation43_spill] sm:$0xff] }
 0x2e2   :  { %v1667_v30 = vsel %vm1664_vm7, %v1666_v33, %v1662_v47  ;;  %v1693_v47 = vand.u32 2147483647, %v1653_v15  ;;  %v7308_v15 = vld [vmem:[#allocation32_spill] sm:$0xff] }
 0x2e3   :  { %v1701_v23 = vmul.f32 %v4805_v5, %v1667_v30  ;;  %v1687_v34 = vmul.f32 %v4803_v14, %v1686_v19  ;;  %1891 = vmatpush.bf16.msrb.mxu1 %v7302_v4  ;;  %1917 = vmatpush.bf16.msrb.mxu3 %v7303_v11  ;;  %v7311_v19 = vld [vmem:[#allocation47_spill] sm:$0xff]  ;;  %v7312_v5 = vld [vmem:[#allocation48_spill] sm:$0xff] }
 0x2e4   :  { %vm1694_vm11 = vcmp.eq.f32.partialorder %v1693_v47, 8.507059e+37  ;;  %v7313_v30 = vld [vmem:[#allocation71_spill] sm:$0xff]  ;;  %v7317_v47 = vld [vmem:[#allocation76_spill] sm:$0xff] }
 0x2e5   :  { %v5962_v32 = vadd.f32 %v1701_v23, %v1700_v46  ;;  %v1688_v45 = vadd.f32 %v4803_v14, %v1687_v34  ;;  %v1696_v23 = vor.u32 1.1754944e-38, %v1695_v2  ;;  %v7314_v46 = vld [vmem:[#allocation83_spill] sm:$0xff]  ;;  %v7316_v2 = vld [vmem:[#allocation73_spill] sm:$0xff] }
 0x2e6   :  { %1780 = vmatmul.bf16.vlgmr.msra.gmra.mxu1 %v1706_v35  ;;  %1806 = vmatmul.bf16.vlgmr.msra.gmra.mxu3 %v1706_v35  ;;  %v7309_v35 = vld [vmem:[#allocation34_spill] sm:$0xff] }
 0x2e7   :  { %4806 = vtanh.f32 %v5962_v32  ;;  %v1692_v62 = vsel %vm1691_vm10, %v4803_v14, %v1688_v45  ;;  %1892 = vmatpush.bf16.msrb.mxu1 %v7304_v52  ;;  %1918 = vmatpush.bf16.msrb.mxu3 %v7305_v21  ;;  %v7310_v14 = vld [vmem:[#allocation46_spill] sm:$0xff]  ;;  %v7315_v45 = vld [vmem:[#allocation72_spill] sm:$0xff] }
 0x2e8   :  { %v1697_v12 = vsel %vm1694_vm11, %v1696_v23, %v1692_v62  ;;  %v7318_v62 = vld [vmem:[#allocation79_spill] sm:$0xff]  ;;  %v7319_v23 = vld [vmem:[#allocation80_spill] sm:$0xff] }
 0x2eb   :  { %1893 = vmatpush.bf16.msrb.mxu1 %v7306_v63  ;;  %1919 = vmatpush.bf16.msrb.mxu3 %v7307_v51 }
 0x2ed   :  { %v4807_v34 = vpop.eup %4806 }
 0x2ee   :  { %v1704_v55 = vmul.f32 %v4807_v34, %v1697_v12  ;;  %v7320_v34 = vld [vmem:[#allocation95_spill] sm:$0xff]  ;;  %v7321_v12 = vld [vmem:[#allocation84_spill] sm:$0xff] }
 0x2ef   :  { %1894 = vmatpush.bf16.msrb.mxu1 %v7308_v15  ;;  %1920 = vmatpush.bf16.msrb.mxu3 %v5474_v9 }
 0x2f0   :  { %v1705_v33 = vpack.c.bf16 %v1704_v55, %v1704_v55  ;;  %v7322_v55 = vld [vmem:[#allocation85_spill] sm:$0xff] }
 0x2f2   :  { %1715 = vmatmul.bf16.vlgmr.msrb.gmra.mxu0 %v1705_v33  ;;  %1741 = vmatmul.bf16.vlgmr.msrb.gmra.mxu2 %v1705_v33 }
 0x2f3   :  { %1875 = vmatpush.bf16.msrb.mxu0 %v5388_v7  ;;  %1901 = vmatpush.bf16.msrb.mxu2 %v5434_v8 }
 0x2f4   :  { %1895 = vmatpush.bf16.msrb.mxu1 %v7309_v35  ;;  %1921 = vmatpush.bf16.msrb.mxu3 %v5480_v20 }
 0x2f7   :  { %1876 = vmatpush.bf16.msrb.mxu0 %v5393_v13  ;;  %1902 = vmatpush.bf16.msrb.mxu2 %v5442_v22 }
 0x2f8   :  { %2009 = vmatpush.bf16.msra.mxu1 %v5487_v37  ;;  %2035 = vmatpush.bf16.msra.mxu3 %v5489_v39 }
 0x2f9   :  { %1896 = vmatmul.bf16.vlgmr.msrb.gmra.mxu1 %v1705_v33  ;;  %1922 = vmatmul.bf16.vlgmr.msrb.gmra.mxu3 %v1705_v33 }
 0x2fb   :  { %1877 = vmatpush.bf16.msrb.mxu0 %v7246_v61  ;;  %1903 = vmatpush.bf16.msrb.mxu2 %v7247_v24 }
 0x2fc   :  { %2010 = vmatpush.bf16.msra.mxu1 %v7310_v14  ;;  %2036 = vmatpush.bf16.msra.mxu3 %v7311_v19 }
 0x2ff   :  { %1878 = vmatpush.bf16.msrb.mxu0 %v7249_v31  ;;  %1904 = vmatpush.bf16.msrb.mxu2 %v7250_v27 }
 0x300   :  { %2011 = vmatpush.bf16.msra.mxu1 %v5507_v0  ;;  %2037 = vmatpush.bf16.msra.mxu3 %v7312_v5 }
 0x302   :  { %1767 = vmatmul.bf16.vlgmr.msra.gmra.mxu0 %v1705_v33  ;;  %1793 = vmatmul.bf16.vlgmr.msra.gmra.mxu2 %v1705_v33 }
 0x303   :  { %1879 = vmatpush.bf16.msrb.mxu0 %v7253_v1  ;;  %1905 = vmatpush.bf16.msrb.mxu2 %v7254_v50 }
 0x304   :  { %2012 = vmatpush.bf16.msra.mxu1 %v5517_v18  ;;  %2038 = vmatpush.bf16.msra.mxu3 %v5519_v25 }
 0x307   :  { %1880 = vmatpush.bf16.msrb.mxu0 %v7257_v6  ;;  %1906 = vmatpush.bf16.msrb.mxu2 %v7258_v42 }
 0x308   :  { %2013 = vmatpush.bf16.msra.mxu1 %v5530_v44  ;;  %2039 = vmatpush.bf16.msra.mxu3 %v5536_v59 }
 0x30b   :  { %1881 = vmatpush.bf16.msrb.mxu0 %v7261_v16  ;;  %1907 = vmatpush.bf16.msrb.mxu2 %v7262_v56 }
 0x30c   :  { %2014 = vmatpush.bf16.msra.mxu1 %v5546_v28  ;;  %2040 = vmatpush.bf16.msra.mxu3 %v5548_v38 }
 0x30f   :  { %1882 = vmatpush.bf16.msrb.mxu0 %v7265_v48  ;;  %1908 = vmatpush.bf16.msrb.mxu2 %v7266_v53  ;;  %v7359_v48 = vld [vmem:[#allocation65_spill] sm:$0xff] }
 0x310   :  { %2015 = vmatpush.bf16.msra.mxu1 %v5562_v17  ;;  %2041 = vmatpush.bf16.msra.mxu3 %v5564_v29 }
 0x312   :  { %1883 = vmatmul.bf16.vlgmr.msrb.gmra.mxu0 %v1705_v33  ;;  %1909 = vmatmul.bf16.vlgmr.msrb.gmra.mxu2 %v1705_v33  ;;  %v7323_v33 = vld [vmem:[#allocation100_spill] sm:$0xff] }
 0x313   :  { %1996 = vmatpush.bf16.msra.mxu0 %v7267_v60  ;;  %2022 = vmatpush.bf16.msra.mxu2 %v7268_v3 }
 0x314   :  { %2016 = vmatpush.bf16.msra.mxu1 %v7313_v30  ;;  %2042 = vmatpush.bf16.msra.mxu3 %v7315_v45 }
 0x317   :  { %1997 = vmatpush.bf16.msra.mxu0 %v7269_v43  ;;  %2023 = vmatpush.bf16.msra.mxu2 %v7314_v46  ;;  %v7357_v43 = vld [vmem:[#allocation25_spill] sm:$0xff] }
 0x318   :  { %2061 = vmatpush.bf16.msrb.mxu1 %v7316_v2  ;;  %2087 = vmatpush.bf16.msrb.mxu3 %v7317_v47  ;;  %v7324_v2 = vld [vmem:[#allocation101_spill] sm:$0xff]  ;;  %v7325_v47 = vld [vmem:[#allocation90_spill] sm:$0xff] }
 0x31b   :  { %1998 = vmatpush.bf16.msra.mxu0 %v7271_v41  ;;  %2024 = vmatpush.bf16.msra.mxu2 %v7272_v57  ;;  %v7326_v41 = vld [vmem:[#allocation93_spill] sm:$0xff]  ;;  %v7327_v57 = vld [vmem:[#allocation106_spill] sm:$0xff] }
 0x31c   :  { %2062 = vmatpush.bf16.msrb.mxu1 %v7318_v62  ;;  %2088 = vmatpush.bf16.msrb.mxu3 %v7319_v23  ;;  %v7328_v62 = vld [vmem:[#allocation107_spill] sm:$0xff]  ;;  %v7329_v23 = vld [vmem:[#allocation96_spill] sm:$0xff] }
 0x31f   :  { %1999 = vmatpush.bf16.msra.mxu0 %v7273_v54  ;;  %2025 = vmatpush.bf16.msra.mxu2 %v7320_v34  ;;  %v7330_v54 = vld [vmem:[#allocation97_spill] sm:$0xff]  ;;  %v7331_v34 = vld [vmem:[#allocation112_spill] sm:$0xff] }
 0x320   :  { %2063 = vmatpush.bf16.msrb.mxu1 %v7321_v12  ;;  %2089 = vmatpush.bf16.msrb.mxu3 %v7322_v55  ;;  %v7332_v12 = vld [vmem:[#allocation113_spill] sm:$0xff]  ;;  %v7333_v55 = vld [vmem:[#allocation102_spill] sm:$0xff] }
 0x323   :  { %2000 = vmatpush.bf16.msra.mxu0 %v7323_v33  ;;  %2026 = vmatpush.bf16.msra.mxu2 %v7324_v2  ;;  %v7334_v33 = vld [vmem:[#allocation103_spill] sm:$0xff]  ;;  %v7335_v2 = vld [vmem:[#allocation116_spill] sm:$0xff] }
 0x324   :  { %2064 = vmatpush.bf16.msrb.mxu1 %v7325_v47  ;;  %2090 = vmatpush.bf16.msrb.mxu3 %v7326_v41  ;;  %v7336_v47 = vld [vmem:[#allocation117_spill] sm:$0xff]  ;;  %v7337_v41 = vld [vmem:[#allocation118_spill] sm:$0xff] }
 0x327   :  { %2001 = vmatpush.bf16.msra.mxu0 %v7327_v57  ;;  %2027 = vmatpush.bf16.msra.mxu2 %v7328_v62  ;;  %v7338_v57 = vld [vmem:[#allocation108_spill] sm:$0xff]  ;;  %v7339_v62 = vld [vmem:[#allocation121_spill] sm:$0xff] }
 0x328   :  { %2065 = vmatpush.bf16.msrb.mxu1 %v7329_v23  ;;  %2091 = vmatpush.bf16.msrb.mxu3 %v7330_v54  ;;  %v7340_v23 = vld [vmem:[#allocation109_spill] sm:$0xff]  ;;  %v7341_v54 = vld [vmem:[#allocation122_spill] sm:$0xff] }
 0x32b   :  { %2002 = vmatpush.bf16.msra.mxu0 %v7331_v34  ;;  %2028 = vmatpush.bf16.msra.mxu2 %v7332_v12  ;;  %v7342_v34 = vld [vmem:[#allocation114_spill] sm:$0xff]  ;;  %v7343_v12 = vld [vmem:[#allocation123_spill] sm:$0xff] }
 0x32c   :  { %2066 = vmatpush.bf16.msrb.mxu1 %v7333_v55  ;;  %2092 = vmatpush.bf16.msrb.mxu3 %v7334_v33  ;;  %v7344_v55 = vld [vmem:[#allocation115_spill] sm:$0xff]  ;;  %v7345_v33 = vld [vmem:[#allocation124_spill] sm:$0xff] }
 0x32f   :  { %2003 = vmatpush.bf16.msra.mxu0 %v7335_v2  ;;  %2029 = vmatpush.bf16.msra.mxu2 %v7336_v47  ;;  %v7346_v2 = vld [vmem:[#allocation125_spill] sm:$0xff]  ;;  %v7347_v47 = vld [vmem:[#allocation126_spill] sm:$0xff] }
 0x330   :  { %2067 = vmatpush.bf16.msrb.mxu1 %v7338_v57  ;;  %2093 = vmatpush.bf16.msrb.mxu3 %v7340_v23  ;;  %v7349_v57 = vld [vmem:[#allocation128_spill] sm:$0xff]  ;;  %v7351_v23 = vld [vmem:[#allocation130_spill] sm:$0xff] }
 0x333   :  { %2048 = vmatpush.bf16.msrb.mxu0 %v7337_v41  ;;  %2074 = vmatpush.bf16.msrb.mxu2 %v7339_v62  ;;  %v7348_v41 = vld [vmem:[#allocation127_spill] sm:$0xff]  ;;  %v7350_v62 = vld [vmem:[#allocation129_spill] sm:$0xff] }
 0x334   :  { %2068 = vmatpush.bf16.msrb.mxu1 %v7342_v34  ;;  %2094 = vmatpush.bf16.msrb.mxu3 %v7344_v55  ;;  %v7353_v34 = vld [vmem:[#allocation132_spill] sm:$0xff]  ;;  %v7355_v55 = vld [vmem:[#allocation134_spill] sm:$0xff] }
 0x337   :  { %2049 = vmatpush.bf16.msrb.mxu0 %v7341_v54  ;;  %2075 = vmatpush.bf16.msrb.mxu2 %v7343_v12  ;;  %v7352_v54 = vld [vmem:[#allocation131_spill] sm:$0xff]  ;;  %v7354_v12 = vld [vmem:[#allocation133_spill] sm:$0xff] }
 0x33b   :  { %2050 = vmatpush.bf16.msrb.mxu0 %v7345_v33  ;;  %2076 = vmatpush.bf16.msrb.mxu2 %v7346_v2  ;;  %v7356_v33 = vld [vmem:[#allocation135_spill] sm:$0xff] }
 0x33f   :  { %2051 = vmatpush.bf16.msrb.mxu0 %v7347_v47  ;;  %2077 = vmatpush.bf16.msrb.mxu2 %v7348_v41 }
 0x343   :  { %2052 = vmatpush.bf16.msrb.mxu0 %v7349_v57  ;;  %2078 = vmatpush.bf16.msrb.mxu2 %v7350_v62 }
 0x347   :  { %2053 = vmatpush.bf16.msrb.mxu0 %v7351_v23  ;;  %2079 = vmatpush.bf16.msrb.mxu2 %v7352_v54 }
 0x34b   :  { %2054 = vmatpush.bf16.msrb.mxu0 %v7353_v34  ;;  %2080 = vmatpush.bf16.msrb.mxu2 %v7354_v12  ;;  %v7358_v12 = vld [vmem:[#allocation38_spill] sm:$0xff] }
 0x34f   :  { %2055 = vmatpush.bf16.msrb.mxu0 %v7355_v55  ;;  %2081 = vmatpush.bf16.msrb.mxu2 %v7356_v33 }
 0x353   :  { %v1729_v2 = vpop.f32.mrf.mxu1 }
 0x359   :  { %v1755_v47 = vpop.f32.mrf.mxu3 }
 0x35b   :  { %v1731_v45 = vpop.f32.mrf.mxu1 }
 0x361   :  { %v1757_v41 = vpop.f32.mrf.mxu3 }
 0x363   :  { %v1781_v46 = vpop.f32.mrf.mxu1 }
 0x369   :  { %v1807_v57 = vpop.f32.mrf.mxu3 }
 0x36b   :  { %v1783_v30 = vpop.f32.mrf.mxu1 }
 0x36f   :  { %v1716_v62 = vpop.f32.mrf.mxu0 }
 0x370   :  { %v1717_v23 = vadd.f32 %v1716_v62, %v7357_v43 }
 0x371   :  { %v1809_v3 = vpop.f32.mrf.mxu3 }
 0x372   :  { %v1730_v29 = vadd.f32 %v1729_v2, %v1717_v23  ;;  %v7360_v2 = vld [vmem:[#allocation27_spill] sm:$0xff] }
 0x374   :  { %v4462_v54 = vmul.f32 -1.442695, %v1730_v29 }
 0x375   :  { %v1742_v34 = vpop.f32.mrf.mxu2 }
 0x376   :  { %4808 = vpow2.f32 %v4462_v54  ;;  %v1743_v17 = vadd.f32 %v1742_v34, %v7358_v12  ;;  %v1897_v60 = vpop.f32.mrf.mxu1 }
 0x377   :  { %v1718_v55 = vpop.f32.mrf.mxu0  ;;  %v1928_v45 = vadd.f32 %v1897_v60, %v7359_v48 }
 0x378   :  { %v1756_v33 = vadd.f32 %v1755_v47, %v1743_v17  ;;  %v7361_v55 = vld [vmem:[#allocation40_spill] sm:$0xff] }
 0x379   :  { %v4466_v28 = vmul.f32 -1.442695, %v1928_v45 }
 0x37a   :  { %v4463_v53 = vmul.f32 -1.442695, %v1756_v33 }
 0x37c   :  { %v4809_v41 = vpop.eup %4808  ;;  %4810 = vpow2.f32 %v4463_v53  ;;  %v6058_v56 = vpop.f32.mrf.mxu3 }
 0x37d   :  { %v1820_v38 = vadd.f32 1.0, %v4809_v41  ;;  %v1744_v30 = vpop.f32.mrf.mxu2 }
 0x37e   :  { %v1899_v3 = vpop.f32.mrf.mxu1 }
 0x37f   :  { %4812 = vrcp.f32 %v1820_v38  ;;  %v1768_v29 = vpop.f32.mrf.mxu0  ;;  %vm1828_vm13 = vweird.f32 %v1820_v38 }
 0x380   :  { %v1769_v54 = vadd.f32 %v1768_v29, %v7360_v2  ;;  %4814 = vpow2.f32 %v4466_v28 }
 0x382   :  { %v4811_v62 = vpop.eup %4810  ;;  %v1782_v23 = vadd.f32 %v1781_v46, %v1769_v54 }
 0x383   :  { %v1821_v34 = vadd.f32 1.0, %v4811_v62  ;;  %v1834_v62 = vand.u32 2147483648, %v1820_v38 }
 0x384   :  { %v4464_v17 = vmul.f32 -1.442695, %v1782_v23  ;;  %v1925_v53 = vpop.f32.mrf.mxu3 }
 0x385   :  { %v4813_v47 = vpop.eup %4812  ;;  %4816 = vrcp.f32 %v1821_v34  ;;  %v1794_v48 = vpop.f32.mrf.mxu2  ;;  %vm1843_vm0 = vweird.f32 %v1821_v34 }
 0x386   :  { %v1824_v60 = vmul.f32 %v4813_v47, %v1820_v38  ;;  %4818 = vpow2.f32 %v4464_v17  ;;  %v1795_v33 = vadd.f32 %v1794_v48, %v7361_v55  ;;  %v4815_v41 = vpop.eup %4814  ;;  %vm1829_vm12 = vweird.f32 %v4813_v47 }
 0x387   :  { %v1770_v45 = vpop.f32.mrf.mxu0  ;;  %v6062_v29 = vadd.f32 1.0, %v4815_v41  ;;  %v1832_v17 = vand.u32 2147483647, %v1820_v38  ;;  %v1849_v48 = vand.u32 2147483648, %v1821_v34  ;;  %vm6065_vm14 = vmor %vm1828_vm13, %vm1829_vm12  ;;  %v1835_v41 = vor.u32 1.1754944e-38, %v1834_v62 }
 0x388   :  { %v1825_v30 = vsub.f32 1.0, %v1824_v60  ;;  %v1808_v12 = vadd.f32 %v1807_v57, %v1795_v33  ;;  %v1847_v60 = vand.u32 2147483647, %v1821_v34 }
 0x389   :  { %vm1833_vm1 = vcmp.eq.f32.partialorder %v1832_v17, 8.507059e+37  ;;  %vm1963_vm9 = vweird.f32 %v6062_v29 }
 0x38a   :  { %v1826_v3 = vmul.f32 %v4813_v47, %v1825_v30  ;;  %4820 = vtanh.f32 %v1808_v12  ;;  %v7364_v30 = vld [vmem:[#allocation64_spill] sm:$0xff]  ;;  %vm1848_vm3 = vcmp.eq.f32.partialorder %v1847_v60, 8.507059e+37 }
 0x38b   :  { %v4817_v43 = vpop.eup %4816  ;;  %4822 = vrcp.f32 %v6062_v29 }
 0x38c   :  { %v1839_v28 = vmul.f32 %v4817_v43, %v1821_v34  ;;  %v1827_v46 = vadd.f32 %v4813_v47, %v1826_v3  ;;  %v4819_v54 = vpop.eup %4818  ;;  %vm1844_vm15 = vweird.f32 %v4817_v43  ;;  %v7365_v34 = vld [vmem:[#allocation58_spill] sm:$0xff] }
 0x38d   :  { %v1796_v23 = vpop.f32.mrf.mxu2  ;;  %v1822_v53 = vadd.f32 1.0, %v4819_v54  ;;  %vm1845_vm2 = vmor %vm1843_vm0, %vm1844_vm15  ;;  %v1850_v54 = vor.u32 1.1754944e-38, %v1849_v48 }
 0x38e   :  { %v1840_v2 = vsub.f32 1.0, %v1839_v28  ;;  %v1831_v12 = vsel %vm6065_vm14, %v4813_v47, %v1827_v46 }
 0x38f   :  { %v1884_v33 = vpop.f32.mrf.mxu0  ;;  %4824 = vrcp.f32 %v1822_v53  ;;  %v1836_v23 = vsel %vm1833_vm1, %v1835_v41, %v1831_v12  ;;  %v1864_v12 = vand.u32 2147483648, %v1822_v53  ;;  %vm1858_vm5 = vweird.f32 %v1822_v53 }
 0x390   :  { %v1841_v45 = vmul.f32 %v4817_v43, %v1840_v2  ;;  %v1927_v3 = vadd.f32 %v1884_v33, %v7364_v30  ;;  %v4821_v28 = vpop.eup %4820 }
 0x391   :  { %v6072_v59 = vpop.eup %4822  ;;  %v1870_v46 = vmul.f32 %v4821_v28, %v1836_v23 }
 0x392   :  { %v1842_v38 = vadd.f32 %v4817_v43, %v1841_v45  ;;  %v4465_v55 = vmul.f32 -1.442695, %v1927_v3  ;;  %v1959_v48 = vmul.f32 %v6072_v59, %v6062_v29  ;;  %vm1964_vm8 = vweird.f32 %v6072_v59 }
 0x393   :  { %vm6095_vm10 = vmor %vm1963_vm9, %vm1964_vm8 }
 0x394   :  { %v1846_v16 = vsel %vm1845_vm2, %v4817_v43, %v1842_v38  ;;  %4826 = vpow2.f32 %v4465_v55  ;;  %v1960_v30 = vsub.f32 1.0, %v1959_v48  ;;  %v1865_v38 = vor.u32 1.1754944e-38, %v1864_v12 }
 0x395   :  { %v1851_v2 = vsel %vm1848_vm3, %v1850_v54, %v1846_v16  ;;  %v4825_v44 = vpop.eup %4824  ;;  %v1910_v62 = vpop.f32.mrf.mxu2 }
 0x396   :  { %v1869_v47 = vmul.f32 %v1851_v2, %v5930_v49  ;;  %v1854_v57 = vmul.f32 %v4825_v44, %v1822_v53  ;;  %v1929_v17 = vadd.f32 %v1910_v62, %v7365_v34  ;;  %vm1859_vm4 = vweird.f32 %v4825_v44 }
 0x397   :  { %v1886_v33 = vpop.f32.mrf.mxu0  ;;  %v1862_v49 = vand.u32 2147483647, %v1822_v53  ;;  %vm1860_vm6 = vmor %vm1858_vm5, %vm1859_vm4  ;;  %v7367_v53 = vld [vmem:[#allocation59_spill] sm:$0xff] }
 0x398   :  { %v6076_v45 = vadd.f32 %v1870_v46, %v1869_v47  ;;  %v1855_v43 = vsub.f32 1.0, %v1854_v57  ;;  %v4467_v60 = vmul.f32 -1.442695, %v1929_v17  ;;  %v1961_v46 = vmul.f32 %v6072_v59, %v1960_v30 }
 0x399   :  { %vm1863_vm7 = vcmp.eq.f32.partialorder %v1862_v49, 8.507059e+37  ;;  %v1930_v33 = vadd.f32 %v6058_v56, %v7367_v53 }
 0x39a   :  { %4828 = vtanh.f32 %v6076_v45  ;;  %v4827_v16 = vpop.eup %4826  ;;  %v1856_v55 = vmul.f32 %v4825_v44, %v1855_v43  ;;  %v1962_v48 = vadd.f32 %v6072_v59, %v1961_v46  ;;  %v1969_v43 = vand.u32 2147483648, %v6062_v29 }
 0x39b   :  { %4830 = vpow2.f32 %v4467_v60  ;;  %v1940_v41 = vadd.f32 1.0, %v4827_v16  ;;  %v1967_v60 = vand.u32 2147483647, %v6062_v29 }
 0x39c   :  { %v1857_v3 = vadd.f32 %v4825_v44, %v1856_v55  ;;  %v1966_v55 = vsel %vm6095_vm10, %v6072_v59, %v1962_v48 }
 0x39d   :  { %4832 = vrcp.f32 %v1940_v41  ;;  %v1912_v28 = vpop.f32.mrf.mxu2  ;;  %v1954_v16 = vand.u32 2147483648, %v1940_v41  ;;  %v1952_v30 = vand.u32 2147483647, %v1940_v41  ;;  %vm1968_vm12 = vcmp.eq.f32.partialorder %v1967_v60, 8.507059e+37 }
 0x39e   :  { %v1861_v54 = vsel %vm1860_vm6, %v4825_v44, %v1857_v3  ;;  %v7370_v28 = vld [vmem:[#allocation36_spill] sm:$0xff]  ;;  %vm1948_vm13 = vweird.f32 %v1940_v41 }
 0x39f   :  { %v1866_v2 = vsel %vm1863_vm7, %v1865_v38, %v1861_v54  ;;  %v1970_v38 = vor.u32 1.1754944e-38, %v1969_v43  ;;  %vm1953_vm15 = vcmp.eq.f32.partialorder %v1952_v30, 8.507059e+37  ;;  %v7373_v30 = vld [vmem:[#allocation31_spill] sm:$0xff] }
 0x3a0   :  { %v4829_v23 = vpop.eup %4828 }
 0x3a1   :  { %v4831_v47 = vpop.eup %4830  ;;  %v6082_v62 = vmul.f32 %v4829_v23, %v1866_v2  ;;  %v1971_v23 = vsel %vm1968_vm12, %v1970_v38, %v1966_v55  ;;  %v1955_v2 = vor.u32 1.1754944e-38, %v1954_v16  ;;  %v7375_v38 = vld [vmem:[#allocation60_spill] sm:$0xff] }
 0x3a2   :  { %v1942_v57 = vadd.f32 1.0, %v4831_v47 }
 0x3a3   :  { %7366 = vst [vmem:[#allocation52_spill] sm:$0xff] %v6082_v62  ;;  %v1995_v34 = vpack.c.bf16 %v6082_v62, %v6082_v62  ;;  %v4833_v17 = vpop.eup %4832  ;;  %v7396_v62 = vld [vmem:[#allocation85_spill] sm:$0xff] }
 0x3a4   :  { %4834 = vrcp.f32 %v1942_v57  ;;  %v1944_v44 = vmul.f32 %v4833_v17, %v1940_v41  ;;  %vm1949_vm11 = vweird.f32 %v4833_v17  ;;  %vm1978_vm1 = vweird.f32 %v1942_v57 }
 0x3a5   :  { %2017 = vmatmul.bf16.vlgmr.msra.gmra.mxu1 %v1995_v34  ;;  %2043 = vmatmul.bf16.vlgmr.msra.gmra.mxu3 %v1995_v34  ;;  %4836 = vtanh.f32 %v1930_v33  ;;  %vm1950_vm14 = vmor %vm1948_vm13, %vm1949_vm11  ;;  %v1989_v33 = vmul.f32 %v1971_v23, %v5962_v32  ;;  %v1982_v60 = vand.u32 2147483647, %v1942_v57  ;;  %v7378_v23 = vld [vmem:[#allocation45_spill] sm:$0xff] }
 0x3a6   :  { %2177 = vmatpush.bf16.msra.mxu1 %v7295_v36  ;;  %2203 = vmatpush.bf16.msra.mxu3 %v7296_v10  ;;  %v1945_v12 = vsub.f32 1.0, %v1944_v44 }
 0x3a7   :  { %vm1983_vm3 = vcmp.eq.f32.partialorder %v1982_v60, 8.507059e+37  ;;  %v7389_v60 = vld [vmem:[#allocation88_spill] sm:$0xff] }
 0x3a8   :  { %v1946_v49 = vmul.f32 %v4833_v17, %v1945_v12 }
 0x3aa   :  { %v4835_v3 = vpop.eup %4834  ;;  %2178 = vmatpush.bf16.msra.mxu1 %v7299_v40  ;;  %2204 = vmatpush.bf16.msra.mxu3 %v7370_v28  ;;  %v1947_v29 = vadd.f32 %v4833_v17, %v1946_v49 }
 0x3ab   :  { %v1974_v54 = vmul.f32 %v4835_v3, %v1942_v57  ;;  %v4837_v59 = vpop.eup %4836  ;;  %vm1979_vm0 = vweird.f32 %v4835_v3 }
 0x3ac   :  { %v1951_v47 = vsel %vm1950_vm14, %v4833_v17, %v1947_v29  ;;  %v1984_v17 = vand.u32 2147483648, %v1942_v57  ;;  %vm1980_vm2 = vmor %vm1978_vm1, %vm1979_vm0  ;;  %v7371_v57 = vld [vmem:[#allocation54_spill] sm:$0xff]  ;;  %v7376_v29 = vld [vmem:[#allocation61_spill] sm:$0xff] }
 0x3ad   :  { %v1975_v46 = vsub.f32 1.0, %v1974_v54  ;;  %v1956_v53 = vsel %vm1953_vm15, %v1955_v2, %v1951_v47  ;;  %v7377_v54 = vld [vmem:[#allocation33_spill] sm:$0xff]  ;;  %v7379_v2 = vld [vmem:[#allocation70_spill] sm:$0xff] }
 0x3ae   :  { %2179 = vmatpush.bf16.msra.mxu1 %v7301_v58  ;;  %2205 = vmatpush.bf16.msra.mxu3 %v5450_v26  ;;  %v1990_v48 = vmul.f32 %v4837_v59, %v1956_v53  ;;  %v1985_v32 = vor.u32 1.1754944e-38, %v1984_v17  ;;  %v7380_v47 = vld [vmem:[#allocation66_spill] sm:$0xff]  ;;  %v7382_v59 = vld [vmem:[#allocation67_spill] sm:$0xff]  ;;  %v7388_v17 = vld [vmem:[#allocation76_spill] sm:$0xff] }
 0x3af   :  { %v1976_v44 = vmul.f32 %v4835_v3, %v1975_v46  ;;  %v7381_v46 = vld [vmem:[#allocation77_spill] sm:$0xff]  ;;  %v7383_v53 = vld [vmem:[#allocation78_spill] sm:$0xff] }
 0x3b0   :  { %v6107_v43 = vadd.f32 %v1990_v48, %v1989_v33  ;;  %v7384_v33 = vld [vmem:[#allocation71_spill] sm:$0xff] }
 0x3b1   :  { %v1977_v41 = vadd.f32 %v4835_v3, %v1976_v44  ;;  %v7385_v48 = vld [vmem:[#allocation83_spill] sm:$0xff]  ;;  %v7386_v44 = vld [vmem:[#allocation72_spill] sm:$0xff] }
 0x3b2   :  { %2180 = vmatpush.bf16.msra.mxu1 %v7302_v4  ;;  %2206 = vmatpush.bf16.msra.mxu3 %v7303_v11  ;;  %4838 = vtanh.f32 %v6107_v43 }
 0x3b3   :  { %v1981_v12 = vsel %vm1980_vm2, %v4835_v3, %v1977_v41  ;;  %v7374_v3 = vld [vmem:[#allocation44_spill] sm:$0xff]  ;;  %v7387_v41 = vld [vmem:[#allocation73_spill] sm:$0xff] }
 0x3b4   :  { %v1986_v16 = vsel %vm1983_vm3, %v1985_v32, %v1981_v12  ;;  %v7390_v12 = vld [vmem:[#allocation89_spill] sm:$0xff]  ;;  %v7391_v32 = vld [vmem:[#allocation79_spill] sm:$0xff] }
 0x3b5   :  { %2069 = vmatmul.bf16.vlgmr.msrb.gmra.mxu1 %v1995_v34  ;;  %2095 = vmatmul.bf16.vlgmr.msrb.gmra.mxu3 %v1995_v34  ;;  %v7372_v34 = vld [vmem:[#allocation57_spill] sm:$0xff] }
 0x3b6   :  { %2181 = vmatpush.bf16.msra.mxu1 %v7304_v52  ;;  %2207 = vmatpush.bf16.msra.mxu3 %v7305_v21 }
 0x3b8   :  { %v4839_v56 = vpop.eup %4838 }
 0x3b9   :  { %v1993_v55 = vmul.f32 %v4839_v56, %v1986_v16  ;;  %v7392_v56 = vld [vmem:[#allocation80_spill] sm:$0xff]  ;;  %v7393_v16 = vld [vmem:[#allocation94_spill] sm:$0xff] }
 0x3ba   :  { %2182 = vmatpush.bf16.msra.mxu1 %v7306_v63  ;;  %2208 = vmatpush.bf16.msra.mxu3 %v7307_v51 }
 0x3bb   :  { %v1994_v49 = vpack.c.bf16 %v1993_v55, %v1993_v55  ;;  %v7394_v55 = vld [vmem:[#allocation95_spill] sm:$0xff] }
 0x3bd   :  { %2004 = vmatmul.bf16.vlgmr.msra.gmra.mxu0 %v1994_v49  ;;  %2030 = vmatmul.bf16.vlgmr.msra.gmra.mxu2 %v1994_v49 }
 0x3be   :  { %2164 = vmatpush.bf16.msra.mxu0 %v5388_v7  ;;  %2183 = vmatpush.bf16.msra.mxu1 %v7308_v15 }
 0x3bf   :  { %2190 = vmatpush.bf16.msra.mxu2 %v5434_v8  ;;  %2209 = vmatpush.bf16.msra.mxu3 %v5474_v9 }
 0x3c2   :  { %2165 = vmatpush.bf16.msra.mxu0 %v5393_v13  ;;  %2184 = vmatpush.bf16.msra.mxu1 %v7309_v35 }
 0x3c3   :  { %2191 = vmatpush.bf16.msra.mxu2 %v5442_v22  ;;  %2210 = vmatpush.bf16.msra.mxu3 %v5480_v20 }
 0x3c5   :  { %2185 = vmatmul.bf16.vlgmr.msra.gmra.mxu1 %v1994_v49 }
 0x3c6   :  { %2298 = vmatpush.bf16.msrb.mxu1 %v5487_v37  ;;  %2211 = vmatmul.bf16.vlgmr.msra.gmra.mxu3 %v1994_v49 }
 0x3c7   :  { %2324 = vmatpush.bf16.msrb.mxu3 %v5489_v39  ;;  %2166 = vmatpush.bf16.msra.mxu0 %v7246_v61 }
 0x3c8   :  { %2192 = vmatpush.bf16.msra.mxu2 %v7247_v24 }
 0x3ca   :  { %2299 = vmatpush.bf16.msrb.mxu1 %v7310_v14 }
 0x3cb   :  { %2325 = vmatpush.bf16.msrb.mxu3 %v7311_v19  ;;  %2167 = vmatpush.bf16.msra.mxu0 %v7249_v31 }
 0x3cc   :  { %2193 = vmatpush.bf16.msra.mxu2 %v7250_v27 }
 0x3cd   :  { %2056 = vmatmul.bf16.vlgmr.msrb.gmra.mxu0 %v1994_v49  ;;  %2082 = vmatmul.bf16.vlgmr.msrb.gmra.mxu2 %v1994_v49 }
 0x3ce   :  { %2300 = vmatpush.bf16.msrb.mxu1 %v5507_v0 }
 0x3cf   :  { %2326 = vmatpush.bf16.msrb.mxu3 %v7312_v5  ;;  %2168 = vmatpush.bf16.msra.mxu0 %v7253_v1 }
 0x3d0   :  { %2194 = vmatpush.bf16.msra.mxu2 %v7254_v50 }
 0x3d2   :  { %2301 = vmatpush.bf16.msrb.mxu1 %v5517_v18 }
 0x3d3   :  { %2327 = vmatpush.bf16.msrb.mxu3 %v5519_v25  ;;  %2169 = vmatpush.bf16.msra.mxu0 %v7257_v6 }
 0x3d4   :  { %2195 = vmatpush.bf16.msra.mxu2 %v7258_v42  ;;  %v7442_v42 = vld [vmem:[#allocation68_spill] sm:$0xff] }
 0x3d6   :  { %2302 = vmatpush.bf16.msrb.mxu1 %v7371_v57 }
 0x3d7   :  { %2328 = vmatpush.bf16.msrb.mxu3 %v7372_v34  ;;  %2170 = vmatpush.bf16.msra.mxu0 %v7373_v30 }
 0x3d8   :  { %2196 = vmatpush.bf16.msra.mxu2 %v7374_v3 }
 0x3da   :  { %2303 = vmatpush.bf16.msrb.mxu1 %v7375_v38 }
 0x3db   :  { %2329 = vmatpush.bf16.msrb.mxu3 %v7376_v29  ;;  %2171 = vmatpush.bf16.msra.mxu0 %v7377_v54  ;;  %v7434_v54 = vld [vmem:[#allocation75_spill] sm:$0xff] }
 0x3dc   :  { %2197 = vmatpush.bf16.msra.mxu2 %v7378_v23 }
 0x3de   :  { %2304 = vmatpush.bf16.msrb.mxu1 %v7380_v47  ;;  %2172 = vmatmul.bf16.vlgmr.msra.gmra.mxu0 %v1994_v49 }
 0x3df   :  { %2285 = vmatpush.bf16.msrb.mxu0 %v7379_v2  ;;  %2330 = vmatpush.bf16.msrb.mxu3 %v7382_v59  ;;  %v7431_v59 = vld [vmem:[#allocation25_spill] sm:$0xff] }
 0x3e0   :  { %2311 = vmatpush.bf16.msrb.mxu2 %v7381_v46 }
 0x3e1   :  { %2198 = vmatmul.bf16.vlgmr.msra.gmra.mxu2 %v1994_v49  ;;  %v7395_v49 = vld [vmem:[#allocation84_spill] sm:$0xff] }
 0x3e2   :  { %2305 = vmatpush.bf16.msrb.mxu1 %v7384_v33 }
 0x3e3   :  { %2286 = vmatpush.bf16.msrb.mxu0 %v7383_v53  ;;  %2331 = vmatpush.bf16.msrb.mxu3 %v7386_v44  ;;  %v7397_v44 = vld [vmem:[#allocation100_spill] sm:$0xff] }
 0x3e4   :  { %2312 = vmatpush.bf16.msrb.mxu2 %v7385_v48 }
 0x3e6   :  { %2350 = vmatpush.bf16.msra.mxu1 %v7387_v41  ;;  %v7398_v41 = vld [vmem:[#allocation101_spill] sm:$0xff] }
 0x3e7   :  { %2376 = vmatpush.bf16.msra.mxu3 %v7388_v17  ;;  %2287 = vmatpush.bf16.msrb.mxu0 %v7389_v60  ;;  %v7399_v17 = vld [vmem:[#allocation90_spill] sm:$0xff]  ;;  %v7400_v60 = vld [vmem:[#allocation93_spill] sm:$0xff] }
 0x3e8   :  { %2313 = vmatpush.bf16.msrb.mxu2 %v7390_v12  ;;  %v7401_v12 = vld [vmem:[#allocation106_spill] sm:$0xff] }
 0x3ea   :  { %2351 = vmatpush.bf16.msra.mxu1 %v7391_v32  ;;  %v7402_v32 = vld [vmem:[#allocation107_spill] sm:$0xff] }
 0x3eb   :  { %2377 = vmatpush.bf16.msra.mxu3 %v7392_v56  ;;  %2288 = vmatpush.bf16.msrb.mxu0 %v7393_v16  ;;  %v7403_v56 = vld [vmem:[#allocation96_spill] sm:$0xff]  ;;  %v7404_v16 = vld [vmem:[#allocation97_spill] sm:$0xff] }
 0x3ec   :  { %2314 = vmatpush.bf16.msrb.mxu2 %v7394_v55  ;;  %v7405_v55 = vld [vmem:[#allocation112_spill] sm:$0xff] }
 0x3ee   :  { %2352 = vmatpush.bf16.msra.mxu1 %v7395_v49  ;;  %v7406_v49 = vld [vmem:[#allocation113_spill] sm:$0xff] }
 0x3ef   :  { %2378 = vmatpush.bf16.msra.mxu3 %v7396_v62  ;;  %2289 = vmatpush.bf16.msrb.mxu0 %v7397_v44  ;;  %v7407_v62 = vld [vmem:[#allocation102_spill] sm:$0xff]  ;;  %v7408_v44 = vld [vmem:[#allocation103_spill] sm:$0xff] }
 0x3f0   :  { %2315 = vmatpush.bf16.msrb.mxu2 %v7398_v41  ;;  %v7409_v41 = vld [vmem:[#allocation116_spill] sm:$0xff] }
 0x3f2   :  { %2353 = vmatpush.bf16.msra.mxu1 %v7399_v17  ;;  %v7410_v17 = vld [vmem:[#allocation117_spill] sm:$0xff] }
 0x3f3   :  { %2379 = vmatpush.bf16.msra.mxu3 %v7400_v60  ;;  %2290 = vmatpush.bf16.msrb.mxu0 %v7401_v12  ;;  %v7411_v60 = vld [vmem:[#allocation118_spill] sm:$0xff]  ;;  %v7412_v12 = vld [vmem:[#allocation108_spill] sm:$0xff] }
 0x3f4   :  { %2316 = vmatpush.bf16.msrb.mxu2 %v7402_v32  ;;  %v7413_v32 = vld [vmem:[#allocation121_spill] sm:$0xff] }
 0x3f6   :  { %2354 = vmatpush.bf16.msra.mxu1 %v7403_v56  ;;  %v7414_v56 = vld [vmem:[#allocation109_spill] sm:$0xff] }
 0x3f7   :  { %2380 = vmatpush.bf16.msra.mxu3 %v7404_v16  ;;  %2291 = vmatpush.bf16.msrb.mxu0 %v7405_v55  ;;  %v7415_v16 = vld [vmem:[#allocation122_spill] sm:$0xff] }
 0x3f8   :  { %2317 = vmatpush.bf16.msrb.mxu2 %v7406_v49  ;;  %v7416_v55 = vld [vmem:[#allocation114_spill] sm:$0xff]  ;;  %v7417_v49 = vld [vmem:[#allocation123_spill] sm:$0xff] }
 0x3fa   :  { %2355 = vmatpush.bf16.msra.mxu1 %v7407_v62  ;;  %v7418_v62 = vld [vmem:[#allocation115_spill] sm:$0xff] }
 0x3fb   :  { %2381 = vmatpush.bf16.msra.mxu3 %v7408_v44  ;;  %2292 = vmatpush.bf16.msrb.mxu0 %v7409_v41  ;;  %v7419_v44 = vld [vmem:[#allocation124_spill] sm:$0xff]  ;;  %v7420_v41 = vld [vmem:[#allocation125_spill] sm:$0xff] }
 0x3fc   :  { %2318 = vmatpush.bf16.msrb.mxu2 %v7410_v17  ;;  %v7421_v17 = vld [vmem:[#allocation126_spill] sm:$0xff] }
 0x3fe   :  { %2356 = vmatpush.bf16.msra.mxu1 %v7412_v12  ;;  %v7423_v12 = vld [vmem:[#allocation128_spill] sm:$0xff] }
 0x3ff   :  { %2337 = vmatpush.bf16.msra.mxu0 %v7411_v60  ;;  %2382 = vmatpush.bf16.msra.mxu3 %v7414_v56  ;;  %v7422_v60 = vld [vmem:[#allocation127_spill] sm:$0xff]  ;;  %v7425_v56 = vld [vmem:[#allocation130_spill] sm:$0xff] }
 0x400   :  { %2363 = vmatpush.bf16.msra.mxu2 %v7413_v32  ;;  %v7424_v32 = vld [vmem:[#allocation129_spill] sm:$0xff] }
 0x402   :  { %2357 = vmatpush.bf16.msra.mxu1 %v7416_v55  ;;  %v7427_v55 = vld [vmem:[#allocation132_spill] sm:$0xff] }
 0x403   :  { %2338 = vmatpush.bf16.msra.mxu0 %v7415_v16  ;;  %2383 = vmatpush.bf16.msra.mxu3 %v7418_v62  ;;  %v7426_v16 = vld [vmem:[#allocation131_spill] sm:$0xff]  ;;  %v7429_v62 = vld [vmem:[#allocation134_spill] sm:$0xff] }
 0x404   :  { %2364 = vmatpush.bf16.msra.mxu2 %v7417_v49  ;;  %v7428_v49 = vld [vmem:[#allocation133_spill] sm:$0xff] }
 0x407   :  { %2339 = vmatpush.bf16.msra.mxu0 %v7419_v44  ;;  %v7430_v44 = vld [vmem:[#allocation135_spill] sm:$0xff] }
 0x408   :  { %2365 = vmatpush.bf16.msra.mxu2 %v7420_v41 }
 0x40b   :  { %2340 = vmatpush.bf16.msra.mxu0 %v7421_v17 }
 0x40c   :  { %2366 = vmatpush.bf16.msra.mxu2 %v7422_v60 }
 0x40f   :  { %2341 = vmatpush.bf16.msra.mxu0 %v7423_v12 }
 0x410   :  { %2367 = vmatpush.bf16.msra.mxu2 %v7424_v32 }
 0x413   :  { %2342 = vmatpush.bf16.msra.mxu0 %v7425_v56 }
 0x414   :  { %2368 = vmatpush.bf16.msra.mxu2 %v7426_v16 }
 0x417   :  { %2343 = vmatpush.bf16.msra.mxu0 %v7427_v55 }
 0x418   :  { %2369 = vmatpush.bf16.msra.mxu2 %v7428_v49  ;;  %v7432_v49 = vld [vmem:[#allocation38_spill] sm:$0xff] }
 0x41b   :  { %2344 = vmatpush.bf16.msra.mxu0 %v7429_v62 }
 0x41c   :  { %2370 = vmatpush.bf16.msra.mxu2 %v7430_v44  ;;  %v7433_v44 = vld [vmem:[#allocation63_spill] sm:$0xff] }
 0x41d   :  { %v634_v29 = vadd.f32 %v7434_v54, %v7433_v44 }
 0x422   :  { %v2018_v41 = vpop.f32.mrf.mxu1 }
 0x428   :  { %v2044_v17 = vpop.f32.mrf.mxu3 }
 0x42a   :  { %v2020_v48 = vpop.f32.mrf.mxu1 }
 0x430   :  { %v2046_v60 = vpop.f32.mrf.mxu3 }
 0x432   :  { %v2070_v33 = vpop.f32.mrf.mxu1 }
 0x438   :  { %v2096_v12 = vpop.f32.mrf.mxu3 }
 0x43a   :  { %v2072_v53 = vpop.f32.mrf.mxu1  ;;  %v2005_v32 = vpop.f32.mrf.mxu0 }
 0x43b   :  { %v2006_v56 = vadd.f32 %v2005_v32, %v7431_v59 }
 0x43d   :  { %v2019_v46 = vadd.f32 %v2018_v41, %v2006_v56  ;;  %v7435_v56 = vld [vmem:[#allocation27_spill] sm:$0xff] }
 0x43f   :  { %v4468_v16 = vmul.f32 -1.442695, %v2019_v46 }
 0x440   :  { %v2098_v47 = vpop.f32.mrf.mxu3  ;;  %v2031_v55 = vpop.f32.mrf.mxu2 }
 0x441   :  { %4840 = vpow2.f32 %v4468_v16  ;;  %v2032_v2 = vadd.f32 %v2031_v55, %v7432_v49 }
 0x442   :  { %v2007_v62 = vpop.f32.mrf.mxu0  ;;  %v2186_v23 = vpop.f32.mrf.mxu1 }
 0x443   :  { %v2045_v48 = vadd.f32 %v2044_v17, %v2032_v2  ;;  %v2217_v38 = vadd.f32 %v2186_v23, %v634_v29 }
 0x445   :  { %v4469_v60 = vmul.f32 -1.442695, %v2045_v48  ;;  %v4472_v32 = vmul.f32 -1.442695, %v2217_v38 }
 0x447   :  { %v4841_v3 = vpop.eup %4840  ;;  %4842 = vpow2.f32 %v4469_v60 }
 0x448   :  { %v2109_v53 = vadd.f32 1.0, %v4841_v3  ;;  %v2033_v30 = vpop.f32.mrf.mxu2 }
 0x449   :  { %v6204_v41 = vpop.f32.mrf.mxu3  ;;  %v7436_v30 = vld [vmem:[#allocation40_spill] sm:$0xff] }
 0x44a   :  { %4844 = vrcp.f32 %v2109_v53  ;;  %v2057_v47 = vpop.f32.mrf.mxu0  ;;  %v2188_v46 = vpop.f32.mrf.mxu1  ;;  %vm2117_vm5 = vweird.f32 %v2109_v53 }
 0x44b   :  { %v2058_v16 = vadd.f32 %v2057_v47, %v7435_v56  ;;  %4846 = vpow2.f32 %v4472_v32 }
 0x44d   :  { %v4843_v62 = vpop.eup %4842  ;;  %v2071_v55 = vadd.f32 %v2070_v33, %v2058_v16 }
 0x44e   :  { %v2110_v49 = vadd.f32 1.0, %v4843_v62  ;;  %v2123_v62 = vand.u32 2147483648, %v2109_v53 }
 0x44f   :  { %v4470_v54 = vmul.f32 -1.442695, %v2071_v55 }
 0x450   :  { %v4845_v2 = vpop.eup %4844  ;;  %4848 = vrcp.f32 %v2110_v49  ;;  %v2083_v29 = vpop.f32.mrf.mxu2  ;;  %vm2132_vm8 = vweird.f32 %v2110_v49 }
 0x451   :  { %v2113_v23 = vmul.f32 %v4845_v2, %v2109_v53  ;;  %v2214_v17 = vpop.f32.mrf.mxu3  ;;  %4850 = vpow2.f32 %v4470_v54  ;;  %v2084_v3 = vadd.f32 %v2083_v29, %v7436_v30  ;;  %v4847_v48 = vpop.eup %4846  ;;  %vm2118_vm4 = vweird.f32 %v4845_v2  ;;  %v7437_v29 = vld [vmem:[#allocation62_spill] sm:$0xff] }
 0x452   :  { %v2059_v38 = vpop.f32.mrf.mxu0  ;;  %v6208_v47 = vadd.f32 1.0, %v4847_v48  ;;  %v2121_v54 = vand.u32 2147483647, %v2109_v53  ;;  %vm6213_vm6 = vmor %vm2117_vm5, %vm2118_vm4 }
 0x453   :  { %v2114_v60 = vsub.f32 1.0, %v2113_v23  ;;  %v2097_v44 = vadd.f32 %v2096_v12, %v2084_v3  ;;  %v7438_v38 = vld [vmem:[#allocation74_spill] sm:$0xff]  ;;  %v2138_v23 = vand.u32 2147483648, %v2110_v49  ;;  %v2136_v3 = vand.u32 2147483647, %v2110_v49 }
 0x454   :  { %v605_v30 = vadd.f32 %v7438_v38, %v7437_v29  ;;  %vm2122_vm9 = vcmp.eq.f32.partialorder %v2121_v54, 8.507059e+37  ;;  %vm2252_vm1 = vweird.f32 %v6208_v47 }
 0x455   :  { %v2115_v46 = vmul.f32 %v4845_v2, %v2114_v60  ;;  %4852 = vtanh.f32 %v2097_v44  ;;  %vm2137_vm11 = vcmp.eq.f32.partialorder %v2136_v3, 8.507059e+37 }
 0x456   :  { %v4849_v59 = vpop.eup %4848  ;;  %4854 = vrcp.f32 %v6208_v47 }
 0x457   :  { %v2128_v32 = vmul.f32 %v4849_v59, %v2110_v49  ;;  %v2116_v33 = vadd.f32 %v4845_v2, %v2115_v46  ;;  %v4851_v16 = vpop.eup %4850  ;;  %vm2133_vm7 = vweird.f32 %v4849_v59  ;;  %v2124_v46 = vor.u32 1.1754944e-38, %v2123_v62 }
 0x458   :  { %v2085_v55 = vpop.f32.mrf.mxu2  ;;  %v2111_v17 = vadd.f32 1.0, %v4851_v16  ;;  %vm2134_vm10 = vmor %vm2132_vm8, %vm2133_vm7 }
 0x459   :  { %v2129_v56 = vsub.f32 1.0, %v2128_v32  ;;  %v2120_v44 = vsel %vm6213_vm6, %v4845_v2, %v2116_v33  ;;  %v2139_v55 = vor.u32 1.1754944e-38, %v2138_v23 }
 0x45a   :  { %4856 = vrcp.f32 %v2111_v17  ;;  %v2125_v38 = vsel %vm2122_vm9, %v2124_v46, %v2120_v44  ;;  %vm2147_vm13 = vweird.f32 %v2111_v17 }
 0x45b   :  { %v2173_v48 = vpop.f32.mrf.mxu0  ;;  %v2130_v60 = vmul.f32 %v4849_v59, %v2129_v56  ;;  %v4853_v16 = vpop.eup %4852  ;;  %v7441_v56 = vld [vmem:[#allocation55_spill] sm:$0xff] }
 0x45c   :  { %v2216_v53 = vadd.f32 %v2173_v48, %v605_v30  ;;  %v6219_v57 = vpop.eup %4854  ;;  %v663_v6 = vadd.f32 %v7442_v42, %v7441_v56  ;;  %v2159_v49 = vmul.f32 %v4853_v16, %v2125_v38  ;;  %v7476_v56 = vld [vmem:[#allocation85_spill] sm:$0xff] }
 0x45d   :  { %v2131_v32 = vadd.f32 %v4849_v59, %v2130_v60  ;;  %v2153_v60 = vand.u32 2147483648, %v2111_v17  ;;  %vm2253_vm0 = vweird.f32 %v6219_v57 }
 0x45e   :  { %v4471_v29 = vmul.f32 -1.442695, %v2216_v53  ;;  %vm6244_vm2 = vmor %vm2252_vm1, %vm2253_vm0 }
 0x45f   :  { %v2135_v34 = vsel %vm2134_vm10, %v4849_v59, %v2131_v32  ;;  %v2248_v59 = vmul.f32 %v6219_v57, %v6208_v47  ;;  %v2154_v44 = vor.u32 1.1754944e-38, %v2153_v60  ;;  %v2256_v60 = vand.u32 2147483647, %v6208_v47 }
 0x460   :  { %v2140_v25 = vsel %vm2137_vm11, %v2139_v55, %v2135_v34  ;;  %4858 = vpow2.f32 %v4471_v29  ;;  %v4857_v2 = vpop.eup %4856 }
 0x461   :  { %v2158_v30 = vmul.f32 %v2140_v25, %v6076_v45  ;;  %v2143_v62 = vmul.f32 %v4857_v2, %v2111_v17  ;;  %vm2148_vm12 = vweird.f32 %v4857_v2  ;;  %v2151_v25 = vand.u32 2147483647, %v2111_v17 }
 0x462   :  { %v2249_v29 = vsub.f32 1.0, %v2248_v59  ;;  %vm2149_vm14 = vmor %vm2147_vm13, %vm2148_vm12  ;;  %vm2257_vm4 = vcmp.eq.f32.partialorder %v2256_v60, 8.507059e+37 }
 0x463   :  { %v2175_v12 = vpop.f32.mrf.mxu0  ;;  %v6224_v23 = vadd.f32 %v2159_v49, %v2158_v30  ;;  %v2144_v3 = vsub.f32 1.0, %v2143_v62  ;;  %vm2152_vm15 = vcmp.eq.f32.partialorder %v2151_v25, 8.507059e+37  ;;  %v7444_v49 = vld [vmem:[#allocation56_spill] sm:$0xff] }
 0x464   :  { %v2199_v33 = vpop.f32.mrf.mxu2  ;;  %v2250_v38 = vmul.f32 %v6219_v57, %v2249_v29 }
 0x465   :  { %v2218_v54 = vadd.f32 %v2199_v33, %v663_v6  ;;  %4860 = vtanh.f32 %v6224_v23  ;;  %v2145_v34 = vmul.f32 %v4857_v2, %v2144_v3  ;;  %v7445_v33 = vld [vmem:[#allocation69_spill] sm:$0xff] }
 0x466   :  { %v4859_v42 = vpop.eup %4858  ;;  %v692_v62 = vadd.f32 %v7445_v33, %v7444_v49  ;;  %v7475_v49 = vld [vmem:[#allocation84_spill] sm:$0xff] }
 0x467   :  { %v4473_v48 = vmul.f32 -1.442695, %v2218_v54  ;;  %v2229_v45 = vadd.f32 1.0, %v4859_v42  ;;  %v2146_v6 = vadd.f32 %v4857_v2, %v2145_v34 }
 0x468   :  { %v2219_v59 = vadd.f32 %v6204_v41, %v692_v62 }
 0x469   :  { %4862 = vpow2.f32 %v4473_v48  ;;  %v2150_v53 = vsel %vm2149_vm14, %v4857_v2, %v2146_v6  ;;  %v2251_v2 = vadd.f32 %v6219_v57, %v2250_v38  ;;  %v2258_v48 = vand.u32 2147483648, %v6208_v47 }
 0x46a   :  { %4864 = vrcp.f32 %v2229_v45  ;;  %v2155_v16 = vsel %vm2152_vm15, %v2154_v44, %v2150_v53  ;;  %v2243_v34 = vand.u32 2147483648, %v2229_v45  ;;  %v2241_v6 = vand.u32 2147483647, %v2229_v45 }
 0x46b   :  { %v4861_v32 = vpop.eup %4860  ;;  %v2255_v25 = vsel %vm6244_vm2, %v6219_v57, %v2251_v2  ;;  %vm2237_vm5 = vweird.f32 %v2229_v45 }
 0x46c   :  { %v2201_v46 = vpop.f32.mrf.mxu2  ;;  %v6230_v30 = vmul.f32 %v4861_v32, %v2155_v16  ;;  %v2244_v16 = vor.u32 1.1754944e-38, %v2243_v34  ;;  %vm2242_vm7 = vcmp.eq.f32.partialorder %v2241_v6, 8.507059e+37  ;;  %v7451_v6 = vld [vmem:[#allocation54_spill] sm:$0xff] }
 0x46d   :  { %v2259_v46 = vor.u32 1.1754944e-38, %v2258_v48 }
 0x46e   :  { %7443 = vst [vmem:[#allocation49_spill] sm:$0xff] %v6230_v30  ;;  %v2284_v17 = vpack.c.bf16 %v6230_v30, %v6230_v30  ;;  %v7474_v30 = vld [vmem:[#allocation95_spill] sm:$0xff] }
 0x46f   :  { %v4863_v55 = vpop.eup %4862  ;;  %v2260_v32 = vsel %vm2257_vm4, %v2259_v46, %v2255_v25  ;;  %v7453_v46 = vld [vmem:[#allocation31_spill] sm:$0xff] }
 0x470   :  { %v2231_v54 = vadd.f32 1.0, %v4863_v55  ;;  %v4865_v12 = vpop.eup %4864  ;;  %2306 = vmatmul.bf16.vlgmr.msrb.gmra.mxu1 %v2284_v17  ;;  %2332 = vmatmul.bf16.vlgmr.msrb.gmra.mxu3 %v2284_v17  ;;  %v2278_v62 = vmul.f32 %v2260_v32, %v6107_v43  ;;  %v7456_v32 = vld [vmem:[#allocation61_spill] sm:$0xff] }
 0x471   :  { %v2233_v3 = vmul.f32 %v4865_v12, %v2229_v45  ;;  %2466 = vmatpush.bf16.msrb.mxu1 %v7295_v36  ;;  %2492 = vmatpush.bf16.msrb.mxu3 %v7296_v10  ;;  %vm2238_vm3 = vweird.f32 %v4865_v12 }
 0x472   :  { %4866 = vrcp.f32 %v2231_v54  ;;  %vm2239_vm6 = vmor %vm2237_vm5, %vm2238_vm3  ;;  %vm2267_vm9 = vweird.f32 %v2231_v54  ;;  %v2271_v48 = vand.u32 2147483647, %v2231_v54 }
 0x473   :  { %v2234_v42 = vsub.f32 1.0, %v2233_v3  ;;  %4868 = vtanh.f32 %v2219_v59 }
 0x474   :  { %vm2272_vm11 = vcmp.eq.f32.partialorder %v2271_v48, 8.507059e+37  ;;  %v7467_v48 = vld [vmem:[#allocation73_spill] sm:$0xff] }
 0x475   :  { %v2235_v29 = vmul.f32 %v4865_v12, %v2234_v42  ;;  %2467 = vmatpush.bf16.msrb.mxu1 %v7299_v40  ;;  %2493 = vmatpush.bf16.msrb.mxu3 %v7370_v28 }
 0x477   :  { %v2236_v47 = vadd.f32 %v4865_v12, %v2235_v29  ;;  %v7450_v29 = vld [vmem:[#allocation42_spill] sm:$0xff] }
 0x478   :  { %v4867_v44 = vpop.eup %4866 }
 0x479   :  { %v2263_v53 = vmul.f32 %v4867_v44, %v2231_v54  ;;  %v2240_v55 = vsel %vm2239_vm6, %v4865_v12, %v2236_v47  ;;  %v4869_v57 = vpop.eup %4868  ;;  %2468 = vmatpush.bf16.msrb.mxu1 %v7301_v58  ;;  %2494 = vmatpush.bf16.msrb.mxu3 %v5450_v26  ;;  %vm2268_vm8 = vweird.f32 %v4867_v44  ;;  %v2273_v12 = vand.u32 2147483648, %v2231_v54  ;;  %v7448_v54 = vld [vmem:[#allocation51_spill] sm:$0xff]  ;;  %v7454_v47 = vld [vmem:[#allocation44_spill] sm:$0xff] }
 0x47a   :  { %v2245_v33 = vsel %vm2242_vm7, %v2244_v16, %v2240_v55  ;;  %vm2269_vm10 = vmor %vm2267_vm9, %vm2268_vm8  ;;  %v7457_v16 = vld [vmem:[#allocation33_spill] sm:$0xff] }
 0x47b   :  { %v2264_v38 = vsub.f32 1.0, %v2263_v53  ;;  %v2279_v59 = vmul.f32 %v4869_v57, %v2245_v33  ;;  %v2274_v43 = vor.u32 1.1754944e-38, %v2273_v12  ;;  %v7455_v53 = vld [vmem:[#allocation60_spill] sm:$0xff]  ;;  %v7458_v55 = vld [vmem:[#allocation45_spill] sm:$0xff]  ;;  %v7460_v57 = vld [vmem:[#allocation66_spill] sm:$0xff] }
 0x47c   :  { %v7461_v33 = vld [vmem:[#allocation77_spill] sm:$0xff]  ;;  %v7466_v12 = vld [vmem:[#allocation72_spill] sm:$0xff] }
 0x47d   :  { %v2265_v2 = vmul.f32 %v4867_v44, %v2264_v38  ;;  %v6256_v3 = vadd.f32 %v2279_v59, %v2278_v62  ;;  %2469 = vmatpush.bf16.msrb.mxu1 %v7302_v4  ;;  %2495 = vmatpush.bf16.msrb.mxu3 %v7303_v11  ;;  %v7459_v38 = vld [vmem:[#allocation70_spill] sm:$0xff]  ;;  %v7462_v62 = vld [vmem:[#allocation67_spill] sm:$0xff] }
 0x47e   :  { %v7463_v59 = vld [vmem:[#allocation78_spill] sm:$0xff] }
 0x47f   :  { %v2266_v45 = vadd.f32 %v4867_v44, %v2265_v2  ;;  %4870 = vtanh.f32 %v6256_v3  ;;  %v7464_v2 = vld [vmem:[#allocation71_spill] sm:$0xff] }
 0x480   :  { %2358 = vmatmul.bf16.vlgmr.msra.gmra.mxu1 %v2284_v17  ;;  %2384 = vmatmul.bf16.vlgmr.msra.gmra.mxu3 %v2284_v17  ;;  %v7449_v17 = vld [vmem:[#allocation29_spill] sm:$0xff] }
 0x481   :  { %v2270_v60 = vsel %vm2269_vm10, %v4867_v44, %v2266_v45  ;;  %2470 = vmatpush.bf16.msrb.mxu1 %v7304_v52  ;;  %2496 = vmatpush.bf16.msrb.mxu3 %v7305_v21  ;;  %v7452_v44 = vld [vmem:[#allocation57_spill] sm:$0xff]  ;;  %v7465_v45 = vld [vmem:[#allocation83_spill] sm:$0xff] }
 0x482   :  { %v2275_v41 = vsel %vm2272_vm11, %v2274_v43, %v2270_v60  ;;  %v7468_v60 = vld [vmem:[#allocation76_spill] sm:$0xff] }
 0x483   :  { %v7469_v43 = vld [vmem:[#allocation88_spill] sm:$0xff] }
 0x485   :  { %v4871_v42 = vpop.eup %4870  ;;  %2471 = vmatpush.bf16.msrb.mxu1 %v7306_v63  ;;  %2497 = vmatpush.bf16.msrb.mxu3 %v7307_v51 }
 0x486   :  { %v2282_v34 = vmul.f32 %v4871_v42, %v2275_v41  ;;  %v7470_v42 = vld [vmem:[#allocation89_spill] sm:$0xff]  ;;  %v7471_v41 = vld [vmem:[#allocation79_spill] sm:$0xff] }
 0x488   :  { %v2283_v25 = vpack.c.bf16 %v2282_v34, %v2282_v34  ;;  %v7472_v34 = vld [vmem:[#allocation80_spill] sm:$0xff] }
 0x489   :  { %2472 = vmatpush.bf16.msrb.mxu1 %v7308_v15  ;;  %2498 = vmatpush.bf16.msrb.mxu3 %v5474_v9 }
 0x48a   :  { %2293 = vmatmul.bf16.vlgmr.msrb.gmra.mxu0 %v2283_v25  ;;  %2319 = vmatmul.bf16.vlgmr.msrb.gmra.mxu2 %v2283_v25 }
 0x48b   :  { %2453 = vmatpush.bf16.msrb.mxu0 %v5388_v7  ;;  %2479 = vmatpush.bf16.msrb.mxu2 %v5434_v8 }
 0x48d   :  { %2473 = vmatpush.bf16.msrb.mxu1 %v7309_v35  ;;  %2499 = vmatpush.bf16.msrb.mxu3 %v5480_v20 }
 0x48f   :  { %2454 = vmatpush.bf16.msrb.mxu0 %v5393_v13  ;;  %2480 = vmatpush.bf16.msrb.mxu2 %v5442_v22 }
 0x490   :  { %2474 = vmatmul.bf16.vlgmr.msrb.gmra.mxu1 %v2283_v25  ;;  %2500 = vmatmul.bf16.vlgmr.msrb.gmra.mxu3 %v2283_v25 }
 0x491   :  { %2587 = vmatpush.bf16.msra.mxu1 %v5487_v37  ;;  %2613 = vmatpush.bf16.msra.mxu3 %v5489_v39 }
 0x493   :  { %2455 = vmatpush.bf16.msrb.mxu0 %v7246_v61  ;;  %2481 = vmatpush.bf16.msrb.mxu2 %v7247_v24 }
 0x495   :  { %2588 = vmatpush.bf16.msra.mxu1 %v7310_v14  ;;  %2614 = vmatpush.bf16.msra.mxu3 %v7311_v19 }
 0x497   :  { %2456 = vmatpush.bf16.msrb.mxu0 %v7249_v31  ;;  %2482 = vmatpush.bf16.msrb.mxu2 %v7250_v27 }
 0x499   :  { %2589 = vmatpush.bf16.msra.mxu1 %v5507_v0  ;;  %2615 = vmatpush.bf16.msra.mxu3 %v7312_v5 }
 0x49a   :  { %2345 = vmatmul.bf16.vlgmr.msra.gmra.mxu0 %v2283_v25  ;;  %2371 = vmatmul.bf16.vlgmr.msra.gmra.mxu2 %v2283_v25 }
 0x49b   :  { %2457 = vmatpush.bf16.msrb.mxu0 %v7253_v1  ;;  %2483 = vmatpush.bf16.msrb.mxu2 %v7254_v50 }
 0x49d   :  { %2590 = vmatpush.bf16.msra.mxu1 %v5517_v18  ;;  %2616 = vmatpush.bf16.msra.mxu3 %v7448_v54 }
 0x49f   :  { %2458 = vmatpush.bf16.msrb.mxu0 %v7449_v17  ;;  %2484 = vmatpush.bf16.msrb.mxu2 %v7450_v29 }
 0x4a1   :  { %2591 = vmatpush.bf16.msra.mxu1 %v7451_v6  ;;  %2617 = vmatpush.bf16.msra.mxu3 %v7452_v44 }
 0x4a3   :  { %2459 = vmatpush.bf16.msrb.mxu0 %v7453_v46  ;;  %2485 = vmatpush.bf16.msrb.mxu2 %v7454_v47 }
 0x4a5   :  { %2592 = vmatpush.bf16.msra.mxu1 %v7455_v53  ;;  %2618 = vmatpush.bf16.msra.mxu3 %v7456_v32  ;;  %v7513_v32 = vld [vmem:[#allocation87_spill] sm:$0xff] }
 0x4a7   :  { %2460 = vmatpush.bf16.msrb.mxu0 %v7457_v16  ;;  %2486 = vmatpush.bf16.msrb.mxu2 %v7458_v55 }
 0x4a9   :  { %2593 = vmatpush.bf16.msra.mxu1 %v7460_v57  ;;  %2619 = vmatpush.bf16.msra.mxu3 %v7462_v62  ;;  %v7511_v62 = vld [vmem:[#allocation25_spill] sm:$0xff] }
 0x4aa   :  { %2461 = vmatmul.bf16.vlgmr.msrb.gmra.mxu0 %v2283_v25  ;;  %2487 = vmatmul.bf16.vlgmr.msrb.gmra.mxu2 %v2283_v25  ;;  %v7473_v25 = vld [vmem:[#allocation94_spill] sm:$0xff] }
 0x4ab   :  { %2574 = vmatpush.bf16.msra.mxu0 %v7459_v38  ;;  %2600 = vmatpush.bf16.msra.mxu2 %v7461_v33 }
 0x4ad   :  { %2594 = vmatpush.bf16.msra.mxu1 %v7464_v2  ;;  %2620 = vmatpush.bf16.msra.mxu3 %v7466_v12  ;;  %v7477_v12 = vld [vmem:[#allocation100_spill] sm:$0xff] }
 0x4af   :  { %2575 = vmatpush.bf16.msra.mxu0 %v7463_v59  ;;  %2601 = vmatpush.bf16.msra.mxu2 %v7465_v45 }
 0x4b1   :  { %2639 = vmatpush.bf16.msrb.mxu1 %v7467_v48  ;;  %2665 = vmatpush.bf16.msrb.mxu3 %v7468_v60  ;;  %v7478_v48 = vld [vmem:[#allocation101_spill] sm:$0xff]  ;;  %v7479_v60 = vld [vmem:[#allocation90_spill] sm:$0xff] }
 0x4b3   :  { %2576 = vmatpush.bf16.msra.mxu0 %v7469_v43  ;;  %2602 = vmatpush.bf16.msra.mxu2 %v7470_v42  ;;  %v7480_v43 = vld [vmem:[#allocation93_spill] sm:$0xff]  ;;  %v7481_v42 = vld [vmem:[#allocation106_spill] sm:$0xff] }
 0x4b5   :  { %2640 = vmatpush.bf16.msrb.mxu1 %v7471_v41  ;;  %2666 = vmatpush.bf16.msrb.mxu3 %v7472_v34  ;;  %v7482_v41 = vld [vmem:[#allocation107_spill] sm:$0xff]  ;;  %v7483_v34 = vld [vmem:[#allocation96_spill] sm:$0xff] }
 0x4b7   :  { %2577 = vmatpush.bf16.msra.mxu0 %v7473_v25  ;;  %2603 = vmatpush.bf16.msra.mxu2 %v7474_v30  ;;  %v7484_v25 = vld [vmem:[#allocation97_spill] sm:$0xff]  ;;  %v7485_v30 = vld [vmem:[#allocation112_spill] sm:$0xff] }
 0x4b9   :  { %2641 = vmatpush.bf16.msrb.mxu1 %v7475_v49  ;;  %2667 = vmatpush.bf16.msrb.mxu3 %v7476_v56  ;;  %v7486_v49 = vld [vmem:[#allocation113_spill] sm:$0xff]  ;;  %v7487_v56 = vld [vmem:[#allocation102_spill] sm:$0xff] }
 0x4bb   :  { %2578 = vmatpush.bf16.msra.mxu0 %v7477_v12  ;;  %2604 = vmatpush.bf16.msra.mxu2 %v7478_v48  ;;  %v7488_v12 = vld [vmem:[#allocation103_spill] sm:$0xff]  ;;  %v7489_v48 = vld [vmem:[#allocation116_spill] sm:$0xff] }
 0x4bd   :  { %2642 = vmatpush.bf16.msrb.mxu1 %v7479_v60  ;;  %2668 = vmatpush.bf16.msrb.mxu3 %v7480_v43  ;;  %v7490_v60 = vld [vmem:[#allocation117_spill] sm:$0xff]  ;;  %v7491_v43 = vld [vmem:[#allocation118_spill] sm:$0xff] }
 0x4bf   :  { %2579 = vmatpush.bf16.msra.mxu0 %v7481_v42  ;;  %2605 = vmatpush.bf16.msra.mxu2 %v7482_v41  ;;  %v7492_v42 = vld [vmem:[#allocation108_spill] sm:$0xff]  ;;  %v7493_v41 = vld [vmem:[#allocation121_spill] sm:$0xff] }
 0x4c1   :  { %2643 = vmatpush.bf16.msrb.mxu1 %v7483_v34  ;;  %2669 = vmatpush.bf16.msrb.mxu3 %v7484_v25  ;;  %v7494_v34 = vld [vmem:[#allocation109_spill] sm:$0xff]  ;;  %v7495_v25 = vld [vmem:[#allocation122_spill] sm:$0xff] }
 0x4c3   :  { %2580 = vmatpush.bf16.msra.mxu0 %v7485_v30  ;;  %2606 = vmatpush.bf16.msra.mxu2 %v7486_v49  ;;  %v7496_v30 = vld [vmem:[#allocation114_spill] sm:$0xff]  ;;  %v7497_v49 = vld [vmem:[#allocation123_spill] sm:$0xff] }
 0x4c5   :  { %2644 = vmatpush.bf16.msrb.mxu1 %v7487_v56  ;;  %2670 = vmatpush.bf16.msrb.mxu3 %v7488_v12  ;;  %v7498_v56 = vld [vmem:[#allocation115_spill] sm:$0xff]  ;;  %v7499_v12 = vld [vmem:[#allocation124_spill] sm:$0xff] }
 0x4c7   :  { %2581 = vmatpush.bf16.msra.mxu0 %v7489_v48  ;;  %2607 = vmatpush.bf16.msra.mxu2 %v7490_v60  ;;  %v7500_v48 = vld [vmem:[#allocation125_spill] sm:$0xff]  ;;  %v7501_v60 = vld [vmem:[#allocation126_spill] sm:$0xff] }
 0x4c9   :  { %2645 = vmatpush.bf16.msrb.mxu1 %v7492_v42  ;;  %2671 = vmatpush.bf16.msrb.mxu3 %v7494_v34  ;;  %v7503_v42 = vld [vmem:[#allocation128_spill] sm:$0xff]  ;;  %v7505_v34 = vld [vmem:[#allocation130_spill] sm:$0xff] }
 0x4cb   :  { %2626 = vmatpush.bf16.msrb.mxu0 %v7491_v43  ;;  %2652 = vmatpush.bf16.msrb.mxu2 %v7493_v41  ;;  %v7502_v43 = vld [vmem:[#allocation127_spill] sm:$0xff]  ;;  %v7504_v41 = vld [vmem:[#allocation129_spill] sm:$0xff] }
 0x4cd   :  { %2646 = vmatpush.bf16.msrb.mxu1 %v7496_v30  ;;  %2672 = vmatpush.bf16.msrb.mxu3 %v7498_v56  ;;  %v7507_v30 = vld [vmem:[#allocation132_spill] sm:$0xff]  ;;  %v7509_v56 = vld [vmem:[#allocation134_spill] sm:$0xff] }
 0x4cf   :  { %2627 = vmatpush.bf16.msrb.mxu0 %v7495_v25  ;;  %2653 = vmatpush.bf16.msrb.mxu2 %v7497_v49  ;;  %v7506_v25 = vld [vmem:[#allocation131_spill] sm:$0xff]  ;;  %v7508_v49 = vld [vmem:[#allocation133_spill] sm:$0xff] }
 0x4d3   :  { %2628 = vmatpush.bf16.msrb.mxu0 %v7499_v12  ;;  %2654 = vmatpush.bf16.msrb.mxu2 %v7500_v48  ;;  %v7510_v12 = vld [vmem:[#allocation135_spill] sm:$0xff] }
 0x4d7   :  { %2629 = vmatpush.bf16.msrb.mxu0 %v7501_v60  ;;  %2655 = vmatpush.bf16.msrb.mxu2 %v7502_v43 }
 0x4db   :  { %2630 = vmatpush.bf16.msrb.mxu0 %v7503_v42  ;;  %2656 = vmatpush.bf16.msrb.mxu2 %v7504_v41 }
 0x4df   :  { %2631 = vmatpush.bf16.msrb.mxu0 %v7505_v34  ;;  %2657 = vmatpush.bf16.msrb.mxu2 %v7506_v25 }
 0x4e3   :  { %2632 = vmatpush.bf16.msrb.mxu0 %v7507_v30  ;;  %2658 = vmatpush.bf16.msrb.mxu2 %v7508_v49  ;;  %v7512_v49 = vld [vmem:[#allocation38_spill] sm:$0xff] }
 0x4e7   :  { %2633 = vmatpush.bf16.msrb.mxu0 %v7509_v56  ;;  %2659 = vmatpush.bf16.msrb.mxu2 %v7510_v12 }
 0x4ed   :  { %v2307_v48 = vpop.f32.mrf.mxu1 }
 0x4f3   :  { %v2333_v60 = vpop.f32.mrf.mxu3 }
 0x4f5   :  { %v2309_v45 = vpop.f32.mrf.mxu1 }
 0x4fb   :  { %v2335_v43 = vpop.f32.mrf.mxu3 }
 0x4fd   :  { %v2359_v2 = vpop.f32.mrf.mxu1 }
 0x503   :  { %v2385_v42 = vpop.f32.mrf.mxu3 }
 0x505   :  { %v2361_v59 = vpop.f32.mrf.mxu1 }
 0x507   :  { %v2294_v41 = vpop.f32.mrf.mxu0 }
 0x508   :  { %v2295_v34 = vadd.f32 %v2294_v41, %v7511_v62 }
 0x50a   :  { %v2308_v33 = vadd.f32 %v2307_v48, %v2295_v34  ;;  %v7514_v48 = vld [vmem:[#allocation27_spill] sm:$0xff] }
 0x50b   :  { %v2387_v57 = vpop.f32.mrf.mxu3 }
 0x50c   :  { %v4474_v25 = vmul.f32 -1.442695, %v2308_v33 }
 0x50d   :  { %v2320_v30 = vpop.f32.mrf.mxu2  ;;  %v2475_v55 = vpop.f32.mrf.mxu1 }
 0x50e   :  { %4872 = vpow2.f32 %v4474_v25  ;;  %v2321_v38 = vadd.f32 %v2320_v30, %v7512_v49  ;;  %v2506_v45 = vadd.f32 %v2475_v55, %v7513_v32 }
 0x50f   :  { %v2296_v56 = vpop.f32.mrf.mxu0 }
 0x510   :  { %v2334_v12 = vadd.f32 %v2333_v60, %v2321_v38  ;;  %v4478_v47 = vmul.f32 -1.442695, %v2506_v45  ;;  %v7515_v60 = vld [vmem:[#allocation40_spill] sm:$0xff] }
 0x512   :  { %v4475_v16 = vmul.f32 -1.442695, %v2334_v12 }
 0x513   :  { %v6352_v46 = vpop.f32.mrf.mxu3 }
 0x514   :  { %v4873_v43 = vpop.eup %4872  ;;  %4874 = vpow2.f32 %v4475_v16 }
 0x515   :  { %v2398_v53 = vadd.f32 1.0, %v4873_v43  ;;  %v2322_v59 = vpop.f32.mrf.mxu2  ;;  %v2477_v57 = vpop.f32.mrf.mxu1 }
 0x517   :  { %4876 = vrcp.f32 %v2398_v53  ;;  %v2346_v33 = vpop.f32.mrf.mxu0  ;;  %vm2406_vm13 = vweird.f32 %v2398_v53 }
 0x518   :  { %v2347_v41 = vadd.f32 %v2346_v33, %v7514_v48  ;;  %4878 = vpow2.f32 %v4478_v47 }
 0x51a   :  { %v4875_v34 = vpop.eup %4874  ;;  %v2360_v56 = vadd.f32 %v2359_v2, %v2347_v41 }
 0x51b   :  { %v2399_v30 = vadd.f32 1.0, %v4875_v34  ;;  %v2503_v16 = vpop.f32.mrf.mxu3  ;;  %v2412_v34 = vand.u32 2147483648, %v2398_v53 }
 0x51c   :  { %v4476_v38 = vmul.f32 -1.442695, %v2360_v56 }
 0x51d   :  { %v4877_v12 = vpop.eup %4876  ;;  %4880 = vrcp.f32 %v2399_v30  ;;  %v2372_v32 = vpop.f32.mrf.mxu2  ;;  %vm2421_vm0 = vweird.f32 %v2399_v30 }
 0x51e   :  { %v2402_v55 = vmul.f32 %v4877_v12, %v2398_v53  ;;  %4882 = vpow2.f32 %v4476_v38  ;;  %v2373_v25 = vadd.f32 %v2372_v32, %v7515_v60  ;;  %v4879_v43 = vpop.eup %4878  ;;  %vm2407_vm12 = vweird.f32 %v4877_v12 }
 0x51f   :  { %v2348_v45 = vpop.f32.mrf.mxu0  ;;  %v6356_v33 = vadd.f32 1.0, %v4879_v43  ;;  %v2410_v38 = vand.u32 2147483647, %v2398_v53  ;;  %v2427_v32 = vand.u32 2147483648, %v2399_v30  ;;  %vm6359_vm14 = vmor %vm2406_vm13, %vm2407_vm12  ;;  %v2413_v43 = vor.u32 1.1754944e-38, %v2412_v34 }
 0x520   :  { %v2403_v59 = vsub.f32 1.0, %v2402_v55  ;;  %v2386_v49 = vadd.f32 %v2385_v42, %v2373_v25  ;;  %v2425_v55 = vand.u32 2147483647, %v2399_v30 }
 0x521   :  { %vm2411_vm1 = vcmp.eq.f32.partialorder %v2410_v38, 8.507059e+37  ;;  %vm2541_vm9 = vweird.f32 %v6356_v33 }
 0x522   :  { %v2404_v57 = vmul.f32 %v4877_v12, %v2403_v59  ;;  %4884 = vtanh.f32 %v2386_v49  ;;  %v7518_v59 = vld [vmem:[#allocation86_spill] sm:$0xff]  ;;  %vm2426_vm3 = vcmp.eq.f32.partialorder %v2425_v55, 8.507059e+37 }
 0x523   :  { %v4881_v62 = vpop.eup %4880  ;;  %4886 = vrcp.f32 %v6356_v33 }
 0x524   :  { %v2417_v47 = vmul.f32 %v4881_v62, %v2399_v30  ;;  %v2405_v2 = vadd.f32 %v4877_v12, %v2404_v57  ;;  %v4883_v41 = vpop.eup %4882  ;;  %vm2422_vm15 = vweird.f32 %v4881_v62  ;;  %v7519_v30 = vld [vmem:[#allocation81_spill] sm:$0xff] }
 0x525   :  { %v2374_v56 = vpop.f32.mrf.mxu2  ;;  %v2400_v16 = vadd.f32 1.0, %v4883_v41  ;;  %vm2423_vm2 = vmor %vm2421_vm0, %vm2422_vm15  ;;  %v2428_v41 = vor.u32 1.1754944e-38, %v2427_v32 }
 0x526   :  { %v2418_v48 = vsub.f32 1.0, %v2417_v47  ;;  %v2409_v49 = vsel %vm6359_vm14, %v4877_v12, %v2405_v2 }
 0x527   :  { %v2462_v25 = vpop.f32.mrf.mxu0  ;;  %4888 = vrcp.f32 %v2400_v16  ;;  %v2414_v56 = vsel %vm2411_vm1, %v2413_v43, %v2409_v49  ;;  %v2442_v49 = vand.u32 2147483648, %v2400_v16  ;;  %vm2436_vm5 = vweird.f32 %v2400_v16 }
 0x528   :  { %v2419_v45 = vmul.f32 %v4881_v62, %v2418_v48  ;;  %v2505_v57 = vadd.f32 %v2462_v25, %v7518_v59  ;;  %v4885_v47 = vpop.eup %4884 }
 0x529   :  { %v6366_v6 = vpop.eup %4886  ;;  %v2448_v2 = vmul.f32 %v4885_v47, %v2414_v56 }
 0x52a   :  { %v2420_v53 = vadd.f32 %v4881_v62, %v2419_v45  ;;  %v4477_v60 = vmul.f32 -1.442695, %v2505_v57  ;;  %v2537_v32 = vmul.f32 %v6366_v6, %v6356_v33  ;;  %vm2542_vm8 = vweird.f32 %v6366_v6 }
 0x52b   :  { %vm6389_vm10 = vmor %vm2541_vm9, %vm2542_vm8 }
 0x52c   :  { %v2424_v44 = vsel %vm2423_vm2, %v4881_v62, %v2420_v53  ;;  %4890 = vpow2.f32 %v4477_v60  ;;  %v2538_v59 = vsub.f32 1.0, %v2537_v32  ;;  %v2443_v53 = vor.u32 1.1754944e-38, %v2442_v49 }
 0x52d   :  { %v2429_v48 = vsel %vm2426_vm3, %v2428_v41, %v2424_v44  ;;  %v4889_v29 = vpop.eup %4888  ;;  %v2488_v34 = vpop.f32.mrf.mxu2 }
 0x52e   :  { %v2447_v12 = vmul.f32 %v2429_v48, %v6224_v23  ;;  %v2432_v42 = vmul.f32 %v4889_v29, %v2400_v16  ;;  %v2507_v38 = vadd.f32 %v2488_v34, %v7519_v30  ;;  %vm2437_vm4 = vweird.f32 %v4889_v29 }
 0x52f   :  { %v2464_v25 = vpop.f32.mrf.mxu0  ;;  %v2440_v23 = vand.u32 2147483647, %v2400_v16  ;;  %vm2438_vm6 = vmor %vm2436_vm5, %vm2437_vm4  ;;  %v7521_v16 = vld [vmem:[#allocation82_spill] sm:$0xff] }
 0x530   :  { %v6370_v45 = vadd.f32 %v2448_v2, %v2447_v12  ;;  %v2433_v62 = vsub.f32 1.0, %v2432_v42  ;;  %v4479_v55 = vmul.f32 -1.442695, %v2507_v38  ;;  %v2539_v2 = vmul.f32 %v6366_v6, %v2538_v59 }
 0x531   :  { %vm2441_vm7 = vcmp.eq.f32.partialorder %v2440_v23, 8.507059e+37  ;;  %v2508_v25 = vadd.f32 %v6352_v46, %v7521_v16 }
 0x532   :  { %4892 = vtanh.f32 %v6370_v45  ;;  %v4891_v44 = vpop.eup %4890  ;;  %v2434_v60 = vmul.f32 %v4889_v29, %v2433_v62  ;;  %v2540_v32 = vadd.f32 %v6366_v6, %v2539_v2  ;;  %v2547_v62 = vand.u32 2147483648, %v6356_v33 }
 0x533   :  { %4894 = vpow2.f32 %v4479_v55  ;;  %v2518_v43 = vadd.f32 1.0, %v4891_v44  ;;  %v2545_v55 = vand.u32 2147483647, %v6356_v33 }
 0x534   :  { %v2435_v57 = vadd.f32 %v4889_v29, %v2434_v60  ;;  %v2544_v60 = vsel %vm6389_vm10, %v6366_v6, %v2540_v32 }
 0x535   :  { %4896 = vrcp.f32 %v2518_v43  ;;  %v2490_v47 = vpop.f32.mrf.mxu2  ;;  %v2532_v44 = vand.u32 2147483648, %v2518_v43  ;;  %v2530_v59 = vand.u32 2147483647, %v2518_v43  ;;  %vm2546_vm12 = vcmp.eq.f32.partialorder %v2545_v55, 8.507059e+37 }
 0x536   :  { %v2439_v41 = vsel %vm2438_vm6, %v4889_v29, %v2435_v57  ;;  %vm2526_vm13 = vweird.f32 %v2518_v43 }
 0x537   :  { %v2444_v48 = vsel %vm2441_vm7, %v2443_v53, %v2439_v41  ;;  %v2548_v53 = vor.u32 1.1754944e-38, %v2547_v62  ;;  %vm2531_vm15 = vcmp.eq.f32.partialorder %v2530_v59, 8.507059e+37  ;;  %v7527_v59 = vld [vmem:[#allocation31_spill] sm:$0xff] }
 0x538   :  { %v4893_v56 = vpop.eup %4892 }
 0x539   :  { %v4895_v12 = vpop.eup %4894  ;;  %v6376_v34 = vmul.f32 %v4893_v56, %v2444_v48  ;;  %v2549_v41 = vsel %vm2546_vm12, %v2548_v53, %v2544_v60  ;;  %v2533_v56 = vor.u32 1.1754944e-38, %v2532_v44  ;;  %v7529_v53 = vld [vmem:[#allocation60_spill] sm:$0xff] }
 0x53a   :  { %v2520_v42 = vadd.f32 1.0, %v4895_v12  ;;  %v2567_v16 = vmul.f32 %v2549_v41, %v6256_v3  ;;  %v7532_v41 = vld [vmem:[#allocation45_spill] sm:$0xff] }
 0x53b   :  { %7520 = vst [vmem:[#allocation50_spill] sm:$0xff] %v6376_v34  ;;  %v2573_v30 = vpack.c.bf16 %v6376_v34, %v6376_v34  ;;  %v4897_v38 = vpop.eup %4896  ;;  %v7550_v34 = vld [vmem:[#allocation85_spill] sm:$0xff] }
 0x53c   :  { %4898 = vrcp.f32 %v2520_v42  ;;  %v2522_v29 = vmul.f32 %v4897_v38, %v2518_v43  ;;  %vm2527_vm11 = vweird.f32 %v4897_v38  ;;  %vm2556_vm1 = vweird.f32 %v2520_v42 }
 0x53d   :  { %2595 = vmatmul.bf16.vlgmr.msra.gmra.mxu1 %v2573_v30  ;;  %2621 = vmatmul.bf16.vlgmr.msra.gmra.mxu3 %v2573_v30  ;;  %4900 = vtanh.f32 %v2508_v25  ;;  %vm2528_vm14 = vmor %vm2526_vm13, %vm2527_vm11  ;;  %v2560_v62 = vand.u32 2147483647, %v2520_v42 }
 0x53e   :  { %2755 = vmatpush.bf16.msra.mxu1 %v7295_v36  ;;  %2781 = vmatpush.bf16.msra.mxu3 %v7296_v10  ;;  %v2523_v49 = vsub.f32 1.0, %v2522_v29 }
 0x53f   :  { %vm2561_vm3 = vcmp.eq.f32.partialorder %v2560_v62, 8.507059e+37  ;;  %v7543_v62 = vld [vmem:[#allocation88_spill] sm:$0xff] }
 0x540   :  { %v2524_v23 = vmul.f32 %v4897_v38, %v2523_v49 }
 0x542   :  { %v4899_v57 = vpop.eup %4898  ;;  %2756 = vmatpush.bf16.msra.mxu1 %v7299_v40  ;;  %2782 = vmatpush.bf16.msra.mxu3 %v7370_v28  ;;  %v2525_v33 = vadd.f32 %v4897_v38, %v2524_v23  ;;  %v7526_v23 = vld [vmem:[#allocation57_spill] sm:$0xff] }
 0x543   :  { %v2552_v47 = vmul.f32 %v4899_v57, %v2520_v42  ;;  %v4901_v6 = vpop.eup %4900  ;;  %vm2557_vm0 = vweird.f32 %v4899_v57 }
 0x544   :  { %v2529_v48 = vsel %vm2528_vm14, %v4897_v38, %v2525_v33  ;;  %v2562_v38 = vand.u32 2147483648, %v2520_v42  ;;  %vm2558_vm2 = vmor %vm2556_vm1, %vm2557_vm0  ;;  %v7524_v42 = vld [vmem:[#allocation42_spill] sm:$0xff]  ;;  %v7530_v33 = vld [vmem:[#allocation61_spill] sm:$0xff] }
 0x545   :  { %v2553_v12 = vsub.f32 1.0, %v2552_v47  ;;  %v2534_v2 = vsel %vm2531_vm15, %v2533_v56, %v2529_v48  ;;  %v7531_v47 = vld [vmem:[#allocation33_spill] sm:$0xff]  ;;  %v7533_v56 = vld [vmem:[#allocation70_spill] sm:$0xff] }
 0x546   :  { %2757 = vmatpush.bf16.msra.mxu1 %v7301_v58  ;;  %2783 = vmatpush.bf16.msra.mxu3 %v5450_v26  ;;  %v2568_v25 = vmul.f32 %v4901_v6, %v2534_v2  ;;  %v2563_v3 = vor.u32 1.1754944e-38, %v2562_v38  ;;  %v7534_v48 = vld [vmem:[#allocation66_spill] sm:$0xff]  ;;  %v7536_v6 = vld [vmem:[#allocation67_spill] sm:$0xff]  ;;  %v7542_v38 = vld [vmem:[#allocation76_spill] sm:$0xff] }
 0x547   :  { %v2554_v32 = vmul.f32 %v4899_v57, %v2553_v12  ;;  %v7535_v12 = vld [vmem:[#allocation77_spill] sm:$0xff]  ;;  %v7537_v2 = vld [vmem:[#allocation78_spill] sm:$0xff] }
 0x548   :  { %v6401_v29 = vadd.f32 %v2568_v25, %v2567_v16  ;;  %v7538_v16 = vld [vmem:[#allocation71_spill] sm:$0xff] }
 0x549   :  { %v2555_v43 = vadd.f32 %v4899_v57, %v2554_v32  ;;  %v7539_v25 = vld [vmem:[#allocation83_spill] sm:$0xff]  ;;  %v7540_v32 = vld [vmem:[#allocation72_spill] sm:$0xff] }
 0x54a   :  { %2758 = vmatpush.bf16.msra.mxu1 %v7302_v4  ;;  %2784 = vmatpush.bf16.msra.mxu3 %v7303_v11  ;;  %4902 = vtanh.f32 %v6401_v29 }
 0x54b   :  { %v2559_v55 = vsel %vm2558_vm2, %v4899_v57, %v2555_v43  ;;  %v7528_v57 = vld [vmem:[#allocation44_spill] sm:$0xff]  ;;  %v7541_v43 = vld [vmem:[#allocation73_spill] sm:$0xff] }
 0x54c   :  { %v2564_v46 = vsel %vm2561_vm3, %v2563_v3, %v2559_v55  ;;  %v7544_v55 = vld [vmem:[#allocation89_spill] sm:$0xff]  ;;  %v7545_v3 = vld [vmem:[#allocation79_spill] sm:$0xff] }
 0x54d   :  { %2647 = vmatmul.bf16.vlgmr.msrb.gmra.mxu1 %v2573_v30  ;;  %2673 = vmatmul.bf16.vlgmr.msrb.gmra.mxu3 %v2573_v30  ;;  %v7525_v30 = vld [vmem:[#allocation54_spill] sm:$0xff] }
 0x54e   :  { %2759 = vmatpush.bf16.msra.mxu1 %v7304_v52  ;;  %2785 = vmatpush.bf16.msra.mxu3 %v7305_v21 }
 0x550   :  { %v4903_v49 = vpop.eup %4902 }
 0x551   :  { %v2571_v44 = vmul.f32 %v4903_v49, %v2564_v46  ;;  %v7546_v49 = vld [vmem:[#allocation80_spill] sm:$0xff]  ;;  %v7547_v46 = vld [vmem:[#allocation94_spill] sm:$0xff] }
 0x552   :  { %2760 = vmatpush.bf16.msra.mxu1 %v7306_v63  ;;  %2786 = vmatpush.bf16.msra.mxu3 %v7307_v51 }
 0x553   :  { %v2572_v60 = vpack.c.bf16 %v2571_v44, %v2571_v44  ;;  %v7548_v44 = vld [vmem:[#allocation95_spill] sm:$0xff] }
 0x555   :  { %2582 = vmatmul.bf16.vlgmr.msra.gmra.mxu0 %v2572_v60  ;;  %2608 = vmatmul.bf16.vlgmr.msra.gmra.mxu2 %v2572_v60 }
 0x556   :  { %2742 = vmatpush.bf16.msra.mxu0 %v5388_v7  ;;  %2761 = vmatpush.bf16.msra.mxu1 %v7308_v15 }
 0x557   :  { %2768 = vmatpush.bf16.msra.mxu2 %v5434_v8  ;;  %2787 = vmatpush.bf16.msra.mxu3 %v5474_v9 }
 0x55a   :  { %2743 = vmatpush.bf16.msra.mxu0 %v5393_v13  ;;  %2762 = vmatpush.bf16.msra.mxu1 %v7309_v35 }
 0x55b   :  { %2769 = vmatpush.bf16.msra.mxu2 %v5442_v22  ;;  %2788 = vmatpush.bf16.msra.mxu3 %v5480_v20 }
 0x55d   :  { %2763 = vmatmul.bf16.vlgmr.msra.gmra.mxu1 %v2572_v60 }
 0x55e   :  { %2876 = vmatpush.bf16.msrb.mxu1 %v5487_v37  ;;  %2789 = vmatmul.bf16.vlgmr.msra.gmra.mxu3 %v2572_v60 }
 0x55f   :  { %2902 = vmatpush.bf16.msrb.mxu3 %v5489_v39  ;;  %2744 = vmatpush.bf16.msra.mxu0 %v7246_v61 }
 0x560   :  { %2770 = vmatpush.bf16.msra.mxu2 %v7247_v24 }
 0x562   :  { %2877 = vmatpush.bf16.msrb.mxu1 %v7310_v14 }
 0x563   :  { %2903 = vmatpush.bf16.msrb.mxu3 %v7311_v19  ;;  %2745 = vmatpush.bf16.msra.mxu0 %v7249_v31 }
 0x564   :  { %2771 = vmatpush.bf16.msra.mxu2 %v7250_v27 }
 0x565   :  { %2634 = vmatmul.bf16.vlgmr.msrb.gmra.mxu0 %v2572_v60  ;;  %2660 = vmatmul.bf16.vlgmr.msrb.gmra.mxu2 %v2572_v60 }
 0x566   :  { %2878 = vmatpush.bf16.msrb.mxu1 %v5507_v0 }
 0x567   :  { %2904 = vmatpush.bf16.msrb.mxu3 %v7312_v5  ;;  %2746 = vmatpush.bf16.msra.mxu0 %v7253_v1 }
 0x568   :  { %2772 = vmatpush.bf16.msra.mxu2 %v7254_v50 }
 0x56a   :  { %2879 = vmatpush.bf16.msrb.mxu1 %v5517_v18 }
 0x56b   :  { %2905 = vmatpush.bf16.msrb.mxu3 %v7448_v54  ;;  %2747 = vmatpush.bf16.msra.mxu0 %v7449_v17 }
 0x56c   :  { %2773 = vmatpush.bf16.msra.mxu2 %v7524_v42  ;;  %v7596_v42 = vld [vmem:[#allocation91_spill] sm:$0xff] }
 0x56e   :  { %2880 = vmatpush.bf16.msrb.mxu1 %v7525_v30 }
 0x56f   :  { %2906 = vmatpush.bf16.msrb.mxu3 %v7526_v23  ;;  %2748 = vmatpush.bf16.msra.mxu0 %v7527_v59 }
 0x570   :  { %2774 = vmatpush.bf16.msra.mxu2 %v7528_v57 }
 0x572   :  { %2881 = vmatpush.bf16.msrb.mxu1 %v7529_v53 }
 0x573   :  { %2907 = vmatpush.bf16.msrb.mxu3 %v7530_v33  ;;  %2749 = vmatpush.bf16.msra.mxu0 %v7531_v47  ;;  %v7588_v47 = vld [vmem:[#allocation99_spill] sm:$0xff] }
 0x574   :  { %2775 = vmatpush.bf16.msra.mxu2 %v7532_v41 }
 0x576   :  { %2882 = vmatpush.bf16.msrb.mxu1 %v7534_v48  ;;  %2750 = vmatmul.bf16.vlgmr.msra.gmra.mxu0 %v2572_v60 }
 0x577   :  { %2863 = vmatpush.bf16.msrb.mxu0 %v7533_v56  ;;  %2908 = vmatpush.bf16.msrb.mxu3 %v7536_v6  ;;  %v7585_v6 = vld [vmem:[#allocation25_spill] sm:$0xff] }
 0x578   :  { %2889 = vmatpush.bf16.msrb.mxu2 %v7535_v12 }
 0x579   :  { %2776 = vmatmul.bf16.vlgmr.msra.gmra.mxu2 %v2572_v60  ;;  %v7549_v60 = vld [vmem:[#allocation84_spill] sm:$0xff] }
 0x57a   :  { %2883 = vmatpush.bf16.msrb.mxu1 %v7538_v16 }
 0x57b   :  { %2864 = vmatpush.bf16.msrb.mxu0 %v7537_v2  ;;  %2909 = vmatpush.bf16.msrb.mxu3 %v7540_v32  ;;  %v7551_v32 = vld [vmem:[#allocation100_spill] sm:$0xff] }
 0x57c   :  { %2890 = vmatpush.bf16.msrb.mxu2 %v7539_v25 }
 0x57e   :  { %2928 = vmatpush.bf16.msra.mxu1 %v7541_v43  ;;  %v7552_v43 = vld [vmem:[#allocation101_spill] sm:$0xff] }
 0x57f   :  { %2954 = vmatpush.bf16.msra.mxu3 %v7542_v38  ;;  %2865 = vmatpush.bf16.msrb.mxu0 %v7543_v62  ;;  %v7553_v38 = vld [vmem:[#allocation90_spill] sm:$0xff]  ;;  %v7554_v62 = vld [vmem:[#allocation93_spill] sm:$0xff] }
 0x580   :  { %2891 = vmatpush.bf16.msrb.mxu2 %v7544_v55  ;;  %v7555_v55 = vld [vmem:[#allocation106_spill] sm:$0xff] }
 0x582   :  { %2929 = vmatpush.bf16.msra.mxu1 %v7545_v3  ;;  %v7556_v3 = vld [vmem:[#allocation107_spill] sm:$0xff] }
 0x583   :  { %2955 = vmatpush.bf16.msra.mxu3 %v7546_v49  ;;  %2866 = vmatpush.bf16.msrb.mxu0 %v7547_v46  ;;  %v7557_v49 = vld [vmem:[#allocation96_spill] sm:$0xff]  ;;  %v7558_v46 = vld [vmem:[#allocation97_spill] sm:$0xff] }
 0x584   :  { %2892 = vmatpush.bf16.msrb.mxu2 %v7548_v44  ;;  %v7559_v44 = vld [vmem:[#allocation112_spill] sm:$0xff] }
 0x586   :  { %2930 = vmatpush.bf16.msra.mxu1 %v7549_v60  ;;  %v7560_v60 = vld [vmem:[#allocation113_spill] sm:$0xff] }
 0x587   :  { %2956 = vmatpush.bf16.msra.mxu3 %v7550_v34  ;;  %2867 = vmatpush.bf16.msrb.mxu0 %v7551_v32  ;;  %v7561_v34 = vld [vmem:[#allocation102_spill] sm:$0xff]  ;;  %v7562_v32 = vld [vmem:[#allocation103_spill] sm:$0xff] }
 0x588   :  { %2893 = vmatpush.bf16.msrb.mxu2 %v7552_v43  ;;  %v7563_v43 = vld [vmem:[#allocation116_spill] sm:$0xff] }
 0x58a   :  { %2931 = vmatpush.bf16.msra.mxu1 %v7553_v38  ;;  %v7564_v38 = vld [vmem:[#allocation117_spill] sm:$0xff] }
 0x58b   :  { %2957 = vmatpush.bf16.msra.mxu3 %v7554_v62  ;;  %2868 = vmatpush.bf16.msrb.mxu0 %v7555_v55  ;;  %v7565_v62 = vld [vmem:[#allocation118_spill] sm:$0xff]  ;;  %v7566_v55 = vld [vmem:[#allocation108_spill] sm:$0xff] }
 0x58c   :  { %2894 = vmatpush.bf16.msrb.mxu2 %v7556_v3  ;;  %v7567_v3 = vld [vmem:[#allocation121_spill] sm:$0xff] }
 0x58e   :  { %2932 = vmatpush.bf16.msra.mxu1 %v7557_v49  ;;  %v7568_v49 = vld [vmem:[#allocation109_spill] sm:$0xff] }
 0x58f   :  { %2958 = vmatpush.bf16.msra.mxu3 %v7558_v46  ;;  %2869 = vmatpush.bf16.msrb.mxu0 %v7559_v44  ;;  %v7569_v46 = vld [vmem:[#allocation122_spill] sm:$0xff] }
 0x590   :  { %2895 = vmatpush.bf16.msrb.mxu2 %v7560_v60  ;;  %v7570_v44 = vld [vmem:[#allocation114_spill] sm:$0xff]  ;;  %v7571_v60 = vld [vmem:[#allocation123_spill] sm:$0xff] }
 0x592   :  { %2933 = vmatpush.bf16.msra.mxu1 %v7561_v34  ;;  %v7572_v34 = vld [vmem:[#allocation115_spill] sm:$0xff] }
 0x593   :  { %2959 = vmatpush.bf16.msra.mxu3 %v7562_v32  ;;  %2870 = vmatpush.bf16.msrb.mxu0 %v7563_v43  ;;  %v7573_v32 = vld [vmem:[#allocation124_spill] sm:$0xff]  ;;  %v7574_v43 = vld [vmem:[#allocation125_spill] sm:$0xff] }
 0x594   :  { %2896 = vmatpush.bf16.msrb.mxu2 %v7564_v38  ;;  %v7575_v38 = vld [vmem:[#allocation126_spill] sm:$0xff] }
 0x596   :  { %2934 = vmatpush.bf16.msra.mxu1 %v7566_v55  ;;  %v7577_v55 = vld [vmem:[#allocation128_spill] sm:$0xff] }
 0x597   :  { %2915 = vmatpush.bf16.msra.mxu0 %v7565_v62  ;;  %2960 = vmatpush.bf16.msra.mxu3 %v7568_v49  ;;  %v7576_v62 = vld [vmem:[#allocation127_spill] sm:$0xff]  ;;  %v7579_v49 = vld [vmem:[#allocation130_spill] sm:$0xff] }
 0x598   :  { %2941 = vmatpush.bf16.msra.mxu2 %v7567_v3  ;;  %v7578_v3 = vld [vmem:[#allocation129_spill] sm:$0xff] }
 0x59a   :  { %2935 = vmatpush.bf16.msra.mxu1 %v7570_v44  ;;  %v7581_v44 = vld [vmem:[#allocation132_spill] sm:$0xff] }
 0x59b   :  { %2916 = vmatpush.bf16.msra.mxu0 %v7569_v46  ;;  %2961 = vmatpush.bf16.msra.mxu3 %v7572_v34  ;;  %v7580_v46 = vld [vmem:[#allocation131_spill] sm:$0xff]  ;;  %v7583_v34 = vld [vmem:[#allocation134_spill] sm:$0xff] }
 0x59c   :  { %2942 = vmatpush.bf16.msra.mxu2 %v7571_v60  ;;  %v7582_v60 = vld [vmem:[#allocation133_spill] sm:$0xff] }
 0x59f   :  { %2917 = vmatpush.bf16.msra.mxu0 %v7573_v32  ;;  %v7584_v32 = vld [vmem:[#allocation135_spill] sm:$0xff] }
 0x5a0   :  { %2943 = vmatpush.bf16.msra.mxu2 %v7574_v43 }
 0x5a3   :  { %2918 = vmatpush.bf16.msra.mxu0 %v7575_v38 }
 0x5a4   :  { %2944 = vmatpush.bf16.msra.mxu2 %v7576_v62 }
 0x5a7   :  { %2919 = vmatpush.bf16.msra.mxu0 %v7577_v55 }
 0x5a8   :  { %2945 = vmatpush.bf16.msra.mxu2 %v7578_v3 }
 0x5ab   :  { %2920 = vmatpush.bf16.msra.mxu0 %v7579_v49 }
 0x5ac   :  { %2946 = vmatpush.bf16.msra.mxu2 %v7580_v46 }
 0x5af   :  { %2921 = vmatpush.bf16.msra.mxu0 %v7581_v44 }
 0x5b0   :  { %2947 = vmatpush.bf16.msra.mxu2 %v7582_v60  ;;  %v7586_v60 = vld [vmem:[#allocation38_spill] sm:$0xff] }
 0x5b3   :  { %2922 = vmatpush.bf16.msra.mxu0 %v7583_v34 }
 0x5b4   :  { %2948 = vmatpush.bf16.msra.mxu2 %v7584_v32  ;;  %v7587_v32 = vld [vmem:[#allocation63_spill] sm:$0xff] }
 0x5b5   :  { %v639_v33 = vadd.f32 %v7588_v47, %v7587_v32 }
 0x5ba   :  { %v2596_v43 = vpop.f32.mrf.mxu1 }
 0x5c0   :  { %v2622_v38 = vpop.f32.mrf.mxu3 }
 0x5c2   :  { %v2598_v25 = vpop.f32.mrf.mxu1 }
 0x5c8   :  { %v2624_v62 = vpop.f32.mrf.mxu3 }
 0x5ca   :  { %v2648_v16 = vpop.f32.mrf.mxu1 }
 0x5d0   :  { %v2674_v55 = vpop.f32.mrf.mxu3 }
 0x5d2   :  { %v2650_v2 = vpop.f32.mrf.mxu1  ;;  %v2583_v3 = vpop.f32.mrf.mxu0 }
 0x5d3   :  { %v2584_v49 = vadd.f32 %v2583_v3, %v7585_v6 }
 0x5d5   :  { %v2597_v12 = vadd.f32 %v2596_v43, %v2584_v49  ;;  %v7589_v49 = vld [vmem:[#allocation27_spill] sm:$0xff] }
 0x5d7   :  { %v4480_v46 = vmul.f32 -1.442695, %v2597_v12 }
 0x5d8   :  { %v2676_v48 = vpop.f32.mrf.mxu3  ;;  %v2609_v44 = vpop.f32.mrf.mxu2 }
 0x5d9   :  { %4904 = vpow2.f32 %v4480_v46  ;;  %v2610_v56 = vadd.f32 %v2609_v44, %v7586_v60 }
 0x5da   :  { %v2585_v34 = vpop.f32.mrf.mxu0  ;;  %v2764_v41 = vpop.f32.mrf.mxu1 }
 0x5db   :  { %v2623_v25 = vadd.f32 %v2622_v38, %v2610_v56  ;;  %v2795_v53 = vadd.f32 %v2764_v41, %v639_v33 }
 0x5dd   :  { %v4481_v62 = vmul.f32 -1.442695, %v2623_v25  ;;  %v4484_v3 = vmul.f32 -1.442695, %v2795_v53 }
 0x5df   :  { %v4905_v57 = vpop.eup %4904  ;;  %4906 = vpow2.f32 %v4481_v62 }
 0x5e0   :  { %v2687_v2 = vadd.f32 1.0, %v4905_v57  ;;  %v2611_v59 = vpop.f32.mrf.mxu2 }
 0x5e1   :  { %v6498_v43 = vpop.f32.mrf.mxu3  ;;  %v7590_v59 = vld [vmem:[#allocation40_spill] sm:$0xff] }
 0x5e2   :  { %4908 = vrcp.f32 %v2687_v2  ;;  %v2635_v48 = vpop.f32.mrf.mxu0  ;;  %v2766_v12 = vpop.f32.mrf.mxu1  ;;  %vm2695_vm5 = vweird.f32 %v2687_v2 }
 0x5e3   :  { %v2636_v46 = vadd.f32 %v2635_v48, %v7589_v49  ;;  %4910 = vpow2.f32 %v4484_v3 }
 0x5e5   :  { %v4907_v34 = vpop.eup %4906  ;;  %v2649_v44 = vadd.f32 %v2648_v16, %v2636_v46 }
 0x5e6   :  { %v2688_v60 = vadd.f32 1.0, %v4907_v34  ;;  %v2701_v34 = vand.u32 2147483648, %v2687_v2 }
 0x5e7   :  { %v4482_v47 = vmul.f32 -1.442695, %v2649_v44 }
 0x5e8   :  { %v4909_v56 = vpop.eup %4908  ;;  %4912 = vrcp.f32 %v2688_v60  ;;  %v2661_v33 = vpop.f32.mrf.mxu2  ;;  %vm2710_vm8 = vweird.f32 %v2688_v60 }
 0x5e9   :  { %v2691_v41 = vmul.f32 %v4909_v56, %v2687_v2  ;;  %v2792_v38 = vpop.f32.mrf.mxu3  ;;  %4914 = vpow2.f32 %v4482_v47  ;;  %v2662_v57 = vadd.f32 %v2661_v33, %v7590_v59  ;;  %v4911_v25 = vpop.eup %4910  ;;  %vm2696_vm4 = vweird.f32 %v4909_v56  ;;  %v7591_v33 = vld [vmem:[#allocation62_spill] sm:$0xff] }
 0x5ea   :  { %v2637_v53 = vpop.f32.mrf.mxu0  ;;  %v6502_v48 = vadd.f32 1.0, %v4911_v25  ;;  %v2699_v47 = vand.u32 2147483647, %v2687_v2  ;;  %vm6507_vm6 = vmor %vm2695_vm5, %vm2696_vm4 }
 0x5eb   :  { %v2692_v62 = vsub.f32 1.0, %v2691_v41  ;;  %v2675_v32 = vadd.f32 %v2674_v55, %v2662_v57  ;;  %v7592_v53 = vld [vmem:[#allocation98_spill] sm:$0xff]  ;;  %v2716_v41 = vand.u32 2147483648, %v2688_v60  ;;  %v2714_v57 = vand.u32 2147483647, %v2688_v60 }
 0x5ec   :  { %v610_v59 = vadd.f32 %v7592_v53, %v7591_v33  ;;  %vm2700_vm9 = vcmp.eq.f32.partialorder %v2699_v47, 8.507059e+37  ;;  %vm2830_vm1 = vweird.f32 %v6502_v48 }
 0x5ed   :  { %v2693_v12 = vmul.f32 %v4909_v56, %v2692_v62  ;;  %4916 = vtanh.f32 %v2675_v32  ;;  %vm2715_vm11 = vcmp.eq.f32.partialorder %v2714_v57, 8.507059e+37 }
 0x5ee   :  { %v4913_v6 = vpop.eup %4912  ;;  %4918 = vrcp.f32 %v6502_v48 }
 0x5ef   :  { %v2706_v3 = vmul.f32 %v4913_v6, %v2688_v60  ;;  %v2694_v16 = vadd.f32 %v4909_v56, %v2693_v12  ;;  %v4915_v46 = vpop.eup %4914  ;;  %vm2711_vm7 = vweird.f32 %v4913_v6  ;;  %v2702_v12 = vor.u32 1.1754944e-38, %v2701_v34 }
 0x5f0   :  { %v2663_v44 = vpop.f32.mrf.mxu2  ;;  %v2689_v38 = vadd.f32 1.0, %v4915_v46  ;;  %vm2712_vm10 = vmor %vm2710_vm8, %vm2711_vm7 }
 0x5f1   :  { %v2707_v49 = vsub.f32 1.0, %v2706_v3  ;;  %v2698_v32 = vsel %vm6507_vm6, %v4909_v56, %v2694_v16  ;;  %v2717_v44 = vor.u32 1.1754944e-38, %v2716_v41 }
 0x5f2   :  { %4920 = vrcp.f32 %v2689_v38  ;;  %v2703_v53 = vsel %vm2700_vm9, %v2702_v12, %v2698_v32  ;;  %vm2725_vm13 = vweird.f32 %v2689_v38 }
 0x5f3   :  { %v2751_v25 = vpop.f32.mrf.mxu0  ;;  %v2708_v62 = vmul.f32 %v4913_v6, %v2707_v49  ;;  %v4917_v46 = vpop.eup %4916  ;;  %v7595_v49 = vld [vmem:[#allocation55_spill] sm:$0xff] }
 0x5f4   :  { %v2794_v2 = vadd.f32 %v2751_v25, %v610_v59  ;;  %v6513_v30 = vpop.eup %4918  ;;  %v668_v17 = vadd.f32 %v7596_v42, %v7595_v49  ;;  %v2737_v60 = vmul.f32 %v4917_v46, %v2703_v53  ;;  %v7630_v49 = vld [vmem:[#allocation85_spill] sm:$0xff] }
 0x5f5   :  { %v2709_v3 = vadd.f32 %v4913_v6, %v2708_v62  ;;  %v2731_v62 = vand.u32 2147483648, %v2689_v38  ;;  %vm2831_vm0 = vweird.f32 %v6513_v30 }
 0x5f6   :  { %v4483_v33 = vmul.f32 -1.442695, %v2794_v2  ;;  %vm6538_vm2 = vmor %vm2830_vm1, %vm2831_vm0 }
 0x5f7   :  { %v2713_v23 = vsel %vm2712_vm10, %v4913_v6, %v2709_v3  ;;  %v2826_v6 = vmul.f32 %v6513_v30, %v6502_v48  ;;  %v2732_v32 = vor.u32 1.1754944e-38, %v2731_v62  ;;  %v2834_v62 = vand.u32 2147483647, %v6502_v48 }
 0x5f8   :  { %v2718_v54 = vsel %vm2715_vm11, %v2717_v44, %v2713_v23  ;;  %4922 = vpow2.f32 %v4483_v33  ;;  %v4921_v56 = vpop.eup %4920 }
 0x5f9   :  { %v2736_v59 = vmul.f32 %v2718_v54, %v6370_v45  ;;  %v2721_v34 = vmul.f32 %v4921_v56, %v2689_v38  ;;  %vm2726_vm12 = vweird.f32 %v4921_v56  ;;  %v2729_v54 = vand.u32 2147483647, %v2689_v38 }
 0x5fa   :  { %v2827_v33 = vsub.f32 1.0, %v2826_v6  ;;  %vm2727_vm14 = vmor %vm2725_vm13, %vm2726_vm12  ;;  %vm2835_vm4 = vcmp.eq.f32.partialorder %v2834_v62, 8.507059e+37 }
 0x5fb   :  { %v2753_v55 = vpop.f32.mrf.mxu0  ;;  %v6518_v41 = vadd.f32 %v2737_v60, %v2736_v59  ;;  %v2722_v57 = vsub.f32 1.0, %v2721_v34  ;;  %vm2730_vm15 = vcmp.eq.f32.partialorder %v2729_v54, 8.507059e+37  ;;  %v7598_v60 = vld [vmem:[#allocation56_spill] sm:$0xff] }
 0x5fc   :  { %v2777_v16 = vpop.f32.mrf.mxu2  ;;  %v2828_v53 = vmul.f32 %v6513_v30, %v2827_v33 }
 0x5fd   :  { %v2796_v47 = vadd.f32 %v2777_v16, %v668_v17  ;;  %4924 = vtanh.f32 %v6518_v41  ;;  %v2723_v23 = vmul.f32 %v4921_v56, %v2722_v57  ;;  %v7599_v16 = vld [vmem:[#allocation92_spill] sm:$0xff] }
 0x5fe   :  { %v4923_v42 = vpop.eup %4922  ;;  %v697_v34 = vadd.f32 %v7599_v16, %v7598_v60  ;;  %v7629_v60 = vld [vmem:[#allocation84_spill] sm:$0xff] }
 0x5ff   :  { %v4485_v25 = vmul.f32 -1.442695, %v2796_v47  ;;  %v2807_v45 = vadd.f32 1.0, %v4923_v42  ;;  %v2724_v17 = vadd.f32 %v4921_v56, %v2723_v23 }
 0x600   :  { %v2797_v6 = vadd.f32 %v6498_v43, %v697_v34 }
 0x601   :  { %4926 = vpow2.f32 %v4485_v25  ;;  %v2728_v2 = vsel %vm2727_vm14, %v4921_v56, %v2724_v17  ;;  %v2829_v56 = vadd.f32 %v6513_v30, %v2828_v53  ;;  %v2836_v25 = vand.u32 2147483648, %v6502_v48 }
 0x602   :  { %4928 = vrcp.f32 %v2807_v45  ;;  %v2733_v46 = vsel %vm2730_vm15, %v2732_v32, %v2728_v2  ;;  %v2821_v23 = vand.u32 2147483648, %v2807_v45  ;;  %v2819_v17 = vand.u32 2147483647, %v2807_v45 }
 0x603   :  { %v4925_v3 = vpop.eup %4924  ;;  %v2833_v54 = vsel %vm6538_vm2, %v6513_v30, %v2829_v56  ;;  %vm2815_vm5 = vweird.f32 %v2807_v45 }
 0x604   :  { %v2779_v12 = vpop.f32.mrf.mxu2  ;;  %v6524_v59 = vmul.f32 %v4925_v3, %v2733_v46  ;;  %v2822_v46 = vor.u32 1.1754944e-38, %v2821_v23  ;;  %vm2820_vm7 = vcmp.eq.f32.partialorder %v2819_v17, 8.507059e+37  ;;  %v7605_v17 = vld [vmem:[#allocation54_spill] sm:$0xff] }
 0x605   :  { %v2837_v12 = vor.u32 1.1754944e-38, %v2836_v25 }
 0x606   :  { %7597 = vst [vmem:[#allocation21_spill] sm:$0xff] %v6524_v59  ;;  %v2862_v38 = vpack.c.bf16 %v6524_v59, %v6524_v59  ;;  %v7628_v59 = vld [vmem:[#allocation95_spill] sm:$0xff] }
 0x607   :  { %v4927_v44 = vpop.eup %4926  ;;  %v2838_v3 = vsel %vm2835_vm4, %v2837_v12, %v2833_v54  ;;  %v7607_v12 = vld [vmem:[#allocation31_spill] sm:$0xff] }
 0x608   :  { %v2809_v47 = vadd.f32 1.0, %v4927_v44  ;;  %v4929_v55 = vpop.eup %4928  ;;  %2884 = vmatmul.bf16.vlgmr.msrb.gmra.mxu1 %v2862_v38  ;;  %2910 = vmatmul.bf16.vlgmr.msrb.gmra.mxu3 %v2862_v38  ;;  %v2856_v34 = vmul.f32 %v2838_v3, %v6401_v29  ;;  %v7610_v3 = vld [vmem:[#allocation61_spill] sm:$0xff] }
 0x609   :  { %v2811_v57 = vmul.f32 %v4929_v55, %v2807_v45  ;;  %3044 = vmatpush.bf16.msrb.mxu1 %v7295_v36  ;;  %3070 = vmatpush.bf16.msrb.mxu3 %v7296_v10  ;;  %vm2816_vm3 = vweird.f32 %v4929_v55 }
 0x60a   :  { %4930 = vrcp.f32 %v2809_v47  ;;  %vm2817_vm6 = vmor %vm2815_vm5, %vm2816_vm3  ;;  %vm2845_vm9 = vweird.f32 %v2809_v47  ;;  %v2849_v25 = vand.u32 2147483647, %v2809_v47 }
 0x60b   :  { %v2812_v42 = vsub.f32 1.0, %v2811_v57  ;;  %4932 = vtanh.f32 %v2797_v6 }
 0x60c   :  { %vm2850_vm11 = vcmp.eq.f32.partialorder %v2849_v25, 8.507059e+37  ;;  %v7621_v25 = vld [vmem:[#allocation73_spill] sm:$0xff] }
 0x60d   :  { %v2813_v33 = vmul.f32 %v4929_v55, %v2812_v42  ;;  %3045 = vmatpush.bf16.msrb.mxu1 %v7299_v40  ;;  %3071 = vmatpush.bf16.msrb.mxu3 %v7370_v28 }
 0x60f   :  { %v2814_v48 = vadd.f32 %v4929_v55, %v2813_v33  ;;  %v7604_v33 = vld [vmem:[#allocation42_spill] sm:$0xff] }
 0x610   :  { %v4931_v32 = vpop.eup %4930 }
 0x611   :  { %v2841_v2 = vmul.f32 %v4931_v32, %v2809_v47  ;;  %v2818_v44 = vsel %vm2817_vm6, %v4929_v55, %v2814_v48  ;;  %v4933_v30 = vpop.eup %4932  ;;  %3046 = vmatpush.bf16.msrb.mxu1 %v7301_v58  ;;  %3072 = vmatpush.bf16.msrb.mxu3 %v5450_v26  ;;  %vm2846_vm8 = vweird.f32 %v4931_v32  ;;  %v2851_v55 = vand.u32 2147483648, %v2809_v47  ;;  %v7602_v47 = vld [vmem:[#allocation51_spill] sm:$0xff]  ;;  %v7608_v48 = vld [vmem:[#allocation44_spill] sm:$0xff] }
 0x612   :  { %v2823_v16 = vsel %vm2820_vm7, %v2822_v46, %v2818_v44  ;;  %vm2847_vm10 = vmor %vm2845_vm9, %vm2846_vm8  ;;  %v7611_v46 = vld [vmem:[#allocation33_spill] sm:$0xff] }
 0x613   :  { %v2842_v53 = vsub.f32 1.0, %v2841_v2  ;;  %v2857_v6 = vmul.f32 %v4933_v30, %v2823_v16  ;;  %v2852_v29 = vor.u32 1.1754944e-38, %v2851_v55  ;;  %v7609_v2 = vld [vmem:[#allocation60_spill] sm:$0xff]  ;;  %v7612_v44 = vld [vmem:[#allocation45_spill] sm:$0xff]  ;;  %v7614_v30 = vld [vmem:[#allocation66_spill] sm:$0xff] }
 0x614   :  { %v7615_v16 = vld [vmem:[#allocation77_spill] sm:$0xff]  ;;  %v7620_v55 = vld [vmem:[#allocation72_spill] sm:$0xff] }
 0x615   :  { %v2843_v56 = vmul.f32 %v4931_v32, %v2842_v53  ;;  %v6550_v57 = vadd.f32 %v2857_v6, %v2856_v34  ;;  %3047 = vmatpush.bf16.msrb.mxu1 %v7302_v4  ;;  %3073 = vmatpush.bf16.msrb.mxu3 %v7303_v11  ;;  %v7613_v53 = vld [vmem:[#allocation70_spill] sm:$0xff]  ;;  %v7616_v34 = vld [vmem:[#allocation67_spill] sm:$0xff] }
 0x616   :  { %v7617_v6 = vld [vmem:[#allocation78_spill] sm:$0xff] }
 0x617   :  { %v2844_v45 = vadd.f32 %v4931_v32, %v2843_v56  ;;  %4934 = vtanh.f32 %v6550_v57  ;;  %v7618_v56 = vld [vmem:[#allocation71_spill] sm:$0xff] }
 0x618   :  { %2936 = vmatmul.bf16.vlgmr.msra.gmra.mxu1 %v2862_v38  ;;  %2962 = vmatmul.bf16.vlgmr.msra.gmra.mxu3 %v2862_v38  ;;  %v7603_v38 = vld [vmem:[#allocation29_spill] sm:$0xff] }
 0x619   :  { %v2848_v62 = vsel %vm2847_vm10, %v4931_v32, %v2844_v45  ;;  %3048 = vmatpush.bf16.msrb.mxu1 %v7304_v52  ;;  %3074 = vmatpush.bf16.msrb.mxu3 %v7305_v21  ;;  %v7606_v32 = vld [vmem:[#allocation57_spill] sm:$0xff]  ;;  %v7619_v45 = vld [vmem:[#allocation83_spill] sm:$0xff] }
 0x61a   :  { %v2853_v43 = vsel %vm2850_vm11, %v2852_v29, %v2848_v62  ;;  %v7622_v62 = vld [vmem:[#allocation76_spill] sm:$0xff] }
 0x61b   :  { %v7623_v29 = vld [vmem:[#allocation88_spill] sm:$0xff] }
 0x61d   :  { %v4935_v42 = vpop.eup %4934  ;;  %3049 = vmatpush.bf16.msrb.mxu1 %v7306_v63  ;;  %3075 = vmatpush.bf16.msrb.mxu3 %v7307_v51 }
 0x61e   :  { %v2860_v23 = vmul.f32 %v4935_v42, %v2853_v43  ;;  %v7624_v42 = vld [vmem:[#allocation89_spill] sm:$0xff]  ;;  %v7625_v43 = vld [vmem:[#allocation79_spill] sm:$0xff] }
 0x620   :  { %v2861_v54 = vpack.c.bf16 %v2860_v23, %v2860_v23  ;;  %v7626_v23 = vld [vmem:[#allocation80_spill] sm:$0xff] }
 0x621   :  { %3050 = vmatpush.bf16.msrb.mxu1 %v7308_v15  ;;  %3076 = vmatpush.bf16.msrb.mxu3 %v5474_v9 }
 0x622   :  { %2871 = vmatmul.bf16.vlgmr.msrb.gmra.mxu0 %v2861_v54  ;;  %2897 = vmatmul.bf16.vlgmr.msrb.gmra.mxu2 %v2861_v54 }
 0x623   :  { %3031 = vmatpush.bf16.msrb.mxu0 %v5388_v7  ;;  %3057 = vmatpush.bf16.msrb.mxu2 %v5434_v8 }
 0x625   :  { %3051 = vmatpush.bf16.msrb.mxu1 %v7309_v35  ;;  %3077 = vmatpush.bf16.msrb.mxu3 %v5480_v20 }
 0x627   :  { %3032 = vmatpush.bf16.msrb.mxu0 %v5393_v13  ;;  %3058 = vmatpush.bf16.msrb.mxu2 %v5442_v22 }
 0x628   :  { %3052 = vmatmul.bf16.vlgmr.msrb.gmra.mxu1 %v2861_v54  ;;  %3078 = vmatmul.bf16.vlgmr.msrb.gmra.mxu3 %v2861_v54 }
 0x629   :  { %3165 = vmatpush.bf16.msra.mxu1 %v5487_v37  ;;  %3191 = vmatpush.bf16.msra.mxu3 %v5489_v39 }
 0x62b   :  { %3033 = vmatpush.bf16.msrb.mxu0 %v7246_v61  ;;  %3059 = vmatpush.bf16.msrb.mxu2 %v7247_v24 }
 0x62d   :  { %3166 = vmatpush.bf16.msra.mxu1 %v7310_v14  ;;  %3192 = vmatpush.bf16.msra.mxu3 %v7311_v19 }
 0x62f   :  { %3034 = vmatpush.bf16.msrb.mxu0 %v7249_v31  ;;  %3060 = vmatpush.bf16.msrb.mxu2 %v7250_v27 }
 0x631   :  { %3167 = vmatpush.bf16.msra.mxu1 %v5507_v0  ;;  %3193 = vmatpush.bf16.msra.mxu3 %v7312_v5 }
 0x632   :  { %2923 = vmatmul.bf16.vlgmr.msra.gmra.mxu0 %v2861_v54  ;;  %2949 = vmatmul.bf16.vlgmr.msra.gmra.mxu2 %v2861_v54 }
 0x633   :  { %3035 = vmatpush.bf16.msrb.mxu0 %v7253_v1  ;;  %3061 = vmatpush.bf16.msrb.mxu2 %v7254_v50 }
 0x635   :  { %3168 = vmatpush.bf16.msra.mxu1 %v5517_v18  ;;  %3194 = vmatpush.bf16.msra.mxu3 %v7602_v47 }
 0x637   :  { %3036 = vmatpush.bf16.msrb.mxu0 %v7603_v38  ;;  %3062 = vmatpush.bf16.msrb.mxu2 %v7604_v33 }
 0x639   :  { %3169 = vmatpush.bf16.msra.mxu1 %v7605_v17  ;;  %3195 = vmatpush.bf16.msra.mxu3 %v7606_v32 }
 0x63b   :  { %3037 = vmatpush.bf16.msrb.mxu0 %v7607_v12  ;;  %3063 = vmatpush.bf16.msrb.mxu2 %v7608_v48 }
 0x63d   :  { %3170 = vmatpush.bf16.msra.mxu1 %v7609_v2  ;;  %3196 = vmatpush.bf16.msra.mxu3 %v7610_v3  ;;  %v7667_v3 = vld [vmem:[#allocation111_spill] sm:$0xff] }
 0x63f   :  { %3038 = vmatpush.bf16.msrb.mxu0 %v7611_v46  ;;  %3064 = vmatpush.bf16.msrb.mxu2 %v7612_v44 }
 0x641   :  { %3171 = vmatpush.bf16.msra.mxu1 %v7614_v30  ;;  %3197 = vmatpush.bf16.msra.mxu3 %v7616_v34  ;;  %v7665_v34 = vld [vmem:[#allocation25_spill] sm:$0xff] }
 0x642   :  { %3039 = vmatmul.bf16.vlgmr.msrb.gmra.mxu0 %v2861_v54  ;;  %3065 = vmatmul.bf16.vlgmr.msrb.gmra.mxu2 %v2861_v54  ;;  %v7627_v54 = vld [vmem:[#allocation94_spill] sm:$0xff] }
 0x643   :  { %3152 = vmatpush.bf16.msra.mxu0 %v7613_v53  ;;  %3178 = vmatpush.bf16.msra.mxu2 %v7615_v16 }
 0x645   :  { %3172 = vmatpush.bf16.msra.mxu1 %v7618_v56  ;;  %3198 = vmatpush.bf16.msra.mxu3 %v7620_v55  ;;  %v7631_v55 = vld [vmem:[#allocation100_spill] sm:$0xff] }
 0x647   :  { %3153 = vmatpush.bf16.msra.mxu0 %v7617_v6  ;;  %3179 = vmatpush.bf16.msra.mxu2 %v7619_v45 }
 0x649   :  { %3217 = vmatpush.bf16.msrb.mxu1 %v7621_v25  ;;  %3243 = vmatpush.bf16.msrb.mxu3 %v7622_v62  ;;  %v7632_v25 = vld [vmem:[#allocation101_spill] sm:$0xff]  ;;  %v7633_v62 = vld [vmem:[#allocation90_spill] sm:$0xff] }
 0x64b   :  { %3154 = vmatpush.bf16.msra.mxu0 %v7623_v29  ;;  %3180 = vmatpush.bf16.msra.mxu2 %v7624_v42  ;;  %v7634_v29 = vld [vmem:[#allocation93_spill] sm:$0xff]  ;;  %v7635_v42 = vld [vmem:[#allocation106_spill] sm:$0xff] }
 0x64d   :  { %3218 = vmatpush.bf16.msrb.mxu1 %v7625_v43  ;;  %3244 = vmatpush.bf16.msrb.mxu3 %v7626_v23  ;;  %v7636_v43 = vld [vmem:[#allocation107_spill] sm:$0xff]  ;;  %v7637_v23 = vld [vmem:[#allocation96_spill] sm:$0xff] }
 0x64f   :  { %3155 = vmatpush.bf16.msra.mxu0 %v7627_v54  ;;  %3181 = vmatpush.bf16.msra.mxu2 %v7628_v59  ;;  %v7638_v54 = vld [vmem:[#allocation97_spill] sm:$0xff]  ;;  %v7639_v59 = vld [vmem:[#allocation112_spill] sm:$0xff] }
 0x651   :  { %3219 = vmatpush.bf16.msrb.mxu1 %v7629_v60  ;;  %3245 = vmatpush.bf16.msrb.mxu3 %v7630_v49  ;;  %v7640_v60 = vld [vmem:[#allocation113_spill] sm:$0xff]  ;;  %v7641_v49 = vld [vmem:[#allocation102_spill] sm:$0xff] }
 0x653   :  { %3156 = vmatpush.bf16.msra.mxu0 %v7631_v55  ;;  %3182 = vmatpush.bf16.msra.mxu2 %v7632_v25  ;;  %v7642_v55 = vld [vmem:[#allocation103_spill] sm:$0xff]  ;;  %v7643_v25 = vld [vmem:[#allocation116_spill] sm:$0xff] }
 0x655   :  { %3220 = vmatpush.bf16.msrb.mxu1 %v7633_v62  ;;  %3246 = vmatpush.bf16.msrb.mxu3 %v7634_v29  ;;  %v7644_v62 = vld [vmem:[#allocation117_spill] sm:$0xff]  ;;  %v7645_v29 = vld [vmem:[#allocation118_spill] sm:$0xff] }
 0x657   :  { %3157 = vmatpush.bf16.msra.mxu0 %v7635_v42  ;;  %3183 = vmatpush.bf16.msra.mxu2 %v7636_v43  ;;  %v7646_v42 = vld [vmem:[#allocation108_spill] sm:$0xff]  ;;  %v7647_v43 = vld [vmem:[#allocation121_spill] sm:$0xff] }
 0x659   :  { %3221 = vmatpush.bf16.msrb.mxu1 %v7637_v23  ;;  %3247 = vmatpush.bf16.msrb.mxu3 %v7638_v54  ;;  %v7648_v23 = vld [vmem:[#allocation109_spill] sm:$0xff]  ;;  %v7649_v54 = vld [vmem:[#allocation122_spill] sm:$0xff] }
 0x65b   :  { %3158 = vmatpush.bf16.msra.mxu0 %v7639_v59  ;;  %3184 = vmatpush.bf16.msra.mxu2 %v7640_v60  ;;  %v7650_v59 = vld [vmem:[#allocation114_spill] sm:$0xff]  ;;  %v7651_v60 = vld [vmem:[#allocation123_spill] sm:$0xff] }
 0x65d   :  { %3222 = vmatpush.bf16.msrb.mxu1 %v7641_v49  ;;  %3248 = vmatpush.bf16.msrb.mxu3 %v7642_v55  ;;  %v7652_v49 = vld [vmem:[#allocation115_spill] sm:$0xff]  ;;  %v7653_v55 = vld [vmem:[#allocation124_spill] sm:$0xff] }
 0x65f   :  { %3159 = vmatpush.bf16.msra.mxu0 %v7643_v25  ;;  %3185 = vmatpush.bf16.msra.mxu2 %v7644_v62  ;;  %v7654_v25 = vld [vmem:[#allocation125_spill] sm:$0xff]  ;;  %v7655_v62 = vld [vmem:[#allocation126_spill] sm:$0xff] }
 0x661   :  { %3223 = vmatpush.bf16.msrb.mxu1 %v7646_v42  ;;  %3249 = vmatpush.bf16.msrb.mxu3 %v7648_v23  ;;  %v7657_v42 = vld [vmem:[#allocation128_spill] sm:$0xff]  ;;  %v7659_v23 = vld [vmem:[#allocation130_spill] sm:$0xff] }
 0x663   :  { %3204 = vmatpush.bf16.msrb.mxu0 %v7645_v29  ;;  %3230 = vmatpush.bf16.msrb.mxu2 %v7647_v43  ;;  %v7656_v29 = vld [vmem:[#allocation127_spill] sm:$0xff]  ;;  %v7658_v43 = vld [vmem:[#allocation129_spill] sm:$0xff] }
 0x665   :  { %3224 = vmatpush.bf16.msrb.mxu1 %v7650_v59  ;;  %3250 = vmatpush.bf16.msrb.mxu3 %v7652_v49  ;;  %v7661_v59 = vld [vmem:[#allocation132_spill] sm:$0xff]  ;;  %v7663_v49 = vld [vmem:[#allocation134_spill] sm:$0xff] }
 0x667   :  { %3205 = vmatpush.bf16.msrb.mxu0 %v7649_v54  ;;  %3231 = vmatpush.bf16.msrb.mxu2 %v7651_v60  ;;  %v7660_v54 = vld [vmem:[#allocation131_spill] sm:$0xff]  ;;  %v7662_v60 = vld [vmem:[#allocation133_spill] sm:$0xff] }
 0x66b   :  { %3206 = vmatpush.bf16.msrb.mxu0 %v7653_v55  ;;  %3232 = vmatpush.bf16.msrb.mxu2 %v7654_v25  ;;  %v7664_v55 = vld [vmem:[#allocation135_spill] sm:$0xff] }
 0x66f   :  { %3207 = vmatpush.bf16.msrb.mxu0 %v7655_v62  ;;  %3233 = vmatpush.bf16.msrb.mxu2 %v7656_v29 }
 0x673   :  { %3208 = vmatpush.bf16.msrb.mxu0 %v7657_v42  ;;  %3234 = vmatpush.bf16.msrb.mxu2 %v7658_v43 }
 0x677   :  { %3209 = vmatpush.bf16.msrb.mxu0 %v7659_v23  ;;  %3235 = vmatpush.bf16.msrb.mxu2 %v7660_v54 }
 0x67b   :  { %3210 = vmatpush.bf16.msrb.mxu0 %v7661_v59  ;;  %3236 = vmatpush.bf16.msrb.mxu2 %v7662_v60  ;;  %v7666_v60 = vld [vmem:[#allocation38_spill] sm:$0xff] }
 0x67f   :  { %3211 = vmatpush.bf16.msrb.mxu0 %v7663_v49  ;;  %3237 = vmatpush.bf16.msrb.mxu2 %v7664_v55 }
 0x685   :  { %v2885_v25 = vpop.f32.mrf.mxu1 }
 0x68b   :  { %v2911_v62 = vpop.f32.mrf.mxu3 }
 0x68d   :  { %v2887_v45 = vpop.f32.mrf.mxu1 }
 0x693   :  { %v2913_v29 = vpop.f32.mrf.mxu3 }
 0x695   :  { %v2937_v56 = vpop.f32.mrf.mxu1 }
 0x69b   :  { %v2963_v42 = vpop.f32.mrf.mxu3 }
 0x69d   :  { %v2939_v6 = vpop.f32.mrf.mxu1 }
 0x69f   :  { %v2872_v43 = vpop.f32.mrf.mxu0 }
 0x6a0   :  { %v2873_v23 = vadd.f32 %v2872_v43, %v7665_v34 }
 0x6a2   :  { %v2886_v16 = vadd.f32 %v2885_v25, %v2873_v23  ;;  %v7668_v25 = vld [vmem:[#allocation27_spill] sm:$0xff] }
 0x6a3   :  { %v2965_v30 = vpop.f32.mrf.mxu3 }
 0x6a4   :  { %v4486_v54 = vmul.f32 -1.442695, %v2886_v16 }
 0x6a5   :  { %v2898_v59 = vpop.f32.mrf.mxu2  ;;  %v3053_v44 = vpop.f32.mrf.mxu1 }
 0x6a6   :  { %4936 = vpow2.f32 %v4486_v54  ;;  %v2899_v53 = vadd.f32 %v2898_v59, %v7666_v60  ;;  %v3084_v45 = vadd.f32 %v3053_v44, %v7667_v3 }
 0x6a7   :  { %v2874_v49 = vpop.f32.mrf.mxu0 }
 0x6a8   :  { %v2912_v55 = vadd.f32 %v2911_v62, %v2899_v53  ;;  %v4490_v48 = vmul.f32 -1.442695, %v3084_v45  ;;  %v7669_v62 = vld [vmem:[#allocation40_spill] sm:$0xff] }
 0x6aa   :  { %v4487_v46 = vmul.f32 -1.442695, %v2912_v55 }
 0x6ab   :  { %v6646_v12 = vpop.f32.mrf.mxu3 }
 0x6ac   :  { %v4937_v29 = vpop.eup %4936  ;;  %4938 = vpow2.f32 %v4487_v46 }
 0x6ad   :  { %v2976_v2 = vadd.f32 1.0, %v4937_v29  ;;  %v2900_v6 = vpop.f32.mrf.mxu2  ;;  %v3055_v30 = vpop.f32.mrf.mxu1 }
 0x6af   :  { %4940 = vrcp.f32 %v2976_v2  ;;  %v2924_v16 = vpop.f32.mrf.mxu0  ;;  %vm2984_vm13 = vweird.f32 %v2976_v2 }
 0x6b0   :  { %v2925_v43 = vadd.f32 %v2924_v16, %v7668_v25  ;;  %4942 = vpow2.f32 %v4490_v48 }
 0x6b2   :  { %v4939_v23 = vpop.eup %4938  ;;  %v2938_v49 = vadd.f32 %v2937_v56, %v2925_v43 }
 0x6b3   :  { %v2977_v59 = vadd.f32 1.0, %v4939_v23  ;;  %v3081_v46 = vpop.f32.mrf.mxu3  ;;  %v2990_v23 = vand.u32 2147483648, %v2976_v2 }
 0x6b4   :  { %v4488_v53 = vmul.f32 -1.442695, %v2938_v49 }
 0x6b5   :  { %v4941_v55 = vpop.eup %4940  ;;  %4944 = vrcp.f32 %v2977_v59  ;;  %v2950_v3 = vpop.f32.mrf.mxu2  ;;  %vm2999_vm0 = vweird.f32 %v2977_v59 }
 0x6b6   :  { %v2980_v44 = vmul.f32 %v4941_v55, %v2976_v2  ;;  %4946 = vpow2.f32 %v4488_v53  ;;  %v2951_v54 = vadd.f32 %v2950_v3, %v7669_v62  ;;  %v4943_v29 = vpop.eup %4942  ;;  %vm2985_vm12 = vweird.f32 %v4941_v55 }
 0x6b7   :  { %v2926_v45 = vpop.f32.mrf.mxu0  ;;  %v6650_v16 = vadd.f32 1.0, %v4943_v29  ;;  %v2988_v53 = vand.u32 2147483647, %v2976_v2  ;;  %v3005_v3 = vand.u32 2147483648, %v2977_v59  ;;  %vm6653_vm14 = vmor %vm2984_vm13, %vm2985_vm12  ;;  %v2991_v29 = vor.u32 1.1754944e-38, %v2990_v23 }
 0x6b8   :  { %v2981_v6 = vsub.f32 1.0, %v2980_v44  ;;  %v2964_v60 = vadd.f32 %v2963_v42, %v2951_v54  ;;  %v3003_v44 = vand.u32 2147483647, %v2977_v59 }
 0x6b9   :  { %vm2989_vm1 = vcmp.eq.f32.partialorder %v2988_v53, 8.507059e+37  ;;  %vm3119_vm9 = vweird.f32 %v6650_v16 }
 0x6ba   :  { %v2982_v30 = vmul.f32 %v4941_v55, %v2981_v6  ;;  %4948 = vtanh.f32 %v2964_v60  ;;  %v7672_v6 = vld [vmem:[#allocation110_spill] sm:$0xff]  ;;  %vm3004_vm3 = vcmp.eq.f32.partialorder %v3003_v44, 8.507059e+37 }
 0x6bb   :  { %v4945_v34 = vpop.eup %4944  ;;  %4950 = vrcp.f32 %v6650_v16 }
 0x6bc   :  { %v2995_v48 = vmul.f32 %v4945_v34, %v2977_v59  ;;  %v2983_v56 = vadd.f32 %v4941_v55, %v2982_v30  ;;  %v4947_v43 = vpop.eup %4946  ;;  %vm3000_vm15 = vweird.f32 %v4945_v34  ;;  %v7673_v59 = vld [vmem:[#allocation104_spill] sm:$0xff] }
 0x6bd   :  { %v2952_v49 = vpop.f32.mrf.mxu2  ;;  %v2978_v46 = vadd.f32 1.0, %v4947_v43  ;;  %vm3001_vm2 = vmor %vm2999_vm0, %vm3000_vm15  ;;  %v3006_v43 = vor.u32 1.1754944e-38, %v3005_v3 }
 0x6be   :  { %v2996_v25 = vsub.f32 1.0, %v2995_v48  ;;  %v2987_v60 = vsel %vm6653_vm14, %v4941_v55, %v2983_v56 }
 0x6bf   :  { %v3040_v54 = vpop.f32.mrf.mxu0  ;;  %4952 = vrcp.f32 %v2978_v46  ;;  %v2992_v49 = vsel %vm2989_vm1, %v2991_v29, %v2987_v60  ;;  %v3020_v60 = vand.u32 2147483648, %v2978_v46  ;;  %vm3014_vm5 = vweird.f32 %v2978_v46 }
 0x6c0   :  { %v2997_v45 = vmul.f32 %v4945_v34, %v2996_v25  ;;  %v3083_v30 = vadd.f32 %v3040_v54, %v7672_v6  ;;  %v4949_v48 = vpop.eup %4948 }
 0x6c1   :  { %v6660_v17 = vpop.eup %4950  ;;  %v3026_v56 = vmul.f32 %v4949_v48, %v2992_v49 }
 0x6c2   :  { %v2998_v2 = vadd.f32 %v4945_v34, %v2997_v45  ;;  %v4489_v62 = vmul.f32 -1.442695, %v3083_v30  ;;  %v3115_v3 = vmul.f32 %v6660_v17, %v6650_v16  ;;  %vm3120_vm8 = vweird.f32 %v6660_v17 }
 0x6c3   :  { %vm6683_vm10 = vmor %vm3119_vm9, %vm3120_vm8 }
 0x6c4   :  { %v3002_v32 = vsel %vm3001_vm2, %v4945_v34, %v2998_v2  ;;  %4954 = vpow2.f32 %v4489_v62  ;;  %v3116_v6 = vsub.f32 1.0, %v3115_v3  ;;  %v3021_v2 = vor.u32 1.1754944e-38, %v3020_v60 }
 0x6c5   :  { %v3007_v25 = vsel %vm3004_vm3, %v3006_v43, %v3002_v32  ;;  %v4953_v33 = vpop.eup %4952  ;;  %v3066_v23 = vpop.f32.mrf.mxu2 }
 0x6c6   :  { %v3025_v55 = vmul.f32 %v3007_v25, %v6518_v41  ;;  %v3010_v42 = vmul.f32 %v4953_v33, %v2978_v46  ;;  %v3085_v53 = vadd.f32 %v3066_v23, %v7673_v59  ;;  %vm3015_vm4 = vweird.f32 %v4953_v33 }
 0x6c7   :  { %v3042_v54 = vpop.f32.mrf.mxu0  ;;  %v3018_v41 = vand.u32 2147483647, %v2978_v46  ;;  %vm3016_vm6 = vmor %vm3014_vm5, %vm3015_vm4  ;;  %v7674_v46 = vld [vmem:[#allocation105_spill] sm:$0xff] }
 0x6c8   :  { %v6664_v45 = vadd.f32 %v3026_v56, %v3025_v55  ;;  %v3011_v34 = vsub.f32 1.0, %v3010_v42  ;;  %v4491_v44 = vmul.f32 -1.442695, %v3085_v53  ;;  %v3117_v56 = vmul.f32 %v6660_v17, %v3116_v6 }
 0x6c9   :  { %vm3019_vm7 = vcmp.eq.f32.partialorder %v3018_v41, 8.507059e+37  ;;  %v3086_v54 = vadd.f32 %v6646_v12, %v7674_v46  ;;  %v7711_v12 = vld [vmem:[#allocation97_spill] sm:$0xff] }
 0x6ca   :  { %4956 = vtanh.f32 %v6664_v45  ;;  %v4955_v32 = vpop.eup %4954  ;;  %v3012_v62 = vmul.f32 %v4953_v33, %v3011_v34  ;;  %v3118_v3 = vadd.f32 %v6660_v17, %v3117_v56  ;;  %v3125_v34 = vand.u32 2147483648, %v6650_v16 }
 0x6cb   :  { %4958 = vpow2.f32 %v4491_v44  ;;  %v3096_v29 = vadd.f32 1.0, %v4955_v32  ;;  %v3123_v44 = vand.u32 2147483647, %v6650_v16 }
 0x6cc   :  { %v3013_v30 = vadd.f32 %v4953_v33, %v3012_v62  ;;  %v3122_v62 = vsel %vm6683_vm10, %v6660_v17, %v3118_v3  ;;  %v7706_v3 = vld [vmem:[#allocation90_spill] sm:$0xff] }
 0x6cd   :  { %4960 = vrcp.f32 %v3096_v29  ;;  %v3068_v48 = vpop.f32.mrf.mxu2  ;;  %v3110_v32 = vand.u32 2147483648, %v3096_v29  ;;  %vm3124_vm12 = vcmp.eq.f32.partialorder %v3123_v44, 8.507059e+37  ;;  %vm3104_vm13 = vweird.f32 %v3096_v29  ;;  %v7709_v44 = vld [vmem:[#allocation107_spill] sm:$0xff] }
 0x6ce   :  { %v3017_v43 = vsel %vm3016_vm6, %v4953_v33, %v3013_v30 }
 0x6cf   :  { %v3022_v25 = vsel %vm3019_vm7, %v3021_v2, %v3017_v43  ;;  %v3111_v48 = vor.u32 1.1754944e-38, %v3110_v32  ;;  %v7712_v32 = vld [vmem:[#allocation112_spill] sm:$0xff] }
 0x6d0   :  { %v4957_v49 = vpop.eup %4956 }
 0x6d1   :  { %v4959_v55 = vpop.eup %4958  ;;  %v6670_v23 = vmul.f32 %v4957_v49, %v3022_v25 }
 0x6d2   :  { %v3098_v42 = vadd.f32 1.0, %v4959_v55 }
 0x6d3   :  { %v3151_v59 = vpack.c.bf16 %v6670_v23, %v6670_v23  ;;  %v4961_v53 = vpop.eup %4960 }
 0x6d4   :  { %4962 = vrcp.f32 %v3098_v42  ;;  %v3100_v33 = vmul.f32 %v4961_v53, %v3096_v29  ;;  %vm3105_vm11 = vweird.f32 %v4961_v53  ;;  %vm3134_vm1 = vweird.f32 %v3098_v42 }
 0x6d5   :  { %3173 = vmatmul.bf16.vlgmr.msra.gmra.mxu1 %v3151_v59  ;;  %3199 = vmatmul.bf16.vlgmr.msra.gmra.mxu3 %v3151_v59  ;;  %4964 = vtanh.f32 %v3086_v54  ;;  %vm3106_vm14 = vmor %vm3104_vm13, %vm3105_vm11  ;;  %v3138_v46 = vand.u32 2147483647, %v3098_v42 }
 0x6d6   :  { %3333 = vmatpush.bf16.msra.mxu1 %v7295_v36  ;;  %3359 = vmatpush.bf16.msra.mxu3 %v7296_v10  ;;  %v3101_v60 = vsub.f32 1.0, %v3100_v33  ;;  %v3108_v36 = vand.u32 2147483647, %v3096_v29  ;;  %v3126_v10 = vor.u32 1.1754944e-38, %v3125_v34  ;;  %v7707_v33 = vld [vmem:[#allocation93_spill] sm:$0xff]  ;;  %v7708_v34 = vld [vmem:[#allocation106_spill] sm:$0xff] }
 0x6d7   :  { %vm3139_vm3 = vcmp.eq.f32.partialorder %v3138_v46, 8.507059e+37  ;;  %v7731_v46 = vld [vmem:[#allocation129_spill] sm:$0xff] }
 0x6d8   :  { %v3102_v41 = vmul.f32 %v4961_v53, %v3101_v60  ;;  %v3127_v2 = vsel %vm3124_vm12, %v3126_v10, %v3122_v62  ;;  %vm3109_vm15 = vcmp.eq.f32.partialorder %v3108_v36, 8.507059e+37  ;;  %v7710_v60 = vld [vmem:[#allocation96_spill] sm:$0xff]  ;;  %v7713_v62 = vld [vmem:[#allocation113_spill] sm:$0xff]  ;;  %v7715_v36 = vld [vmem:[#allocation103_spill] sm:$0xff] }
 0x6d9   :  { %v7717_v10 = vld [vmem:[#allocation118_spill] sm:$0xff] }
 0x6da   :  { %v4963_v6 = vpop.eup %4962  ;;  %3334 = vmatpush.bf16.msra.mxu1 %v7299_v40  ;;  %3360 = vmatpush.bf16.msra.mxu3 %v7370_v28  ;;  %v3103_v16 = vadd.f32 %v4961_v53, %v3102_v41  ;;  %v3145_v40 = vmul.f32 %v3127_v2, %v6550_v57  ;;  %v7714_v41 = vld [vmem:[#allocation102_spill] sm:$0xff]  ;;  %v7720_v2 = vld [vmem:[#allocation121_spill] sm:$0xff] }
 0x6db   :  { %v3130_v30 = vmul.f32 %v4963_v6, %v3098_v42  ;;  %v4965_v17 = vpop.eup %4964  ;;  %vm3135_vm0 = vweird.f32 %v4963_v6 }
 0x6dc   :  { %v3107_v43 = vsel %vm3106_vm14, %v4961_v53, %v3103_v16  ;;  %v3140_v53 = vand.u32 2147483648, %v3098_v42  ;;  %vm3136_vm2 = vmor %vm3134_vm1, %vm3135_vm0  ;;  %v7704_v42 = vld [vmem:[#allocation100_spill] sm:$0xff]  ;;  %v7718_v16 = vld [vmem:[#allocation117_spill] sm:$0xff] }
 0x6dd   :  { %v3131_v49 = vsub.f32 1.0, %v3130_v30  ;;  %v3112_v25 = vsel %vm3109_vm15, %v3111_v48, %v3107_v43  ;;  %v7719_v30 = vld [vmem:[#allocation108_spill] sm:$0xff]  ;;  %v7721_v48 = vld [vmem:[#allocation109_spill] sm:$0xff]  ;;  %v7722_v43 = vld [vmem:[#allocation122_spill] sm:$0xff] }
 0x6de   :  { %3335 = vmatpush.bf16.msra.mxu1 %v7301_v58  ;;  %3361 = vmatpush.bf16.msra.mxu3 %v5450_v26  ;;  %v3146_v55 = vmul.f32 %v4965_v17, %v3112_v25  ;;  %v3141_v58 = vor.u32 1.1754944e-38, %v3140_v53  ;;  %v7724_v17 = vld [vmem:[#allocation123_spill] sm:$0xff]  ;;  %v7730_v53 = vld [vmem:[#allocation128_spill] sm:$0xff] }
 0x6df   :  { %v3132_v28 = vmul.f32 %v4963_v6, %v3131_v49  ;;  %v7723_v49 = vld [vmem:[#allocation114_spill] sm:$0xff]  ;;  %v7725_v25 = vld [vmem:[#allocation115_spill] sm:$0xff] }
 0x6e0   :  { %v6695_v56 = vadd.f32 %v3146_v55, %v3145_v40  ;;  %v7726_v40 = vld [vmem:[#allocation124_spill] sm:$0xff]  ;;  %v7727_v55 = vld [vmem:[#allocation125_spill] sm:$0xff] }
 0x6e1   :  { %v3133_v29 = vadd.f32 %v4963_v6, %v3132_v28  ;;  %v7728_v28 = vld [vmem:[#allocation126_spill] sm:$0xff] }
 0x6e2   :  { %3336 = vmatpush.bf16.msra.mxu1 %v7302_v4  ;;  %3362 = vmatpush.bf16.msra.mxu3 %v7303_v11  ;;  %4966 = vtanh.f32 %v6695_v56 }
 0x6e3   :  { %v3137_v26 = vsel %vm3136_vm2, %v4963_v6, %v3133_v29  ;;  %v7716_v6 = vld [vmem:[#allocation116_spill] sm:$0xff]  ;;  %v7729_v29 = vld [vmem:[#allocation127_spill] sm:$0xff] }
 0x6e4   :  { %v3142_v54 = vsel %vm3139_vm3, %v3141_v58, %v3137_v26  ;;  %v7732_v26 = vld [vmem:[#allocation130_spill] sm:$0xff]  ;;  %v7733_v58 = vld [vmem:[#allocation131_spill] sm:$0xff] }
 0x6e5   :  { %3225 = vmatmul.bf16.vlgmr.msrb.gmra.mxu1 %v3151_v59  ;;  %3251 = vmatmul.bf16.vlgmr.msrb.gmra.mxu3 %v3151_v59  ;;  %v7705_v59 = vld [vmem:[#allocation101_spill] sm:$0xff] }
 0x6e6   :  { %3337 = vmatpush.bf16.msra.mxu1 %v7304_v52  ;;  %3363 = vmatpush.bf16.msra.mxu3 %v7305_v21  ;;  %v7693_v52 = vld [vmem:[#allocation73_spill] sm:$0xff]  ;;  %v7694_v21 = vld [vmem:[#allocation72_spill] sm:$0xff] }
 0x6e8   :  { %v4967_v57 = vpop.eup %4966 }
 0x6e9   :  { %v3149_v4 = vmul.f32 %v4967_v57, %v3142_v54  ;;  %v7734_v57 = vld [vmem:[#allocation132_spill] sm:$0xff]  ;;  %v7735_v54 = vld [vmem:[#allocation133_spill] sm:$0xff] }
 0x6ea   :  { %3338 = vmatpush.bf16.msra.mxu1 %v7306_v63  ;;  %3364 = vmatpush.bf16.msra.mxu3 %v7307_v51  ;;  %v7695_v63 = vld [vmem:[#allocation76_spill] sm:$0xff] }
 0x6eb   :  { %v3150_v11 = vpack.c.bf16 %v3149_v4, %v3149_v4  ;;  %v7696_v51 = vld [vmem:[#allocation88_spill] sm:$0xff]  ;;  %v7736_v4 = vld [vmem:[#allocation134_spill] sm:$0xff] }
 0x6ed   :  { %3160 = vmatmul.bf16.vlgmr.msra.gmra.mxu0 %v3150_v11  ;;  %3186 = vmatmul.bf16.vlgmr.msra.gmra.mxu2 %v3150_v11 }
 0x6ee   :  { %3320 = vmatpush.bf16.msra.mxu0 %v5388_v7  ;;  %3339 = vmatpush.bf16.msra.mxu1 %v7308_v15  ;;  %v7677_v7 = vld [vmem:[#allocation42_spill] sm:$0xff]  ;;  %v7697_v15 = vld [vmem:[#allocation89_spill] sm:$0xff] }
 0x6ef   :  { %3346 = vmatpush.bf16.msra.mxu2 %v5434_v8  ;;  %3365 = vmatpush.bf16.msra.mxu3 %v5474_v9  ;;  %v7679_v8 = vld [vmem:[#allocation57_spill] sm:$0xff]  ;;  %v7681_v9 = vld [vmem:[#allocation44_spill] sm:$0xff] }
 0x6f2   :  { %3321 = vmatpush.bf16.msra.mxu0 %v5393_v13  ;;  %3340 = vmatpush.bf16.msra.mxu1 %v7309_v35  ;;  %v7678_v13 = vld [vmem:[#allocation54_spill] sm:$0xff]  ;;  %v7698_v35 = vld [vmem:[#allocation79_spill] sm:$0xff] }
 0x6f3   :  { %3347 = vmatpush.bf16.msra.mxu2 %v5442_v22  ;;  %3366 = vmatpush.bf16.msra.mxu3 %v5480_v20  ;;  %v7680_v22 = vld [vmem:[#allocation31_spill] sm:$0xff]  ;;  %v7682_v20 = vld [vmem:[#allocation60_spill] sm:$0xff] }
 0x6f5   :  { %3341 = vmatmul.bf16.vlgmr.msra.gmra.mxu1 %v3150_v11 }
 0x6f6   :  { %3454 = vmatpush.bf16.msrb.mxu1 %v5487_v37  ;;  %3367 = vmatmul.bf16.vlgmr.msra.gmra.mxu3 %v3150_v11  ;;  %v7683_v37 = vld [vmem:[#allocation61_spill] sm:$0xff] }
 0x6f7   :  { %3480 = vmatpush.bf16.msrb.mxu3 %v5489_v39  ;;  %3322 = vmatpush.bf16.msra.mxu0 %v7246_v61  ;;  %v7684_v39 = vld [vmem:[#allocation33_spill] sm:$0xff]  ;;  %v7687_v61 = vld [vmem:[#allocation66_spill] sm:$0xff] }
 0x6f8   :  { %3348 = vmatpush.bf16.msra.mxu2 %v7247_v24  ;;  %v7688_v24 = vld [vmem:[#allocation77_spill] sm:$0xff] }
 0x6fa   :  { %3455 = vmatpush.bf16.msrb.mxu1 %v7310_v14  ;;  %v7699_v14 = vld [vmem:[#allocation80_spill] sm:$0xff] }
 0x6fb   :  { %3481 = vmatpush.bf16.msrb.mxu3 %v7311_v19  ;;  %3323 = vmatpush.bf16.msra.mxu0 %v7249_v31  ;;  %v7689_v31 = vld [vmem:[#allocation67_spill] sm:$0xff]  ;;  %v7700_v19 = vld [vmem:[#allocation94_spill] sm:$0xff] }
 0x6fc   :  { %3349 = vmatpush.bf16.msra.mxu2 %v7250_v27  ;;  %v7690_v27 = vld [vmem:[#allocation78_spill] sm:$0xff] }
 0x6fd   :  { %3212 = vmatmul.bf16.vlgmr.msrb.gmra.mxu0 %v3150_v11  ;;  %3238 = vmatmul.bf16.vlgmr.msrb.gmra.mxu2 %v3150_v11 }
 0x6fe   :  { %3456 = vmatpush.bf16.msrb.mxu1 %v5507_v0  ;;  %v7685_v0 = vld [vmem:[#allocation45_spill] sm:$0xff] }
 0x6ff   :  { %3482 = vmatpush.bf16.msrb.mxu3 %v7312_v5  ;;  %3324 = vmatpush.bf16.msra.mxu0 %v7253_v1  ;;  %v7691_v1 = vld [vmem:[#allocation71_spill] sm:$0xff] }
 0x700   :  { %3350 = vmatpush.bf16.msra.mxu2 %v7254_v50  ;;  %v7692_v50 = vld [vmem:[#allocation83_spill] sm:$0xff] }
 0x701   :  { %v7701_v5 = vld [vmem:[#allocation95_spill] sm:$0xff] }
 0x702   :  { %3457 = vmatpush.bf16.msrb.mxu1 %v5517_v18  ;;  %v7686_v18 = vld [vmem:[#allocation70_spill] sm:$0xff] }
 0x703   :  { %3483 = vmatpush.bf16.msrb.mxu3 %v7602_v47  ;;  %3325 = vmatpush.bf16.msra.mxu0 %v7603_v38  ;;  %v7702_v47 = vld [vmem:[#allocation84_spill] sm:$0xff]  ;;  %v7703_v38 = vld [vmem:[#allocation85_spill] sm:$0xff] }
 0x704   :  { %3351 = vmatpush.bf16.msra.mxu2 %v7677_v7 }
 0x706   :  { %3458 = vmatpush.bf16.msrb.mxu1 %v7678_v13 }
 0x707   :  { %3484 = vmatpush.bf16.msrb.mxu3 %v7679_v8  ;;  %3326 = vmatpush.bf16.msra.mxu0 %v7680_v22 }
 0x708   :  { %3352 = vmatpush.bf16.msra.mxu2 %v7681_v9 }
 0x70a   :  { %3459 = vmatpush.bf16.msrb.mxu1 %v7682_v20 }
 0x70b   :  { %3485 = vmatpush.bf16.msrb.mxu3 %v7683_v37  ;;  %3327 = vmatpush.bf16.msra.mxu0 %v7684_v39 }
 0x70c   :  { %3353 = vmatpush.bf16.msra.mxu2 %v7685_v0  ;;  %v7738_v0 = vld [vmem:[#allocation25_spill] sm:$0xff] }
 0x70e   :  { %3460 = vmatpush.bf16.msrb.mxu1 %v7687_v61  ;;  %3328 = vmatmul.bf16.vlgmr.msra.gmra.mxu0 %v3150_v11 }
 0x70f   :  { %3441 = vmatpush.bf16.msrb.mxu0 %v7686_v18  ;;  %3486 = vmatpush.bf16.msrb.mxu3 %v7689_v31 }
 0x710   :  { %3467 = vmatpush.bf16.msrb.mxu2 %v7688_v24 }
 0x711   :  { %3354 = vmatmul.bf16.vlgmr.msra.gmra.mxu2 %v3150_v11  ;;  %v7737_v11 = vld [vmem:[#allocation135_spill] sm:$0xff] }
 0x712   :  { %3461 = vmatpush.bf16.msrb.mxu1 %v7691_v1  ;;  %v7739_v1 = vld [vmem:[#allocation38_spill] sm:$0xff] }
 0x713   :  { %3442 = vmatpush.bf16.msrb.mxu0 %v7690_v27  ;;  %3487 = vmatpush.bf16.msrb.mxu3 %v7694_v21 }
 0x714   :  { %3468 = vmatpush.bf16.msrb.mxu2 %v7692_v50 }
 0x716   :  { %3506 = vmatpush.bf16.msra.mxu1 %v7693_v52 }
 0x717   :  { %3532 = vmatpush.bf16.msra.mxu3 %v7695_v63  ;;  %3443 = vmatpush.bf16.msrb.mxu0 %v7696_v51  ;;  %v7740_v63 = vld [vmem:[#allocation63_spill] sm:$0xff]  ;;  %v7741_v51 = vld [vmem:[#allocation120_spill] sm:$0xff] }
 0x718   :  { %3469 = vmatpush.bf16.msrb.mxu2 %v7697_v15  ;;  %v644_v15 = vadd.f32 %v7741_v51, %v7740_v63  ;;  %v7749_v63 = vld [vmem:[#allocation37_spill] sm:$0xff] }
 0x71a   :  { %3507 = vmatpush.bf16.msra.mxu1 %v7698_v35 }
 0x71b   :  { %3533 = vmatpush.bf16.msra.mxu3 %v7699_v14  ;;  %3444 = vmatpush.bf16.msrb.mxu0 %v7700_v19 }
 0x71c   :  { %3470 = vmatpush.bf16.msrb.mxu2 %v7701_v5 }
 0x71e   :  { %3508 = vmatpush.bf16.msra.mxu1 %v7702_v47 }
 0x71f   :  { %3534 = vmatpush.bf16.msra.mxu3 %v7703_v38  ;;  %3445 = vmatpush.bf16.msrb.mxu0 %v7704_v42 }
 0x720   :  { %3471 = vmatpush.bf16.msrb.mxu2 %v7705_v59 }
 0x722   :  { %3509 = vmatpush.bf16.msra.mxu1 %v7706_v3 }
 0x723   :  { %3535 = vmatpush.bf16.msra.mxu3 %v7707_v33  ;;  %3446 = vmatpush.bf16.msrb.mxu0 %v7708_v34  ;;  %v7742_v34 = vld [vmem:[#allocation27_spill] sm:$0xff] }
 0x724   :  { %3472 = vmatpush.bf16.msrb.mxu2 %v7709_v44 }
 0x726   :  { %3510 = vmatpush.bf16.msra.mxu1 %v7710_v60 }
 0x727   :  { %3536 = vmatpush.bf16.msra.mxu3 %v7711_v12  ;;  %3447 = vmatpush.bf16.msrb.mxu0 %v7712_v32 }
 0x728   :  { %3473 = vmatpush.bf16.msrb.mxu2 %v7713_v62 }
 0x72a   :  { %3511 = vmatpush.bf16.msra.mxu1 %v7714_v41 }
 0x72b   :  { %3537 = vmatpush.bf16.msra.mxu3 %v7715_v36  ;;  %3448 = vmatpush.bf16.msrb.mxu0 %v7716_v6 }
 0x72c   :  { %3474 = vmatpush.bf16.msrb.mxu2 %v7718_v16  ;;  %v7743_v16 = vld [vmem:[#allocation40_spill] sm:$0xff] }
 0x72e   :  { %3512 = vmatpush.bf16.msra.mxu1 %v7719_v30 }
 0x72f   :  { %3493 = vmatpush.bf16.msra.mxu0 %v7717_v10  ;;  %3538 = vmatpush.bf16.msra.mxu3 %v7721_v48 }
 0x730   :  { %3519 = vmatpush.bf16.msra.mxu2 %v7720_v2 }
 0x732   :  { %3513 = vmatpush.bf16.msra.mxu1 %v7723_v49 }
 0x733   :  { %3494 = vmatpush.bf16.msra.mxu0 %v7722_v43  ;;  %3539 = vmatpush.bf16.msra.mxu3 %v7725_v25 }
 0x734   :  { %3520 = vmatpush.bf16.msra.mxu2 %v7724_v17 }
 0x737   :  { %3495 = vmatpush.bf16.msra.mxu0 %v7726_v40 }
 0x738   :  { %3521 = vmatpush.bf16.msra.mxu2 %v7727_v55 }
 0x73b   :  { %3496 = vmatpush.bf16.msra.mxu0 %v7728_v28 }
 0x73c   :  { %3522 = vmatpush.bf16.msra.mxu2 %v7729_v29 }
 0x73f   :  { %3497 = vmatpush.bf16.msra.mxu0 %v7730_v53 }
 0x740   :  { %3523 = vmatpush.bf16.msra.mxu2 %v7731_v46 }
 0x743   :  { %3498 = vmatpush.bf16.msra.mxu0 %v7732_v26 }
 0x744   :  { %3524 = vmatpush.bf16.msra.mxu2 %v7733_v58 }
 0x747   :  { %3499 = vmatpush.bf16.msra.mxu0 %v7734_v57 }
 0x748   :  { %3525 = vmatpush.bf16.msra.mxu2 %v7735_v54  ;;  %v7744_v54 = vld [vmem:[#allocation62_spill] sm:$0xff] }
 0x74b   :  { %3500 = vmatpush.bf16.msra.mxu0 %v7736_v4  ;;  %v7745_v4 = vld [vmem:[#allocation119_spill] sm:$0xff] }
 0x74c   :  { %3526 = vmatpush.bf16.msra.mxu2 %v7737_v11  ;;  %v615_v11 = vadd.f32 %v7745_v4, %v7744_v54  ;;  %v4721_v54 = vld [vmem:[#allocation11 + $0x64] sm:$0xf]  ;;  %v4553_v4 = vld [vmem:[#allocation11 + $0x68] sm:$0xf0] }
 0x752   :  { %v3174_v7 = vpop.f32.mrf.mxu1 }
 0x758   :  { %v3200_v13 = vpop.f32.mrf.mxu3 }
 0x75a   :  { %v3176_v8 = vpop.f32.mrf.mxu1 }
 0x760   :  { %v3202_v22 = vpop.f32.mrf.mxu3 }
 0x762   :  { %v3226_v9 = vpop.f32.mrf.mxu1 }
 0x768   :  { %v3252_v20 = vpop.f32.mrf.mxu3 }
 0x76a   :  { %v3228_v37 = vpop.f32.mrf.mxu1  ;;  %v3161_v39 = vpop.f32.mrf.mxu0 }
 0x76b   :  { %v3162_v18 = vadd.f32 %v3161_v39, %v7738_v0 }
 0x76d   :  { %v3175_v61 = vadd.f32 %v3174_v7, %v3162_v18 }
 0x76f   :  { %v4492_v24 = vmul.f32 -1.442695, %v3175_v61 }
 0x770   :  { %v3254_v31 = vpop.f32.mrf.mxu3  ;;  %v3187_v27 = vpop.f32.mrf.mxu2 }
 0x771   :  { %4968 = vpow2.f32 %v4492_v24  ;;  %v3188_v50 = vadd.f32 %v3187_v27, %v7739_v1 }
 0x772   :  { %v3163_v52 = vpop.f32.mrf.mxu0  ;;  %v3342_v21 = vpop.f32.mrf.mxu1 }
 0x773   :  { %v3201_v35 = vadd.f32 %v3200_v13, %v3188_v50  ;;  %v3373_v19 = vadd.f32 %v3342_v21, %v644_v15  ;;  %v7748_v21 = vld [vmem:[#allocation55_spill] sm:$0xff] }
 0x774   :  { %v673_v51 = vadd.f32 %v7749_v63, %v7748_v21 }
 0x775   :  { %v4493_v14 = vmul.f32 -1.442695, %v3201_v35  ;;  %v4496_v42 = vmul.f32 -1.442695, %v3373_v19 }
 0x777   :  { %v4969_v5 = vpop.eup %4968  ;;  %4970 = vpow2.f32 %v4493_v14 }
 0x778   :  { %v3265_v47 = vadd.f32 1.0, %v4969_v5  ;;  %v3189_v38 = vpop.f32.mrf.mxu2 }
 0x779   :  { %v6792_v59 = vpop.f32.mrf.mxu3 }
 0x77a   :  { %4972 = vrcp.f32 %v3265_v47  ;;  %v3213_v3 = vpop.f32.mrf.mxu0  ;;  %v3344_v33 = vpop.f32.mrf.mxu1  ;;  %v3279_v53 = vand.u32 2147483648, %v3265_v47  ;;  %vm3273_vm5 = vweird.f32 %v3265_v47  ;;  %v3277_v57 = vand.u32 2147483647, %v3265_v47 }
 0x77b   :  { %v3214_v44 = vadd.f32 %v3213_v3, %v7742_v34  ;;  %4974 = vpow2.f32 %v4496_v42 }
 0x77c   :  { %v3280_v37 = vor.u32 1.1754944e-38, %v3279_v53  ;;  %vm3278_vm9 = vcmp.eq.f32.partialorder %v3277_v57, 8.507059e+37  ;;  %v7751_v53 = vld [vmem:[#allocation23_spill] sm:$0xff] }
 0x77d   :  { %v4971_v60 = vpop.eup %4970  ;;  %v3227_v12 = vadd.f32 %v3226_v9, %v3214_v44 }
 0x77e   :  { %v3266_v32 = vadd.f32 1.0, %v4971_v60 }
 0x77f   :  { %v4494_v62 = vmul.f32 -1.442695, %v3227_v12 }
 0x780   :  { %v4973_v41 = vpop.eup %4972  ;;  %4976 = vrcp.f32 %v3266_v32  ;;  %v3239_v36 = vpop.f32.mrf.mxu2  ;;  %v3294_v7 = vand.u32 2147483648, %v3266_v32  ;;  %v3292_v8 = vand.u32 2147483647, %v3266_v32  ;;  %vm3288_vm8 = vweird.f32 %v3266_v32 }
 0x781   :  { %v3269_v6 = vmul.f32 %v4973_v41, %v3265_v47  ;;  %v3370_v10 = vpop.f32.mrf.mxu3  ;;  %4978 = vpow2.f32 %v4494_v62  ;;  %v3240_v30 = vadd.f32 %v3239_v36, %v7743_v16  ;;  %v4975_v48 = vpop.eup %4974  ;;  %vm3274_vm4 = vweird.f32 %v4973_v41 }
 0x782   :  { %v3215_v2 = vpop.f32.mrf.mxu0  ;;  %v6796_v40 = vadd.f32 1.0, %v4975_v48  ;;  %vm6801_vm6 = vmor %vm3273_vm5, %vm3274_vm4  ;;  %v3295_v24 = vor.u32 1.1754944e-38, %v3294_v7  ;;  %vm3293_vm11 = vcmp.eq.f32.partialorder %v3292_v8, 8.507059e+37  ;;  %v4723_v48 = vld [vmem:[#allocation11 + $0x74] sm:$0xf] }
 0x783   :  { %v3270_v43 = vsub.f32 1.0, %v3269_v6  ;;  %v3253_v49 = vadd.f32 %v3252_v20, %v3240_v30 }
 0x784   :  { %vm3408_vm1 = vweird.f32 %v6796_v40 }
 0x785   :  { %v3271_v17 = vmul.f32 %v4973_v41, %v3270_v43  ;;  %4980 = vtanh.f32 %v3253_v49  ;;  %v4561_v43 = vld [vmem:[#allocation11 + $0x78] sm:$0xf0] }
 0x786   :  { %v4977_v25 = vpop.eup %4976  ;;  %4982 = vrcp.f32 %v6796_v40 }
 0x787   :  { %v3284_v55 = vmul.f32 %v4977_v25, %v3266_v32  ;;  %v3272_v28 = vadd.f32 %v4973_v41, %v3271_v17  ;;  %v4979_v29 = vpop.eup %4978  ;;  %vm3289_vm7 = vweird.f32 %v4977_v25 }
 0x788   :  { %v3241_v46 = vpop.f32.mrf.mxu2  ;;  %v3267_v58 = vadd.f32 1.0, %v4979_v29  ;;  %vm3290_vm10 = vmor %vm3288_vm8, %vm3289_vm7  ;;  %v7750_v29 = vld [vmem:[#allocation56_spill] sm:$0xff] }
 0x789   :  { %v3285_v26 = vsub.f32 1.0, %v3284_v55  ;;  %v3276_v20 = vsel %vm6801_vm6, %v4973_v41, %v3272_v28  ;;  %v702_v46 = vadd.f32 %v7751_v53, %v7750_v29 }
 0x78a   :  { %4984 = vrcp.f32 %v3267_v58  ;;  %v3281_v31 = vsel %vm3278_vm9, %v3280_v37, %v3276_v20  ;;  %v3309_v12 = vand.u32 2147483648, %v3267_v58  ;;  %vm3303_vm13 = vweird.f32 %v3267_v58  ;;  %v4719_v37 = vld [vmem:[#allocation11 + $0x54] sm:$0xf] }
 0x78b   :  { %v3329_v22 = vpop.f32.mrf.mxu0  ;;  %v3286_v9 = vmul.f32 %v4977_v25, %v3285_v26  ;;  %v4981_v61 = vpop.eup %4980  ;;  %v3375_v7 = vadd.f32 %v6792_v59, %v702_v46  ;;  %v4556_v20 = vor.u32 %v4721_v54, %v4553_v4  ;;  %v4722_v54 = vld [vmem:[#allocation11 + $0x64] sm:$0xf0] }
 0x78c   :  { %v3372_v39 = vadd.f32 %v3329_v22, %v615_v11  ;;  %v6807_v52 = vpop.eup %4982  ;;  %v3315_v19 = vmul.f32 %v4981_v61, %v3281_v31  ;;  %v3310_v10 = vor.u32 1.1754944e-38, %v3309_v12  ;;  %v3412_v22 = vand.u32 2147483647, %v6796_v40  ;;  %v4715_v12 = vld [vmem:[#allocation11 + $0x34] sm:$0xf] }
 0x78d   :  { %v3287_v18 = vadd.f32 %v4977_v25, %v3286_v9  ;;  %v3404_v33 = vmul.f32 %v6807_v52, %v6796_v40  ;;  %vm3409_vm0 = vweird.f32 %v6807_v52  ;;  %v3414_v9 = vand.u32 2147483648, %v6796_v40 }
 0x78e   :  { %v4495_v27 = vmul.f32 -1.442695, %v3372_v39  ;;  %v4545_v39 = vld [vmem:[#allocation11 + $0x58] sm:$0xf0]  ;;  %vm6837_vm2 = vmor %vm3408_vm1, %vm3409_vm0  ;;  %vm3413_vm4 = vcmp.eq.f32.partialorder %v3412_v22, 8.507059e+37 }
 0x78f   :  { %v3291_v50 = vsel %vm3290_vm10, %v4977_v25, %v3287_v18  ;;  %v3405_v36 = vsub.f32 1.0, %v3404_v33  ;;  %v3415_v21 = vor.u32 1.1754944e-38, %v3414_v9  ;;  %v4548_v40 = vor.u32 %v4719_v37, %v4545_v39  ;;  %v4720_v22 = vld [vmem:[#allocation11 + $0x54] sm:$0xf0]  ;;  %v4535_v39 = vld [vmem:[#allocation11 + $0x40] sm:$0xf] }
 0x790   :  { %v3296_v15 = vsel %vm3293_vm11, %v3295_v24, %v3291_v50  ;;  %4986 = vpow2.f32 %v4495_v27  ;;  %v4985_v35 = vpop.eup %4984  ;;  %v4718_v18 = vld [vmem:[#allocation11 + $0x44] sm:$0xf0] }
 0x791   :  { %v3314_v14 = vmul.f32 %v3296_v15, %v6664_v45  ;;  %v3299_v47 = vmul.f32 %v4985_v35, %v3267_v58  ;;  %vm3304_vm12 = vweird.f32 %v4985_v35  ;;  %v3307_v45 = vand.u32 2147483647, %v3267_v58  ;;  %v4717_v15 = vld [vmem:[#allocation11 + $0x44] sm:$0xf] }
 0x792   :  { %vm3305_vm14 = vmor %vm3303_vm13, %vm3304_vm12  ;;  %v3406_v55 = vmul.f32 %v6807_v52, %v3405_v36  ;;  %v4564_v58 = vor.u32 %v4723_v48, %v4561_v43  ;;  %v4559_v43 = vld [vmem:[#allocation11 + $0x70] sm:$0xf] }
 0x793   :  { %v3331_v42 = vpop.f32.mrf.mxu0  ;;  %v6812_v3 = vadd.f32 %v3315_v19, %v3314_v14  ;;  %v3300_v44 = vsub.f32 1.0, %v3299_v47  ;;  %vm3308_vm15 = vcmp.eq.f32.partialorder %v3307_v45, 8.507059e+37 }
 0x794   :  { %v3355_v5 = vpop.f32.mrf.mxu2  ;;  %v3407_v13 = vadd.f32 %v6807_v52, %v3406_v55 }
 0x795   :  { %v3374_v38 = vadd.f32 %v3355_v5, %v673_v51  ;;  %4988 = vtanh.f32 %v6812_v3  ;;  %v3301_v62 = vmul.f32 %v4985_v35, %v3300_v44 }
 0x796   :  { %v4987_v32 = vpop.eup %4986  ;;  %v3411_v24 = vsel %vm6837_vm2, %v6807_v52, %v3407_v13 }
 0x797   :  { %v4497_v60 = vmul.f32 -1.442695, %v3374_v38  ;;  %v3385_v41 = vadd.f32 1.0, %v4987_v32  ;;  %v3302_v6 = vadd.f32 %v4985_v35, %v3301_v62  ;;  %v3416_v14 = vsel %vm3413_vm4, %v3415_v21, %v3411_v24  ;;  %v4529_v32 = vld [vmem:[#allocation11 + $0x38] sm:$0xf0] }
 0x798   :  { %v3434_v33 = vmul.f32 %v3416_v14, %v6695_v56  ;;  %v4527_v24 = vld [vmem:[#allocation11 + $0x30] sm:$0xf]  ;;  %v4714_v21 = vld [vmem:[#allocation11 + $0x24] sm:$0xf0] }
 0x799   :  { %4990 = vpow2.f32 %v4497_v60  ;;  %v3306_v2 = vsel %vm3305_vm14, %v4985_v35, %v3302_v6  ;;  %v3399_v61 = vand.u32 2147483648, %v3385_v41  ;;  %v3397_v27 = vand.u32 2147483647, %v3385_v41  ;;  %v4537_v35 = vld [vmem:[#allocation11 + $0x48] sm:$0xf0] }
 0x79a   :  { %4992 = vrcp.f32 %v3385_v41  ;;  %v3311_v17 = vsel %vm3308_vm15, %v3310_v10, %v3306_v2  ;;  %vm3393_vm5 = vweird.f32 %v3385_v41  ;;  %v4540_v42 = vor.u32 %v4717_v15, %v4537_v35  ;;  %v4713_v6 = vld [vmem:[#allocation11 + $0x24] sm:$0xf]  ;;  %v4521_v10 = vld [vmem:[#allocation11 + $0x28] sm:$0xf0] }
 0x79b   :  { %v4989_v49 = vpop.eup %4988  ;;  %v3400_v19 = vor.u32 1.1754944e-38, %v3399_v61  ;;  %vm3398_vm7 = vcmp.eq.f32.partialorder %v3397_v27, 8.507059e+37  ;;  %v4524_v56 = vor.u32 %v4713_v6, %v4521_v10  ;;  %v4536_v61 = vor.u32 %v4718_v18, %v4535_v39  ;;  %v7756_v35 = vld [vmem:[#allocation49_spill] sm:$0xff]  ;;  %v7757_v14 = vld [vmem:[#allocation50_spill] sm:$0xff] }
 0x79c   :  { %v3357_v30 = vpop.f32.mrf.mxu2  ;;  %v6818_v28 = vmul.f32 %v4989_v49, %v3311_v17  ;;  %v4724_v49 = vld [vmem:[#allocation11 + $0x74] sm:$0xf0]  ;;  %v4711_v17 = vld [vmem:[#allocation11 + $0x14] sm:$0xf]  ;;  %v3643_v6 = vld [vmem:[%s6919_s8] sm:$0x3] }
 0x79d   :  { %v4560_v46 = vor.u32 %v4724_v49, %v4559_v43  ;;  %s5231_s8 = smov [#allocation13]  }
 0x79e   :  { %v6826_v57 = vpack.c.bf16 %v6818_v28, %v6818_v28  ;;  %s3820_s24 = sshll.u32 %s5231_s8, 4  ;;  %s3821_s24 = int_to_ptr.vmem [resolvable:$true] %s3820_s24 }
 0x79f   :  { %v4991_v25 = vpop.eup %4990 }
 0x7a0   :  { %v6822_v26 = vadd.f32 1.0, %v4991_v25  ;;  %v4993_v11 = vpop.eup %4992  ;;  %3462 = vmatmul.bf16.vlgmr.msrb.gmra.mxu1 %v6826_v57  ;;  %3488 = vmatmul.bf16.vlgmr.msrb.gmra.mxu3 %v6826_v57  ;;  %v4513_v25 = vld [vmem:[#allocation11 + $0x18] sm:$0xf0] }
 0x7a1   :  { %v3389_v8 = vmul.f32 %v4993_v11, %v3385_v41  ;;  %3758 = vmatpush.bf16.msrb.mxu1 %v4564_v58  ;;  %vm3394_vm3 = vweird.f32 %v4993_v11  ;;  %v4532_v41 = vor.u32 %v4715_v12, %v4529_v32  ;;  %v4551_v58 = vld [vmem:[#allocation11 + $0x60] sm:$0xf] }
 0x7a2   :  { %4994 = vrcp.f32 %v6822_v26  ;;  %vm3395_vm6 = vmor %vm3393_vm5, %vm3394_vm3  ;;  %v3429_v36 = vand.u32 2147483648, %v6822_v26  ;;  %vm3423_vm9 = vweird.f32 %v6822_v26  ;;  %v3427_v30 = vand.u32 2147483647, %v6822_v26 }
 0x7a3   :  { %v3390_v59 = vsub.f32 1.0, %v3389_v8  ;;  %4996 = vtanh.f32 %v3375_v7  ;;  %v4552_v7 = vor.u32 %v4722_v54, %v4551_v58  ;;  %v4543_v8 = vld [vmem:[#allocation11 + $0x50] sm:$0xf] }
 0x7a4   :  { %v3430_v48 = vor.u32 1.1754944e-38, %v3429_v36  ;;  %vm3428_vm11 = vcmp.eq.f32.partialorder %v3427_v30, 8.507059e+37  ;;  %v4544_v9 = vor.u32 %v4720_v22, %v4543_v8 }
 0x7a5   :  { %v3391_v31 = vmul.f32 %v4993_v11, %v3390_v59  ;;  %3759 = vmatpush.bf16.msrb.mxu1 %v4556_v20  ;;  %v7754_v20 = vld [vmem:[#allocation53_spill] sm:$0xff]  ;;  %v7755_v59 = vld [vmem:[#allocation52_spill] sm:$0xff] }
 0x7a6   :  { %v3623_v37 = vpack.c.bf16 %v7755_v59, %v7754_v20 }
 0x7a7   :  { %v3392_v63 = vadd.f32 %v4993_v11, %v3391_v31  ;;  %v4716_v31 = vld [vmem:[#allocation11 + $0x34] sm:$0xf0] }
 0x7a8   :  { %v4995_v50 = vpop.eup %4994  ;;  %v4528_v27 = vor.u32 %v4716_v31, %v4527_v24 }
 0x7a9   :  { %v3419_v51 = vmul.f32 %v4995_v50, %v6822_v26  ;;  %v3396_v5 = vsel %vm3395_vm6, %v4993_v11, %v3392_v63  ;;  %v4997_v47 = vpop.eup %4996  ;;  %3760 = vmatpush.bf16.msrb.mxu1 %v4548_v40  ;;  %vm3424_vm8 = vweird.f32 %v4995_v50  ;;  %v4516_v26 = vor.u32 %v4711_v17, %v4513_v25  ;;  %v4505_v11 = vld [vmem:[#allocation11 + $0x8] sm:$0xf0]  ;;  %v4511_v63 = vld [vmem:[#allocation11 + $0x10] sm:$0xf] }
 0x7aa   :  { %v3401_v38 = vsel %vm3398_vm7, %v3400_v19, %v3396_v5  ;;  %vm3425_vm10 = vmor %vm3423_vm9, %vm3424_vm8  ;;  %v3624_v19 = vpack.c.bf16 %v7757_v14, %v7756_v35  ;;  %v4503_v5 = vld [vmem:[#allocation11] sm:$0xf] }
 0x7ab   :  { %v3420_v52 = vsub.f32 1.0, %v3419_v51  ;;  %v3435_v44 = vmul.f32 %v4997_v47, %v3401_v38  ;;  %v4712_v51 = vld [vmem:[#allocation11 + $0x14] sm:$0xf0]  ;;  %v7758_v38 = vld [vmem:[#allocation21_spill] sm:$0xff] }
 0x7ac   :  { %v4512_v15 = vor.u32 %v4712_v51, %v4511_v63 }
 0x7ad   :  { %v3421_v60 = vmul.f32 %v4995_v50, %v3420_v52  ;;  %v3436_v62 = vadd.f32 %v3435_v44, %v3434_v33  ;;  %3761 = vmatpush.bf16.msrb.mxu1 %v4540_v42  ;;  %v4710_v52 = vld [vmem:[#allocation11 + $0x4] sm:$0xf0]  ;;  %v3625_v42 = vpack.c.bf16 %v6670_v23, %v7758_v38 }
 0x7ae   :  { %v4504_v47 = vor.u32 %v4710_v52, %v4503_v5 }
 0x7af   :  { %v3422_v45 = vadd.f32 %v4995_v50, %v3421_v60  ;;  %3610 = vst [vmem:[#allocation15] sm:$0xff] %v3436_v62  ;;  %4998 = vtanh.f32 %v3436_v62 }
 0x7b0   :  { %3514 = vmatmul.bf16.vlgmr.msra.gmra.mxu1 %v6826_v57  ;;  %3540 = vmatmul.bf16.vlgmr.msra.gmra.mxu3 %v6826_v57  ;;  %v4709_v57 = vld [vmem:[#allocation11 + $0x4] sm:$0xf] }
 0x7b1   :  { %3762 = vmatpush.bf16.msrb.mxu1 %v4532_v41  ;;  %v3426_v2 = vsel %vm3425_vm10, %v4995_v50, %v3422_v45  ;;  %v4508_v13 = vor.u32 %v4709_v57, %v4505_v11  ;;  %v4519_v50 = vld [vmem:[#allocation11 + $0x20] sm:$0xf] }
 0x7b2   :  { %v3431_v29 = vsel %vm3428_vm11, %v3430_v48, %v3426_v2  ;;  %v4520_v40 = vor.u32 %v4714_v21, %v4519_v50 }
 0x7b5   :  { %v4999_v55 = vpop.eup %4998  ;;  %3763 = vmatpush.bf16.msrb.mxu1 %v4524_v56  ;;  %v6861_v56 = vperm.slane %v3643_v6, 1 }
 0x7b6   :  { %v3438_v53 = vmul.f32 %v4999_v55, %v3431_v29 }
 0x7b8   :  { %v3439_v4 = vpack.c.bf16 %v3438_v53, %v3438_v53  ;;  %3609 = vst [vmem:[#allocation13] sm:$0xff] %v3438_v53 }
 0x7b9   :  { %3764 = vmatpush.bf16.msrb.mxu1 %v4516_v26 }
 0x7ba   :  { %3449 = vmatmul.bf16.vlgmr.msrb.gmra.mxu0 %v3439_v4  ;;  %3475 = vmatmul.bf16.vlgmr.msrb.gmra.mxu2 %v3439_v4 }
 0x7bb   :  { %3729 = vmatpush.bf16.msrb.mxu0 %v4560_v46 }
 0x7bd   :  { %3765 = vmatpush.bf16.msrb.mxu1 %v4508_v13 }
 0x7bf   :  { %3730 = vmatpush.bf16.msrb.mxu0 %v4552_v7 }
 0x7c0   :  { %3766 = vmatmul.bf16.vlgmr.msrb.gmra.mxu1 %v3623_v37 }
 0x7c3   :  { %3731 = vmatpush.bf16.msrb.mxu0 %v4544_v9 }
 0x7c7   :  { %3732 = vmatpush.bf16.msrb.mxu0 %v4536_v61 }
 0x7ca   :  { %3501 = vmatmul.bf16.vlgmr.msra.gmra.mxu0 %v3439_v4  ;;  %3527 = vmatmul.bf16.vlgmr.msra.gmra.mxu2 %v3439_v4 }
 0x7cb   :  { %3733 = vmatpush.bf16.msrb.mxu0 %v4528_v27  ;;  %v6869_v27 = vperm.slane %v3643_v6, 0 }
 0x7cf   :  { %3734 = vmatpush.bf16.msrb.mxu0 %v4520_v40 }
 0x7d0   :  { %3771 = vmatmul.bf16.gmra.mxu1 %v3624_v19 }
 0x7d3   :  { %3735 = vmatpush.bf16.msrb.mxu0 %v4512_v15 }
 0x7d7   :  { %3736 = vmatpush.bf16.msrb.mxu0 %v4504_v47 }
 0x7da   :  { %3737 = vmatmul.bf16.vlgmr.msrb.gmra.mxu0 %v3623_v37 }
 0x7e0   :  { %3776 = vmatmul.bf16.gmra.mxu1 %v3625_v42 }
 0x7ea   :  { %3742 = vmatmul.bf16.gmra.mxu0 %v3624_v19 }
 0x7fa   :  { %3747 = vmatmul.bf16.gmra.mxu0 %v3625_v42 }
 0x81d   :  { %v3463_v33 = vpop.f32.mrf.mxu1 }
 0x823   :  { %v3489_v44 = vpop.f32.mrf.mxu3 }
 0x825   :  { %v3465_v60 = vpop.f32.mrf.mxu1 }
 0x82b   :  { %v3491_v12 = vpop.f32.mrf.mxu3 }
 0x82d   :  { %v3515_v32 = vpop.f32.mrf.mxu1 }
 0x833   :  { %v3541_v62 = vpop.f32.mrf.mxu3 }
 0x835   :  { %v3517_v45 = vpop.f32.mrf.mxu1 }
 0x837   :  { %v3450_v41 = vpop.f32.mrf.mxu0 }
 0x838   :  { %v3451_v36 = vadd.f32 %v3450_v41, %v7738_v0 }
 0x83a   :  { %v3464_v10 = vadd.f32 %v3463_v33, %v3451_v36 }
 0x83b   :  { %v3543_v23 = vpop.f32.mrf.mxu3 }
 0x83c   :  { %v4498_v30 = vmul.f32 -1.442695, %v3464_v10 }
 0x83d   :  { %v3476_v2 = vpop.f32.mrf.mxu2  ;;  %v3767_v49 = vpop.f32.mrf.mxu1 }
 0x83e   :  { %5000 = vpow2.f32 %v4498_v30  ;;  %v3477_v48 = vadd.f32 %v3476_v2, %v7739_v1  ;;  %v3768_v25 = vadd.f32 %v3767_v49, %v6861_v56 }
 0x83f   :  { %v3452_v43 = vpop.f32.mrf.mxu0 }
 0x840   :  { %v3490_v17 = vadd.f32 %v3489_v44, %v3477_v48  ;;  %3788 = vst [vmem:[#allocation12 + $0x8] sm:$0xff] %v3768_v25 }
 0x842   :  { %v4499_v55 = vmul.f32 -1.442695, %v3490_v17 }
 0x844   :  { %v5001_v0 = vpop.eup %5000  ;;  %5002 = vpow2.f32 %v4499_v55 }
 0x845   :  { %v3554_v29 = vadd.f32 1.0, %v5001_v0  ;;  %v3478_v53 = vpop.f32.mrf.mxu2  ;;  %v3769_v26 = vpop.f32.mrf.mxu1 }
 0x846   :  { %v3770_v54 = vadd.f32 %v3769_v26, %v6861_v56 }
 0x847   :  { %5004 = vrcp.f32 %v3554_v29  ;;  %v3502_v46 = vpop.f32.mrf.mxu0  ;;  %v3568_v21 = vand.u32 2147483648, %v3554_v29  ;;  %vm3562_vm13 = vweird.f32 %v3554_v29  ;;  %v3566_v63 = vand.u32 2147483647, %v3554_v29 }
 0x848   :  { %v3503_v58 = vadd.f32 %v3502_v46, %v7742_v34  ;;  %3790 = vst [vmem:[#allocation12 + $0x18] sm:$0xff] %v3770_v54 }
 0x849   :  { %v3569_v42 = vor.u32 1.1754944e-38, %v3568_v21  ;;  %vm3567_vm1 = vcmp.eq.f32.partialorder %v3566_v63, 8.507059e+37 }
 0x84a   :  { %v5003_v4 = vpop.eup %5002  ;;  %v3516_v1 = vadd.f32 %v3515_v32, %v3503_v58 }
 0x84b   :  { %v3555_v57 = vadd.f32 1.0, %v5003_v4 }
 0x84c   :  { %v4500_v11 = vmul.f32 -1.442695, %v3516_v1 }
 0x84d   :  { %v5005_v7 = vpop.eup %5004  ;;  %5006 = vrcp.f32 %v3555_v57  ;;  %v3528_v13 = vpop.f32.mrf.mxu2  ;;  %v3583_v51 = vand.u32 2147483648, %v3555_v57  ;;  %v3581_v35 = vand.u32 2147483647, %v3555_v57  ;;  %vm3577_vm0 = vweird.f32 %v3555_v57 }
 0x84e   :  { %v3558_v8 = vmul.f32 %v5005_v7, %v3554_v29  ;;  %5008 = vpow2.f32 %v4500_v11  ;;  %v3529_v22 = vadd.f32 %v3528_v13, %v7743_v16  ;;  %v3772_v20 = vpop.f32.mrf.mxu1  ;;  %vm3563_vm12 = vweird.f32 %v5005_v7 }
 0x84f   :  { %v3504_v9 = vpop.f32.mrf.mxu0  ;;  %v3773_v37 = vadd.f32 %v3772_v20, %v6861_v56  ;;  %vm6871_vm15 = vmor %vm3562_vm13, %vm3563_vm12  ;;  %v3584_v60 = vor.u32 1.1754944e-38, %v3583_v51  ;;  %vm3582_vm3 = vcmp.eq.f32.partialorder %v3581_v35, 8.507059e+37 }
 0x850   :  { %v3559_v59 = vsub.f32 1.0, %v3558_v8  ;;  %v3542_v34 = vadd.f32 %v3541_v62, %v3529_v22 }
 0x851   :  { %3792 = vst [vmem:[#allocation12 + $0x28] sm:$0xff] %v3773_v37 }
 0x852   :  { %v3560_v39 = vmul.f32 %v5005_v7, %v3559_v59  ;;  %5010 = vtanh.f32 %v3542_v34 }
 0x853   :  { %v5007_v18 = vpop.eup %5006 }
 0x854   :  { %v5009_v61 = vpop.eup %5008  ;;  %v3573_v24 = vmul.f32 %v5007_v18, %v3555_v57  ;;  %v3561_v31 = vadd.f32 %v5005_v7, %v3560_v39  ;;  %vm3578_vm14 = vweird.f32 %v5007_v18 }
 0x855   :  { %v3556_v50 = vadd.f32 1.0, %v5009_v61  ;;  %v3530_v40 = vpop.f32.mrf.mxu2  ;;  %vm3579_vm2 = vmor %vm3577_vm0, %vm3578_vm14 }
 0x856   :  { %v3574_v16 = vsub.f32 1.0, %v3573_v24  ;;  %v3774_v19 = vpop.f32.mrf.mxu1  ;;  %v3565_v52 = vsel %vm6871_vm15, %v5005_v7, %v3561_v31 }
 0x857   :  { %5012 = vrcp.f32 %v3556_v50  ;;  %v3738_v14 = vpop.f32.mrf.mxu0  ;;  %v3775_v38 = vadd.f32 %v3774_v19, %v6861_v56  ;;  %v3570_v12 = vsel %vm3567_vm1, %v3569_v42, %v3565_v52  ;;  %v3598_v49 = vand.u32 2147483648, %v3556_v50 }
 0x858   :  { %v3575_v5 = vmul.f32 %v5007_v18, %v3574_v16  ;;  %v3739_v47 = vadd.f32 %v3738_v14, %v6869_v27  ;;  %v5011_v44 = vpop.eup %5010  ;;  %v3596_v25 = vand.u32 2147483647, %v3556_v50  ;;  %vm3592_vm5 = vweird.f32 %v3556_v50 }
 0x859   :  { %3794 = vst [vmem:[#allocation12 + $0x38] sm:$0xff] %v3775_v38  ;;  %v3604_v6 = vmul.f32 %v5011_v44, %v3570_v12 }
 0x85a   :  { %v3576_v33 = vadd.f32 %v5007_v18, %v3575_v5  ;;  %3787 = vst [vmem:[#allocation12] sm:$0xff] %v3739_v47  ;;  %vm3597_vm7 = vcmp.eq.f32.partialorder %v3596_v25, 8.507059e+37 }
 0x85c   :  { %v3580_v32 = vsel %vm3579_vm2, %v5007_v18, %v3576_v33 }
 0x85d   :  { %v5013_v62 = vpop.eup %5012  ;;  %v3585_v45 = vsel %vm3582_vm3, %v3584_v60, %v3580_v32 }
 0x85e   :  { %v3588_v41 = vmul.f32 %v5013_v62, %v3556_v50  ;;  %v3603_v36 = vmul.f32 %v3585_v45, %v6812_v3  ;;  %v3777_v30 = vpop.f32.mrf.mxu1  ;;  %vm3593_vm4 = vweird.f32 %v5013_v62  ;;  %v3599_v3 = vor.u32 1.1754944e-38, %v3598_v49 }
 0x85f   :  { %v3740_v10 = vpop.f32.mrf.mxu0  ;;  %v3778_v48 = vadd.f32 %v3777_v30, %v6861_v56  ;;  %vm3594_vm6 = vmor %vm3592_vm5, %vm3593_vm4 }
 0x860   :  { %v3605_v23 = vadd.f32 %v3604_v6, %v3603_v36  ;;  %v3741_v2 = vadd.f32 %v3740_v10, %v6869_v27  ;;  %v3589_v43 = vsub.f32 1.0, %v3588_v41 }
 0x861   :  { %3796 = vst [vmem:[#allocation12 + $0x48] sm:$0xff] %v3778_v48 }
 0x862   :  { %3614 = vst [vmem:[#allocation15 + $0x8] sm:$0xff] %v3605_v23  ;;  %v3590_v17 = vmul.f32 %v5013_v62, %v3589_v43  ;;  %5014 = vtanh.f32 %v3605_v23 }
 0x863   :  { %3789 = vst [vmem:[#allocation12 + $0x10] sm:$0xff] %v3741_v2 }
 0x864   :  { %v3591_v55 = vadd.f32 %v5013_v62, %v3590_v17 }
 0x866   :  { %v3595_v0 = vsel %vm3594_vm6, %v5013_v62, %v3591_v55  ;;  %v3779_v53 = vpop.f32.mrf.mxu1 }
 0x867   :  { %v3743_v29 = vpop.f32.mrf.mxu0  ;;  %v3600_v46 = vsel %vm3597_vm7, %v3599_v3, %v3595_v0  ;;  %v3780_v54 = vadd.f32 %v3779_v53, %v6861_v56 }
 0x868   :  { %v5015_v26 = vpop.eup %5014  ;;  %v3744_v58 = vadd.f32 %v3743_v29, %v6869_v27 }
 0x869   :  { %v3607_v4 = vmul.f32 %v5015_v26, %v3600_v46  ;;  %3798 = vst [vmem:[#allocation12 + $0x58] sm:$0xff] %v3780_v54 }
 0x86a   :  { %3791 = vst [vmem:[#allocation12 + $0x20] sm:$0xff] %v3744_v58 }
 0x86b   :  { %v3626_v1 = vpack.c.bf16 %v3607_v4, %v6818_v28  ;;  %3612 = vst [vmem:[#allocation13 + $0x8] sm:$0xff] %v3607_v4 }
 0x86c   :  { %3828 = dma.vmem_to_hbm [thread:$0]  %s3821_s24, 256, %s3823_s27, [#allocation14], %s5227_s3, %s5227_s3, %s5228_s19  }
 0x86d   :  { %3752 = vmatmul.bf16.gmra.mxu0 %v3626_v1  ;;  %3781 = vmatmul.bf16.gmra.mxu1 %v3626_v1  ;;  %3841 = dma.vmem_to_hbm [thread:$0]  %s3834_s29, 256, %s3836_s14, [#allocation14], %s5227_s3, %s5227_s3, %s5228_s19  }
 0x86f   :  { %v3745_v57 = vpop.f32.mrf.mxu0 }
 0x870   :  { %v3746_v11 = vadd.f32 %v3745_v57, %v6869_v27 }
 0x872   :  { %3793 = vst [vmem:[#allocation12 + $0x30] sm:$0xff] %v3746_v11 }
 0x877   :  { %v3748_v7 = vpop.f32.mrf.mxu0 }
 0x878   :  { %v3749_v28 = vadd.f32 %v3748_v7, %v6869_v27 }
 0x87a   :  { %3795 = vst [vmem:[#allocation12 + $0x40] sm:$0xff] %v3749_v28 }
 0x87f   :  { %v3750_v13 = vpop.f32.mrf.mxu0 }
 0x880   :  { %v3751_v8 = vadd.f32 %v3750_v13, %v6869_v27 }
 0x882   :  { %3797 = vst [vmem:[#allocation12 + $0x50] sm:$0xff] %v3751_v8 }
 0x8ea   :  { %v3753_v22 = vpop.f32.mrf.mxu0  ;;  %v3782_v9 = vpop.f32.mrf.mxu1 }
 0x8eb   :  { %v3754_v20 = vadd.f32 %v3753_v22, %v6869_v27  ;;  %v3783_v59 = vadd.f32 %v3782_v9, %v6861_v56 }
 0x8ed   :  { %3799 = vst [vmem:[#allocation12 + $0x60] sm:$0xff] %v3754_v20 }
 0x8ee   :  { %3800 = vst [vmem:[#allocation12 + $0x68] sm:$0xff] %v3783_v59 }
 0x8f2   :  { %v3755_v37 = vpop.f32.mrf.mxu0  ;;  %v3784_v34 = vpop.f32.mrf.mxu1 }
 0x8f3   :  { %v3756_v39 = vadd.f32 %v3755_v37, %v6869_v27  ;;  %v3785_v18 = vadd.f32 %v3784_v34, %v6861_v56 }
 0x8f5   :  { %3801 = vst [vmem:[#allocation12 + $0x70] sm:$0xff] %v3756_v39 }
 0x8f6   :  { %3802 = vst [vmem:[#allocation12 + $0x78] sm:$0xff] %v3785_v18 }
 0x8f7   :  { %3815 = dma.vmem_to_hbm [thread:$0]  %s3808_s13, 2048, %s3810_s18, [#allocation5], %s5219_s16, %s5219_s16, %s5220_s17  }
 0x8f8   :  { %5214 = dma.done.wait [#allocation5], 2048  }
 0x8f9   :  { %5215 = vsyncadd [#allocation5], 4294965248 }
 0x8fa   :  { %5216 = dma.done.wait [#allocation14], 512  }
 0x8fb   :  { %5217 = vsyncadd [#allocation14], 4294966784 }
 0x8fc   :  { %3854 = vsyncpa [#allocation4], 1 }
 0x8fd   :  { %3855 = vsyncpa [#allocation7], 1 }
 0x8fe   :  { %3856 = vsyncpa [#allocation10], 1 }
 0x8ff   :  { %3857 = vsyncpa [#allocation5], 1 }
 0x900   :  { %3858 = vsyncpa [#allocation14], 1 }

</bundles_post_ra>
